<compile_context>
chip_gen: v7x
topology: tpu7x:2x2x1
jax: 0.10.0
libtpu: 0.0.40
codegen_flags: <defaults>
</compile_context>

<pallas_src>
import functools

import numpy as np

import jax
import jax.numpy as jnp
from jax.experimental import pallas as pl
from jax.experimental.pallas import tpu as pltpu

# ----------------------------- config ---------------------------------------
IMG = 16          # img_size
IN_CH = 3         # RGB input to the ViT
PATCH = 8         # patch size -> 2x2 = 4 patches, 5 tokens with CLS
EMBED = 32        # vit.num_features (scaled down from 768)
HEADS = 4
DEPTH = 2
MLP_HIDDEN = 4 * EMBED
NUM_CLASSES = 4
S_DIM = IMG * IMG            # 256, input dim of linear1
HID = 512                    # linear1 / linear2 width
BN_EPS = 1e-5
LN_EPS = 1e-6

N_PATCHES = (IMG // PATCH) ** 2      # 4
N_TOKENS = N_PATCHES + 1             # 5
PATCH_DIM = IN_CH * PATCH * PATCH    # 192
HEAD_DIM = EMBED // HEADS            # 8
NEG_INF = -1e9


# --------------------------- in-kernel helpers -------------------------------

def _ln(x, g, b, eps=LN_EPS):
    mean = jnp.mean(x, axis=-1, keepdims=True)
    var = jnp.mean((x - mean) ** 2, axis=-1, keepdims=True)
    return (x - mean) * jax.lax.rsqrt(var + eps) * g + b


def _gelu(x):   # exact (erf) GELU, matching nn.GELU default
    return 0.5 * x * (1.0 + jax.lax.erf(x * 0.7071067811865476))


def _leaky_relu(x):   # F.leaky_relu default negative_slope = 0.01
    return jnp.where(x >= 0.0, x, 0.01 * x)


# ----------------------- fused ViT backbone body ------------------------------
# Token layout for a batch block of `bblk` images (M = bblk * N_TOKENS rows):
#   rows [0, bblk)                      : CLS token of image 0..bblk-1
#   rows [bblk + b*N_PATCHES + p]       : patch p of image b
# Row-wise ops (LN / matmuls / MLP) are layout-agnostic; the per-image attention
# structure is enforced by the additive block-diagonal mask `bias_ref`.

def _vit_feats(p_ref, base_ref, bias_ref, patch_w, lnf, vecE,
               qkv_w, qkv_b, proj_w, fc1_w, fc1_b, fc2_w,
               *, depth, heads, bblk):
    bf16 = jnp.bfloat16
    hd = EMBED // heads
    scale = 1.0 / float(hd) ** 0.5

    # ---- patch embedding + token assembly (all in vregs, no scratch stores) ----
    emb = jnp.dot(p_ref[...].astype(bf16), patch_w[...],
                  preferred_element_type=jnp.float32)        # (bblk*N_PATCHES, E)
    tok = jnp.concatenate(
        [jnp.zeros((bblk, EMBED), jnp.float32), emb], axis=0) + base_ref[...]
    attn_bias = bias_ref[...]                                 # (M, M) additive mask

    # ---- transformer blocks (DEPTH=2: static unroll is fine) ----
    for d in range(depth):
        # multi-head self-attention; per-head pre-split weights -> no lane slicing
        h16 = _ln(tok, vecE[d, 0:1, :], vecE[d, 1:2, :]).astype(bf16)
        attn = jnp.zeros_like(tok)
        for hh in range(heads):
            q = jnp.dot(h16, qkv_w[d, hh],
                        preferred_element_type=jnp.float32) + qkv_b[d, hh:hh + 1, :]
            k = jnp.dot(h16, qkv_w[d, heads + hh],
                        preferred_element_type=jnp.float32) \
                + qkv_b[d, heads + hh:heads + hh + 1, :]
            v = jnp.dot(h16, qkv_w[d, 2 * heads + hh],
                        preferred_element_type=jnp.float32) \
                + qkv_b[d, 2 * heads + hh:2 * heads + hh + 1, :]
            s = jax.lax.dot_general(q, k, (((1,), (1,)), ((), ())),
                                    preferred_element_type=jnp.float32) * scale
            s = s + attn_bias
            m = jnp.max(s, axis=-1, keepdims=True)
            p = jnp.exp(s - m)
            p = p * pl.reciprocal(jnp.sum(p, axis=-1, keepdims=True), approx=True)
            o = jnp.dot(p.astype(bf16), v.astype(bf16),
                        preferred_element_type=jnp.float32)
            # proj(concat_h(o_h)) == sum_h o_h @ proj_w_h  -> no head concat needed
            attn = attn + jnp.dot(o.astype(bf16), proj_w[d, hh],
                                  preferred_element_type=jnp.float32)
        tok = tok + attn + vecE[d, 2:3, :]

        # MLP
        h16 = _ln(tok, vecE[d, 3:4, :], vecE[d, 4:5, :]).astype(bf16)
        h = jnp.dot(h16, fc1_w[d], preferred_element_type=jnp.float32) + fc1_b[d]
        h = _gelu(h)
        tok = tok + jnp.dot(h.astype(bf16), fc2_w[d],
                            preferred_element_type=jnp.float32) + vecE[d, 5:6, :]

    tok = _ln(tok, lnf[0:1, :], lnf[1:2, :])
    return tok[0:bblk, :]          # CLS rows == timm global_pool='token' features


# ----------------------------- fused kernels ----------------------------------

def _with_s_kernel(p_ref, s_ref, base_ref, bias_ref,
                   patch_w, lnf, vecE, qkv_w, qkv_b, proj_w, fc1_w, fc1_b, fc2_w,
                   w1f, w2f, hbias, cls_w, cls_b,
                   logits_ref, feats_ref, sout_ref, *, depth, heads, bblk):
    bf16 = jnp.bfloat16
    feats = _vit_feats(p_ref, base_ref, bias_ref, patch_w, lnf, vecE,
                       qkv_w, qkv_b, proj_w, fc1_w, fc1_b, fc2_w,
                       depth=depth, heads=heads, bblk=bblk)
    feats_ref[...] = feats

    # s-branch: eval-mode BatchNorm1d already folded into w1f/b1f and w2f/b2f.
    # TODO(synk): training-mode stochastic Dropout not implemented (eval-mode identity).
    s1 = _leaky_relu(jnp.dot(s_ref[...].astype(bf16), w1f[...],
                             preferred_element_type=jnp.float32) + hbias[0:1, :])
    s2 = _leaky_relu(jnp.dot(s1.astype(bf16), w2f[...],
                             preferred_element_type=jnp.float32) + hbias[1:2, :])
    sout_ref[...] = s2

    # classifier over cat(feats, s): weight rows are split in-ref, so the concat of
    # activations never materializes.
    logits_ref[...] = (
        jnp.dot(feats.astype(bf16), cls_w[0:EMBED, :],
                preferred_element_type=jnp.float32)
        + jnp.dot(s2.astype(bf16), cls_w[EMBED:EMBED + HID, :],
                  preferred_element_type=jnp.float32)
        + cls_b[...])


def _no_s_kernel(p_ref, base_ref, bias_ref,
                 patch_w, lnf, vecE, qkv_w, qkv_b, proj_w, fc1_w, fc1_b, fc2_w,
                 cls_w, cls_b, logits_ref, feats_ref, *, depth, heads, bblk):
    feats = _vit_feats(p_ref, base_ref, bias_ref, patch_w, lnf, vecE,
                       qkv_w, qkv_b, proj_w, fc1_w, fc1_b, fc2_w,
                       depth=depth, heads=heads, bblk=bblk)
    feats_ref[...] = feats
    # s == zeros contributes nothing through the second half of the classifier weight
    logits_ref[...] = jnp.dot(feats.astype(jnp.bfloat16), cls_w[0:EMBED, :],
                              preferred_element_type=jnp.float32) + cls_b[...]


# ------------------------------ call wrappers ---------------------------------

def _wspec(a):   # whole array resident in VMEM; block index constant across the grid
    return pl.BlockSpec(a.shape, lambda b, nd=a.ndim: (0,) * nd)


def _attn_bias(bblk):
    """Additive block-diagonal mask for the 'CLS rows first' token layout."""
    m = bblk * N_TOKENS
    img = np.empty((m,), np.int32)
    img[:bblk] = np.arange(bblk)
    img[bblk:] = np.repeat(np.arange(bblk), N_PATCHES)
    return jnp.asarray(np.where(img[:, None] == img[None, :], 0.0, NEG_INF),
                       dtype=jnp.float32)


def _token_base(fp, bblk):
    """(M, EMBED) additive base: cls+pos[0] for CLS rows, pos[1:]+patch_b for patches."""
    tb = fp["tokbase"]                                  # (N_TOKENS, EMBED)
    return jnp.concatenate([jnp.tile(tb[0:1, :], (bblk, 1)),
                            jnp.tile(tb[1:, :], (bblk, 1))], axis=0)


def _extract_patches(x):
    # Pure layout on a ~3 KiB tensor; done as XLA glue so the flattened (c, ph, pw)
    # patch order matches a flattened Conv2d patch-embed weight.
    B, C, H, W = x.shape
    gh, gw = H // PATCH, W // PATCH
    p = x.reshape(B, C, gh, PATCH, gw, PATCH).transpose(0, 2, 4, 1, 3, 5)
    return p.reshape(B * gh * gw, C * PATCH * PATCH)    # (B*N_PATCHES, PATCH_DIM)


_BACKBONE_W = ("patch_w", "lnf", "vecE", "qkv_w", "qkv_b", "proj_w",
               "fc1_w", "fc1_b", "fc2_w")


def _call_with_s(fp, patches, s_flat, bblk):
    B = s_flat.shape[0]
    names = _BACKBONE_W + ("w1f", "w2f", "hbias", "cls_w", "cls_b")
    weights = [fp[n] for n in names]
    base = _token_base(fp, bblk)
    bias = _attn_bias(bblk)
    return pl.pallas_call(
        functools.partial(_with_s_kernel, depth=DEPTH, heads=HEADS, bblk=bblk),
        out_shape=(jax.ShapeDtypeStruct((B, NUM_CLASSES), jnp.float32),
                   jax.ShapeDtypeStruct((B, EMBED), jnp.float32),
                   jax.ShapeDtypeStruct((B, HID), jnp.float32)),
        grid=(B // bblk,),
        in_specs=[pl.BlockSpec((bblk * N_PATCHES, PATCH_DIM), lambda b: (b, 0)),
                  pl.BlockSpec((bblk, S_DIM), lambda b: (b, 0)),
                  _wspec(base), _wspec(bias)] + [_wspec(w) for w in weights],
        out_specs=(pl.BlockSpec((bblk, NUM_CLASSES), lambda b: (b, 0)),
                   pl.BlockSpec((bblk, EMBED), lambda b: (b, 0)),
                   pl.BlockSpec((bblk, HID), lambda b: (b, 0))),
        compiler_params=pltpu.CompilerParams(dimension_semantics=("parallel",)),
    )(patches, s_flat, base, bias, *weights)


def _call_no_s(fp, patches, bblk, B):
    names = _BACKBONE_W + ("cls_w", "cls_b")
    weights = [fp[n] for n in names]
    base = _token_base(fp, bblk)
    bias = _attn_bias(bblk)
    return pl.pallas_call(
        functools.partial(_no_s_kernel, depth=DEPTH, heads=HEADS, bblk=bblk),
        out_shape=(jax.ShapeDtypeStruct((B, NUM_CLASSES), jnp.float32),
                   jax.ShapeDtypeStruct((B, EMBED), jnp.float32)),
        grid=(B // bblk,),
        in_specs=[pl.BlockSpec((bblk * N_PATCHES, PATCH_DIM), lambda b: (b, 0)),
                  _wspec(base), _wspec(bias)] + [_wspec(w) for w in weights],
        out_specs=(pl.BlockSpec((bblk, NUM_CLASSES), lambda b: (b, 0)),
                   pl.BlockSpec((bblk, EMBED), lambda b: (b, 0))),
        compiler_params=pltpu.CompilerParams(dimension_semantics=("parallel",)),
    )(patches, base, bias, *weights)


# ------------------------------ parameters ----------------------------------

def init_params(key):
    keys = iter(jax.random.split(key, 64))
    f32 = jnp.float32

    def nrm(shape, scale=0.02):
        return (scale * jax.random.normal(next(keys), shape)).astype(f32)

    blocks = []
    for _ in range(DEPTH):
        blocks.append(dict(
            ln1_g=jnp.ones((EMBED,), f32), ln1_b=jnp.zeros((EMBED,), f32),
            qkv_w=nrm((EMBED, 3 * EMBED)), qkv_b=jnp.zeros((3 * EMBED,), f32),
            proj_w=nrm((EMBED, EMBED)),    proj_b=jnp.zeros((EMBED,), f32),
            ln2_g=jnp.ones((EMBED,), f32), ln2_b=jnp.zeros((EMBED,), f32),
            fc1_w=nrm((EMBED, MLP_HIDDEN)), fc1_b=jnp.zeros((MLP_HIDDEN,), f32),
            fc2_w=nrm((MLP_HIDDEN, EMBED)), fc2_b=jnp.zeros((EMBED,), f32),
        ))

    return dict(
        patch_w=nrm((PATCH_DIM, EMBED)), patch_b=jnp.zeros((EMBED,), f32),
        cls_token=nrm((1, 1, EMBED)),
        pos_embed=nrm((1, N_TOKENS, EMBED)),
        blocks=blocks,
        ln_f_g=jnp.ones((EMBED,), f32), ln_f_b=jnp.zeros((EMBED,), f32),
        # s-branch
        bn_n_g=jnp.ones((S_DIM,), f32), bn_n_b=jnp.zeros((S_DIM,), f32),
        bn_n_mean=nrm((S_DIM,), 0.1), bn_n_var=jnp.ones((S_DIM,), f32) + 0.05,
        lin1_w=nrm((S_DIM, HID)), lin1_b=jnp.zeros((HID,), f32),
        bn1_g=jnp.ones((HID,), f32), bn1_b=jnp.zeros((HID,), f32),
        bn1_mean=nrm((HID,), 0.1), bn1_var=jnp.ones((HID,), f32) + 0.05,
        lin2_w=nrm((HID, HID)), lin2_b=jnp.zeros((HID,), f32),
        # classifier over concat(vit_features, s)
        cls_w=nrm((EMBED + HID, NUM_CLASSES)), cls_b=jnp.zeros((NUM_CLASSES,), f32),
    )


def prepare_inference_params(params, bn_eps=BN_EPS):
    """One-time prep: stack/pre-split per-block weights, fold eval-mode BN, cast
    matmul operands to bf16 (f32 accumulation stays inside the kernel)."""
    bf16 = jnp.bfloat16
    blocks = params["blocks"]
    hd = HEAD_DIM

    # Additive token base: row 0 = cls + pos[0]; rows 1.. = pos[1:] + patch_b
    pos = params["pos_embed"].reshape(N_TOKENS, EMBED)
    cls = params["cls_token"].reshape(1, EMBED)
    tokbase = jnp.concatenate(
        [pos[0:1, :] + cls, pos[1:, :] + params["patch_b"][None, :]], axis=0)

    lnf = jnp.stack([params["ln_f_g"], params["ln_f_b"]], axis=0)          # (2, E)

    vecE = jnp.stack([
        jnp.stack([b["ln1_g"], b["ln1_b"], b["proj_b"],
                   b["ln2_g"], b["ln2_b"], b["fc2_b"]], axis=0)
        for b in blocks], axis=0)                                          # (D, 6, E)

    # Per-head pre-split of QKV / proj weights so the kernel never lane-slices live
    # values.  Row order in the packed dim: q heads, then k heads, then v heads.
    qkv_w = jnp.stack([
        jnp.stack([b["qkv_w"][:, c * EMBED + h * hd: c * EMBED + (h + 1) * hd]
                   for c in range(3) for h in range(HEADS)], axis=0)
        for b in blocks], axis=0).astype(bf16)                             # (D,3H,E,hd)
    qkv_b = jnp.stack([
        jnp.stack([b["qkv_b"][c * EMBED + h * hd: c * EMBED + (h + 1) * hd]
                   for c in range(3) for h in range(HEADS)], axis=0)
        for b in blocks], axis=0)                                          # (D,3H,hd)
    proj_w = jnp.stack([
        jnp.stack([b["proj_w"][h * hd:(h + 1) * hd, :] for h in range(HEADS)], axis=0)
        for b in blocks], axis=0).astype(bf16)                             # (D,H,hd,E)

    fc1_w = jnp.stack([b["fc1_w"] for b in blocks]).astype(bf16)           # (D,E,4E)
    fc1_b = jnp.stack([b["fc1_b"] for b in blocks]).reshape(DEPTH, 1, MLP_HIDDEN)
    fc2_w = jnp.stack([b["fc2_w"] for b in blocks]).astype(bf16)           # (D,4E,E)

    # Fold eval-mode BatchNorm1d (running stats) into the adjacent Linear layers.
    # batch1d_n precedes linear1; batch1d is applied after leaky_relu, before linear2.
    scale_n = params["bn_n_g"] * jax.lax.rsqrt(params["bn_n_var"] + bn_eps)
    shift_n = params["bn_n_b"] - params["bn_n_mean"] * scale_n
    w1f = (scale_n[:, None] * params["lin1_w"]).astype(bf16)
    b1f = params["lin1_b"] + shift_n @ params["lin1_w"]

    scale_1 = params["bn1_g"] * jax.lax.rsqrt(params["bn1_var"] + bn_eps)
    shift_1 = params["bn1_b"] - params["bn1_mean"] * scale_1
    w2f = (scale_1[:, None] * params["lin2_w"]).astype(bf16)
    b2f = params["lin2_b"] + shift_1 @ params["lin2_w"]

    return dict(
        tokbase=tokbase,
        patch_w=params["patch_w"].astype(bf16),
        lnf=lnf, vecE=vecE, qkv_w=qkv_w, qkv_b=qkv_b, proj_w=proj_w,
        fc1_w=fc1_w, fc1_b=fc1_b, fc2_w=fc2_w,
        w1f=w1f, w2f=w2f,
        hbias=jnp.stack([b1f, b2f], axis=0),                               # (2, HID)
        cls_w=params["cls_w"].astype(bf16),                                # (E+HID, NC)
        cls_b=params["cls_b"].reshape(1, NUM_CLASSES),
    )


# ------------------------------ forward pass --------------------------------

def forward(fp, x, s=None, return_features=False):
    B = x.shape[0]
    patches = _extract_patches(x.astype(jnp.float32))
    # batch block: fill MXU rows / sublanes; small batches are a single grid step.
    bblk = B if B <= 8 else max(d for d in (8, 4, 2, 1) if B % d == 0)
    if s is not None and s.size > 0:
        s_flat = s.reshape(B, -1).astype(jnp.float32)                      # nn.Flatten
        logits, feats, s_out = _call_with_s(fp, patches, s_flat, bblk)
    else:
        logits, feats = _call_no_s(fp, patches, bblk, B)
        s_out = jnp.zeros((B, HID), jnp.float32)
    if return_features:
        return jnp.concatenate([feats, s_out], axis=1)                     # (B, E+512)
    return logits                                                          # (B, NC)


# --------------------------------- main --------------------------------------
if __name__ == "__main__":
    key = jax.random.PRNGKey(0)
    kp, kx, ks = jax.random.split(key, 3)
    params = init_params(kp)
    fparams = prepare_inference_params(params)

    x = jax.random.normal(kx, (2, IN_CH, IMG, IMG), dtype=jnp.float32)   # NCHW image
    s = jax.random.normal(ks, (2, 1, IMG, IMG), dtype=jnp.float32)       # flattens to (2, 256)

    fwd = jax.jit(forward)
    out = fwd(fparams, x, s)
    out = jax.block_until_ready(out)
    assert out.shape == (2, NUM_CLASSES) and out.dtype == jnp.float32
    print("KERNEL_OK")
</pallas_src>

<mosaic_0001>
module attributes {stable_mosaic.version = 11 : i64} {
  func.func @_with_s_kernel(%arg0: i32, %arg1: memref<8x192xf32, #tpu.memory_space<vmem>>, %arg2: memref<2x256xf32, #tpu.memory_space<vmem>>, %arg3: memref<10x32xf32, #tpu.memory_space<vmem>>, %arg4: memref<10x10xf32, #tpu.memory_space<vmem>>, %arg5: memref<192x32xbf16, #tpu.memory_space<vmem>>, %arg6: memref<2x32xf32, #tpu.memory_space<vmem>>, %arg7: memref<2x6x32xf32, #tpu.memory_space<vmem>>, %arg8: memref<2x12x32x8xbf16, #tpu.memory_space<vmem>>, %arg9: memref<2x12x8xf32, #tpu.memory_space<vmem>>, %arg10: memref<2x4x8x32xbf16, #tpu.memory_space<vmem>>, %arg11: memref<2x32x128xbf16, #tpu.memory_space<vmem>>, %arg12: memref<2x1x128xf32, #tpu.memory_space<vmem>>, %arg13: memref<2x128x32xbf16, #tpu.memory_space<vmem>>, %arg14: memref<256x512xbf16, #tpu.memory_space<vmem>>, %arg15: memref<512x512xbf16, #tpu.memory_space<vmem>>, %arg16: memref<2x512xf32, #tpu.memory_space<vmem>>, %arg17: memref<544x4xbf16, #tpu.memory_space<vmem>>, %arg18: memref<1x4xf32, #tpu.memory_space<vmem>>, %arg19: memref<2x4xf32, #tpu.memory_space<vmem>>, %arg20: memref<2x32xf32, #tpu.memory_space<vmem>>, %arg21: memref<2x512xf32, #tpu.memory_space<vmem>>) attributes {dimension_semantics = [#tpu.dimension_semantics<parallel>], iteration_bounds = array<i64: 1>, scalar_prefetch = 0 : i64, scratch_operands = 0 : i64, tpu.core_type = #tpu.core_type<tc>, window_params = [{transform_indices = @transform_0, window_bounds = array<i64: 8, 192>}, {transform_indices = @transform_1, window_bounds = array<i64: 2, 256>}, {pipeline_mode = #tpu.pipeline_mode<synchronous>, transform_indices = @transform_2, window_bounds = array<i64: 10, 32>}, {pipeline_mode = #tpu.pipeline_mode<synchronous>, transform_indices = @transform_3, window_bounds = array<i64: 10, 10>}, {pipeline_mode = #tpu.pipeline_mode<synchronous>, transform_indices = @transform_4, window_bounds = array<i64: 192, 32>}, {pipeline_mode = #tpu.pipeline_mode<synchronous>, transform_indices = @transform_5, window_bounds = array<i64: 2, 32>}, {pipeline_mode = #tpu.pipeline_mode<synchronous>, transform_indices = @transform_6, window_bounds = array<i64: 2, 6, 32>}, {pipeline_mode = #tpu.pipeline_mode<synchronous>, transform_indices = @transform_7, window_bounds = array<i64: 2, 12, 32, 8>}, {pipeline_mode = #tpu.pipeline_mode<synchronous>, transform_indices = @transform_8, window_bounds = array<i64: 2, 12, 8>}, {pipeline_mode = #tpu.pipeline_mode<synchronous>, transform_indices = @transform_9, window_bounds = array<i64: 2, 4, 8, 32>}, {pipeline_mode = #tpu.pipeline_mode<synchronous>, transform_indices = @transform_10, window_bounds = array<i64: 2, 32, 128>}, {pipeline_mode = #tpu.pipeline_mode<synchronous>, transform_indices = @transform_11, window_bounds = array<i64: 2, 1, 128>}, {pipeline_mode = #tpu.pipeline_mode<synchronous>, transform_indices = @transform_12, window_bounds = array<i64: 2, 128, 32>}, {pipeline_mode = #tpu.pipeline_mode<synchronous>, transform_indices = @transform_13, window_bounds = array<i64: 256, 512>}, {pipeline_mode = #tpu.pipeline_mode<synchronous>, transform_indices = @transform_14, window_bounds = array<i64: 512, 512>}, {pipeline_mode = #tpu.pipeline_mode<synchronous>, transform_indices = @transform_15, window_bounds = array<i64: 2, 512>}, {pipeline_mode = #tpu.pipeline_mode<synchronous>, transform_indices = @transform_16, window_bounds = array<i64: 544, 4>}, {pipeline_mode = #tpu.pipeline_mode<synchronous>, transform_indices = @transform_17, window_bounds = array<i64: 1, 4>}, {transform_indices = @transform_18, window_bounds = array<i64: 2, 4>}, {transform_indices = @transform_19, window_bounds = array<i64: 2, 32>}, {transform_indices = @transform_20, window_bounds = array<i64: 2, 512>}]} {
    %c0 = arith.constant 0 : index
    %c0_0 = arith.constant 0 : index
    %0 = vector.load %arg1[%c0, %c0_0] : memref<8x192xf32, #tpu.memory_space<vmem>>, vector<8x192xf32>
    %1 = arith.truncf %0 : vector<8x192xf32> to vector<8x192xbf16>
    %c0_1 = arith.constant 0 : index
    %c0_2 = arith.constant 0 : index
    %2 = vector.load %arg5[%c0_1, %c0_2] : memref<192x32xbf16, #tpu.memory_space<vmem>>, vector<192x32xbf16>
    %cst = arith.constant dense<0.000000e+00> : vector<8x32xf32>
    %3 = tpu.matmul %1, %2, %cst {dimension_numbers = #tpu.dot_dimension_numbers<[1], [0], [0], [1], [0, 0, 1, 1], [], []>} : vector<8x192xbf16>, vector<192x32xbf16>, vector<8x32xf32> -> vector<8x32xf32>
    %cst_3 = arith.constant 0.000000e+00 : f32
    %4 = vector.broadcast %cst_3 : f32 to vector<2x32xf32>
    %5 = tpu.concatenate %4, %3 in 0 : vector<2x32xf32>, vector<8x32xf32> -> vector<10x32xf32>
    %c0_4 = arith.constant 0 : index
    %c0_5 = arith.constant 0 : index
    %6 = vector.load %arg3[%c0_4, %c0_5] : memref<10x32xf32, #tpu.memory_space<vmem>>, vector<10x32xf32>
    %7 = arith.addf %5, %6 : vector<10x32xf32>
    %c0_6 = arith.constant 0 : index
    %c0_7 = arith.constant 0 : index
    %8 = vector.load %arg4[%c0_6, %c0_7] : memref<10x10xf32, #tpu.memory_space<vmem>>, vector<10x10xf32>
    %c0_8 = arith.constant 0 : index
    %c0_9 = arith.constant 0 : index
    %c0_10 = arith.constant 0 : index
    %9 = vector.load %arg7[%c0_8, %c0_9, %c0_10] : memref<2x6x32xf32, #tpu.memory_space<vmem>>, vector<1x1x32xf32>
    %10 = vector.shape_cast %9 : vector<1x1x32xf32> to vector<1x32xf32>
    %c0_11 = arith.constant 0 : index
    %c1 = arith.constant 1 : index
    %c0_12 = arith.constant 0 : index
    %11 = vector.load %arg7[%c0_11, %c1, %c0_12] : memref<2x6x32xf32, #tpu.memory_space<vmem>>, vector<1x1x32xf32>
    %12 = vector.shape_cast %11 : vector<1x1x32xf32> to vector<1x32xf32>
    %cst_13 = arith.constant dense<0.000000e+00> : vector<10xf32>
    %13 = vector.multi_reduction <add>, %7, %cst_13 [1] : vector<10x32xf32> to vector<10xf32>
    %14 = vector.shape_cast %13 : vector<10xf32> to vector<10x1xf32>
    %cst_14 = arith.constant 3.200000e+01 : f32
    %15 = vector.broadcast %cst_14 : f32 to vector<10x1xf32>
    %16 = arith.divf %14, %15 : vector<10x1xf32>
    %17 = vector.broadcast %16 : vector<10x1xf32> to vector<10x32xf32>
    %18 = arith.subf %7, %17 : vector<10x32xf32>
    %19 = arith.mulf %18, %18 : vector<10x32xf32>
    %cst_15 = arith.constant dense<0.000000e+00> : vector<10xf32>
    %20 = vector.multi_reduction <add>, %19, %cst_15 [1] : vector<10x32xf32> to vector<10xf32>
    %21 = vector.shape_cast %20 : vector<10xf32> to vector<10x1xf32>
    %cst_16 = arith.constant 3.200000e+01 : f32
    %22 = vector.broadcast %cst_16 : f32 to vector<10x1xf32>
    %23 = arith.divf %21, %22 : vector<10x1xf32>
    %24 = vector.broadcast %16 : vector<10x1xf32> to vector<10x32xf32>
    %25 = arith.subf %7, %24 : vector<10x32xf32>
    %cst_17 = arith.constant 9.99999997E-7 : f32
    %26 = vector.broadcast %cst_17 : f32 to vector<10x1xf32>
    %27 = arith.addf %23, %26 : vector<10x1xf32>
    %28 = math.rsqrt %27 : vector<10x1xf32>
    %29 = vector.broadcast %28 : vector<10x1xf32> to vector<10x32xf32>
    %30 = arith.mulf %25, %29 : vector<10x32xf32>
    %31 = vector.broadcast %10 : vector<1x32xf32> to vector<10x32xf32>
    %32 = arith.mulf %30, %31 : vector<10x32xf32>
    %33 = vector.broadcast %12 : vector<1x32xf32> to vector<10x32xf32>
    %34 = arith.addf %32, %33 : vector<10x32xf32>
    %35 = arith.truncf %34 : vector<10x32xf32> to vector<10x32xbf16>
    %cst_18 = arith.constant 0.000000e+00 : f32
    %36 = vector.broadcast %cst_18 : f32 to vector<10x32xf32>
    %c0_19 = arith.constant 0 : index
    %c0_20 = arith.constant 0 : index
    %c0_21 = arith.constant 0 : index
    %c0_22 = arith.constant 0 : index
    %37 = vector.load %arg8[%c0_19, %c0_20, %c0_21, %c0_22] : memref<2x12x32x8xbf16, #tpu.memory_space<vmem>>, vector<1x1x32x8xbf16>
    %38 = vector.shape_cast %37 : vector<1x1x32x8xbf16> to vector<32x8xbf16>
    %cst_23 = arith.constant dense<0.000000e+00> : vector<10x8xf32>
    %39 = tpu.matmul %35, %38, %cst_23 {dimension_numbers = #tpu.dot_dimension_numbers<[1], [0], [0], [1], [0, 0, 1, 1], [], []>} : vector<10x32xbf16>, vector<32x8xbf16>, vector<10x8xf32> -> vector<10x8xf32>
    %c0_24 = arith.constant 0 : index
    %c0_25 = arith.constant 0 : index
    %c0_26 = arith.constant 0 : index
    %40 = vector.load %arg9[%c0_24, %c0_25, %c0_26] : memref<2x12x8xf32, #tpu.memory_space<vmem>>, vector<1x1x8xf32>
    %41 = vector.shape_cast %40 : vector<1x1x8xf32> to vector<1x8xf32>
    %42 = vector.broadcast %41 : vector<1x8xf32> to vector<10x8xf32>
    %43 = arith.addf %39, %42 : vector<10x8xf32>
    %c0_27 = arith.constant 0 : index
    %c4 = arith.constant 4 : index
    %c0_28 = arith.constant 0 : index
    %c0_29 = arith.constant 0 : index
    %44 = vector.load %arg8[%c0_27, %c4, %c0_28, %c0_29] : memref<2x12x32x8xbf16, #tpu.memory_space<vmem>>, vector<1x1x32x8xbf16>
    %45 = vector.shape_cast %44 : vector<1x1x32x8xbf16> to vector<32x8xbf16>
    %cst_30 = arith.constant dense<0.000000e+00> : vector<10x8xf32>
    %46 = tpu.matmul %35, %45, %cst_30 {dimension_numbers = #tpu.dot_dimension_numbers<[1], [0], [0], [1], [0, 0, 1, 1], [], []>} : vector<10x32xbf16>, vector<32x8xbf16>, vector<10x8xf32> -> vector<10x8xf32>
    %c0_31 = arith.constant 0 : index
    %c4_32 = arith.constant 4 : index
    %c0_33 = arith.constant 0 : index
    %47 = vector.load %arg9[%c0_31, %c4_32, %c0_33] : memref<2x12x8xf32, #tpu.memory_space<vmem>>, vector<1x1x8xf32>
    %48 = vector.shape_cast %47 : vector<1x1x8xf32> to vector<1x8xf32>
    %49 = vector.broadcast %48 : vector<1x8xf32> to vector<10x8xf32>
    %50 = arith.addf %46, %49 : vector<10x8xf32>
    %c0_34 = arith.constant 0 : index
    %c8 = arith.constant 8 : index
    %c0_35 = arith.constant 0 : index
    %c0_36 = arith.constant 0 : index
    %51 = vector.load %arg8[%c0_34, %c8, %c0_35, %c0_36] : memref<2x12x32x8xbf16, #tpu.memory_space<vmem>>, vector<1x1x32x8xbf16>
    %52 = vector.shape_cast %51 : vector<1x1x32x8xbf16> to vector<32x8xbf16>
    %cst_37 = arith.constant dense<0.000000e+00> : vector<10x8xf32>
    %53 = tpu.matmul %35, %52, %cst_37 {dimension_numbers = #tpu.dot_dimension_numbers<[1], [0], [0], [1], [0, 0, 1, 1], [], []>} : vector<10x32xbf16>, vector<32x8xbf16>, vector<10x8xf32> -> vector<10x8xf32>
    %c0_38 = arith.constant 0 : index
    %c8_39 = arith.constant 8 : index
    %c0_40 = arith.constant 0 : index
    %54 = vector.load %arg9[%c0_38, %c8_39, %c0_40] : memref<2x12x8xf32, #tpu.memory_space<vmem>>, vector<1x1x8xf32>
    %55 = vector.shape_cast %54 : vector<1x1x8xf32> to vector<1x8xf32>
    %56 = vector.broadcast %55 : vector<1x8xf32> to vector<10x8xf32>
    %57 = arith.addf %53, %56 : vector<10x8xf32>
    %cst_41 = arith.constant dense<0.000000e+00> : vector<10x10xf32>
    %58 = tpu.matmul %43, %50, %cst_41 {dimension_numbers = #tpu.dot_dimension_numbers<[1], [1], [0], [0], [0, 0, 1, 0], [], []>} : vector<10x8xf32>, vector<10x8xf32>, vector<10x10xf32> -> vector<10x10xf32>
    %cst_42 = arith.constant 0.353553385 : f32
    %59 = vector.broadcast %cst_42 : f32 to vector<10x10xf32>
    %60 = arith.mulf %58, %59 : vector<10x10xf32>
    %61 = arith.addf %60, %8 : vector<10x10xf32>
    %cst_43 = arith.constant dense<0xFF800000> : vector<10xf32>
    %62 = vector.multi_reduction <maximumf>, %61, %cst_43 [1] : vector<10x10xf32> to vector<10xf32>
    %63 = vector.shape_cast %62 : vector<10xf32> to vector<10x1xf32>
    %64 = vector.broadcast %63 : vector<10x1xf32> to vector<10x10xf32>
    %65 = arith.subf %61, %64 : vector<10x10xf32>
    %66 = math.exp %65 : vector<10x10xf32>
    %cst_44 = arith.constant dense<0.000000e+00> : vector<10xf32>
    %67 = vector.multi_reduction <add>, %66, %cst_44 [1] : vector<10x10xf32> to vector<10xf32>
    %68 = vector.shape_cast %67 : vector<10xf32> to vector<10x1xf32>
    %69 = tpu.reciprocal %68 {approx = true} : vector<10x1xf32> -> vector<10x1xf32>
    %70 = vector.broadcast %69 : vector<10x1xf32> to vector<10x10xf32>
    %71 = arith.mulf %66, %70 : vector<10x10xf32>
    %72 = arith.truncf %71 : vector<10x10xf32> to vector<10x10xbf16>
    %73 = arith.truncf %57 : vector<10x8xf32> to vector<10x8xbf16>
    %cst_45 = arith.constant dense<0.000000e+00> : vector<10x8xf32>
    %74 = tpu.matmul %72, %73, %cst_45 {dimension_numbers = #tpu.dot_dimension_numbers<[1], [0], [0], [1], [0, 0, 1, 1], [], []>} : vector<10x10xbf16>, vector<10x8xbf16>, vector<10x8xf32> -> vector<10x8xf32>
    %75 = arith.truncf %74 : vector<10x8xf32> to vector<10x8xbf16>
    %c0_46 = arith.constant 0 : index
    %c0_47 = arith.constant 0 : index
    %c0_48 = arith.constant 0 : index
    %c0_49 = arith.constant 0 : index
    %76 = vector.load %arg10[%c0_46, %c0_47, %c0_48, %c0_49] : memref<2x4x8x32xbf16, #tpu.memory_space<vmem>>, vector<1x1x8x32xbf16>
    %77 = vector.shape_cast %76 : vector<1x1x8x32xbf16> to vector<8x32xbf16>
    %cst_50 = arith.constant dense<0.000000e+00> : vector<10x32xf32>
    %78 = tpu.matmul %75, %77, %cst_50 {dimension_numbers = #tpu.dot_dimension_numbers<[1], [0], [0], [1], [0, 0, 1, 1], [], []>} : vector<10x8xbf16>, vector<8x32xbf16>, vector<10x32xf32> -> vector<10x32xf32>
    %79 = arith.addf %36, %78 : vector<10x32xf32>
    %c0_51 = arith.constant 0 : index
    %c1_52 = arith.constant 1 : index
    %c0_53 = arith.constant 0 : index
    %c0_54 = arith.constant 0 : index
    %80 = vector.load %arg8[%c0_51, %c1_52, %c0_53, %c0_54] : memref<2x12x32x8xbf16, #tpu.memory_space<vmem>>, vector<1x1x32x8xbf16>
    %81 = vector.shape_cast %80 : vector<1x1x32x8xbf16> to vector<32x8xbf16>
    %cst_55 = arith.constant dense<0.000000e+00> : vector<10x8xf32>
    %82 = tpu.matmul %35, %81, %cst_55 {dimension_numbers = #tpu.dot_dimension_numbers<[1], [0], [0], [1], [0, 0, 1, 1], [], []>} : vector<10x32xbf16>, vector<32x8xbf16>, vector<10x8xf32> -> vector<10x8xf32>
    %c0_56 = arith.constant 0 : index
    %c1_57 = arith.constant 1 : index
    %c0_58 = arith.constant 0 : index
    %83 = vector.load %arg9[%c0_56, %c1_57, %c0_58] : memref<2x12x8xf32, #tpu.memory_space<vmem>>, vector<1x1x8xf32>
    %84 = vector.shape_cast %83 : vector<1x1x8xf32> to vector<1x8xf32>
    %85 = vector.broadcast %84 : vector<1x8xf32> to vector<10x8xf32>
    %86 = arith.addf %82, %85 : vector<10x8xf32>
    %c0_59 = arith.constant 0 : index
    %c5 = arith.constant 5 : index
    %c0_60 = arith.constant 0 : index
    %c0_61 = arith.constant 0 : index
    %87 = vector.load %arg8[%c0_59, %c5, %c0_60, %c0_61] : memref<2x12x32x8xbf16, #tpu.memory_space<vmem>>, vector<1x1x32x8xbf16>
    %88 = vector.shape_cast %87 : vector<1x1x32x8xbf16> to vector<32x8xbf16>
    %cst_62 = arith.constant dense<0.000000e+00> : vector<10x8xf32>
    %89 = tpu.matmul %35, %88, %cst_62 {dimension_numbers = #tpu.dot_dimension_numbers<[1], [0], [0], [1], [0, 0, 1, 1], [], []>} : vector<10x32xbf16>, vector<32x8xbf16>, vector<10x8xf32> -> vector<10x8xf32>
    %c0_63 = arith.constant 0 : index
    %c5_64 = arith.constant 5 : index
    %c0_65 = arith.constant 0 : index
    %90 = vector.load %arg9[%c0_63, %c5_64, %c0_65] : memref<2x12x8xf32, #tpu.memory_space<vmem>>, vector<1x1x8xf32>
    %91 = vector.shape_cast %90 : vector<1x1x8xf32> to vector<1x8xf32>
    %92 = vector.broadcast %91 : vector<1x8xf32> to vector<10x8xf32>
    %93 = arith.addf %89, %92 : vector<10x8xf32>
    %c0_66 = arith.constant 0 : index
    %c9 = arith.constant 9 : index
    %c0_67 = arith.constant 0 : index
    %c0_68 = arith.constant 0 : index
    %94 = vector.load %arg8[%c0_66, %c9, %c0_67, %c0_68] : memref<2x12x32x8xbf16, #tpu.memory_space<vmem>>, vector<1x1x32x8xbf16>
    %95 = vector.shape_cast %94 : vector<1x1x32x8xbf16> to vector<32x8xbf16>
    %cst_69 = arith.constant dense<0.000000e+00> : vector<10x8xf32>
    %96 = tpu.matmul %35, %95, %cst_69 {dimension_numbers = #tpu.dot_dimension_numbers<[1], [0], [0], [1], [0, 0, 1, 1], [], []>} : vector<10x32xbf16>, vector<32x8xbf16>, vector<10x8xf32> -> vector<10x8xf32>
    %c0_70 = arith.constant 0 : index
    %c9_71 = arith.constant 9 : index
    %c0_72 = arith.constant 0 : index
    %97 = vector.load %arg9[%c0_70, %c9_71, %c0_72] : memref<2x12x8xf32, #tpu.memory_space<vmem>>, vector<1x1x8xf32>
    %98 = vector.shape_cast %97 : vector<1x1x8xf32> to vector<1x8xf32>
    %99 = vector.broadcast %98 : vector<1x8xf32> to vector<10x8xf32>
    %100 = arith.addf %96, %99 : vector<10x8xf32>
    %cst_73 = arith.constant dense<0.000000e+00> : vector<10x10xf32>
    %101 = tpu.matmul %86, %93, %cst_73 {dimension_numbers = #tpu.dot_dimension_numbers<[1], [1], [0], [0], [0, 0, 1, 0], [], []>} : vector<10x8xf32>, vector<10x8xf32>, vector<10x10xf32> -> vector<10x10xf32>
    %cst_74 = arith.constant 0.353553385 : f32
    %102 = vector.broadcast %cst_74 : f32 to vector<10x10xf32>
    %103 = arith.mulf %101, %102 : vector<10x10xf32>
    %104 = arith.addf %103, %8 : vector<10x10xf32>
    %cst_75 = arith.constant dense<0xFF800000> : vector<10xf32>
    %105 = vector.multi_reduction <maximumf>, %104, %cst_75 [1] : vector<10x10xf32> to vector<10xf32>
    %106 = vector.shape_cast %105 : vector<10xf32> to vector<10x1xf32>
    %107 = vector.broadcast %106 : vector<10x1xf32> to vector<10x10xf32>
    %108 = arith.subf %104, %107 : vector<10x10xf32>
    %109 = math.exp %108 : vector<10x10xf32>
    %cst_76 = arith.constant dense<0.000000e+00> : vector<10xf32>
    %110 = vector.multi_reduction <add>, %109, %cst_76 [1] : vector<10x10xf32> to vector<10xf32>
    %111 = vector.shape_cast %110 : vector<10xf32> to vector<10x1xf32>
    %112 = tpu.reciprocal %111 {approx = true} : vector<10x1xf32> -> vector<10x1xf32>
    %113 = vector.broadcast %112 : vector<10x1xf32> to vector<10x10xf32>
    %114 = arith.mulf %109, %113 : vector<10x10xf32>
    %115 = arith.truncf %114 : vector<10x10xf32> to vector<10x10xbf16>
    %116 = arith.truncf %100 : vector<10x8xf32> to vector<10x8xbf16>
    %cst_77 = arith.constant dense<0.000000e+00> : vector<10x8xf32>
    %117 = tpu.matmul %115, %116, %cst_77 {dimension_numbers = #tpu.dot_dimension_numbers<[1], [0], [0], [1], [0, 0, 1, 1], [], []>} : vector<10x10xbf16>, vector<10x8xbf16>, vector<10x8xf32> -> vector<10x8xf32>
    %118 = arith.truncf %117 : vector<10x8xf32> to vector<10x8xbf16>
    %c0_78 = arith.constant 0 : index
    %c1_79 = arith.constant 1 : index
    %c0_80 = arith.constant 0 : index
    %c0_81 = arith.constant 0 : index
    %119 = vector.load %arg10[%c0_78, %c1_79, %c0_80, %c0_81] : memref<2x4x8x32xbf16, #tpu.memory_space<vmem>>, vector<1x1x8x32xbf16>
    %120 = vector.shape_cast %119 : vector<1x1x8x32xbf16> to vector<8x32xbf16>
    %cst_82 = arith.constant dense<0.000000e+00> : vector<10x32xf32>
    %121 = tpu.matmul %118, %120, %cst_82 {dimension_numbers = #tpu.dot_dimension_numbers<[1], [0], [0], [1], [0, 0, 1, 1], [], []>} : vector<10x8xbf16>, vector<8x32xbf16>, vector<10x32xf32> -> vector<10x32xf32>
    %122 = arith.addf %79, %121 : vector<10x32xf32>
    %c0_83 = arith.constant 0 : index
    %c2 = arith.constant 2 : index
    %c0_84 = arith.constant 0 : index
    %c0_85 = arith.constant 0 : index
    %123 = vector.load %arg8[%c0_83, %c2, %c0_84, %c0_85] : memref<2x12x32x8xbf16, #tpu.memory_space<vmem>>, vector<1x1x32x8xbf16>
    %124 = vector.shape_cast %123 : vector<1x1x32x8xbf16> to vector<32x8xbf16>
    %cst_86 = arith.constant dense<0.000000e+00> : vector<10x8xf32>
    %125 = tpu.matmul %35, %124, %cst_86 {dimension_numbers = #tpu.dot_dimension_numbers<[1], [0], [0], [1], [0, 0, 1, 1], [], []>} : vector<10x32xbf16>, vector<32x8xbf16>, vector<10x8xf32> -> vector<10x8xf32>
    %c0_87 = arith.constant 0 : index
    %c2_88 = arith.constant 2 : index
    %c0_89 = arith.constant 0 : index
    %126 = vector.load %arg9[%c0_87, %c2_88, %c0_89] : memref<2x12x8xf32, #tpu.memory_space<vmem>>, vector<1x1x8xf32>
    %127 = vector.shape_cast %126 : vector<1x1x8xf32> to vector<1x8xf32>
    %128 = vector.broadcast %127 : vector<1x8xf32> to vector<10x8xf32>
    %129 = arith.addf %125, %128 : vector<10x8xf32>
    %c0_90 = arith.constant 0 : index
    %c6 = arith.constant 6 : index
    %c0_91 = arith.constant 0 : index
    %c0_92 = arith.constant 0 : index
    %130 = vector.load %arg8[%c0_90, %c6, %c0_91, %c0_92] : memref<2x12x32x8xbf16, #tpu.memory_space<vmem>>, vector<1x1x32x8xbf16>
    %131 = vector.shape_cast %130 : vector<1x1x32x8xbf16> to vector<32x8xbf16>
    %cst_93 = arith.constant dense<0.000000e+00> : vector<10x8xf32>
    %132 = tpu.matmul %35, %131, %cst_93 {dimension_numbers = #tpu.dot_dimension_numbers<[1], [0], [0], [1], [0, 0, 1, 1], [], []>} : vector<10x32xbf16>, vector<32x8xbf16>, vector<10x8xf32> -> vector<10x8xf32>
    %c0_94 = arith.constant 0 : index
    %c6_95 = arith.constant 6 : index
    %c0_96 = arith.constant 0 : index
    %133 = vector.load %arg9[%c0_94, %c6_95, %c0_96] : memref<2x12x8xf32, #tpu.memory_space<vmem>>, vector<1x1x8xf32>
    %134 = vector.shape_cast %133 : vector<1x1x8xf32> to vector<1x8xf32>
    %135 = vector.broadcast %134 : vector<1x8xf32> to vector<10x8xf32>
    %136 = arith.addf %132, %135 : vector<10x8xf32>
    %c0_97 = arith.constant 0 : index
    %c10 = arith.constant 10 : index
    %c0_98 = arith.constant 0 : index
    %c0_99 = arith.constant 0 : index
    %137 = vector.load %arg8[%c0_97, %c10, %c0_98, %c0_99] : memref<2x12x32x8xbf16, #tpu.memory_space<vmem>>, vector<1x1x32x8xbf16>
    %138 = vector.shape_cast %137 : vector<1x1x32x8xbf16> to vector<32x8xbf16>
    %cst_100 = arith.constant dense<0.000000e+00> : vector<10x8xf32>
    %139 = tpu.matmul %35, %138, %cst_100 {dimension_numbers = #tpu.dot_dimension_numbers<[1], [0], [0], [1], [0, 0, 1, 1], [], []>} : vector<10x32xbf16>, vector<32x8xbf16>, vector<10x8xf32> -> vector<10x8xf32>
    %c0_101 = arith.constant 0 : index
    %c10_102 = arith.constant 10 : index
    %c0_103 = arith.constant 0 : index
    %140 = vector.load %arg9[%c0_101, %c10_102, %c0_103] : memref<2x12x8xf32, #tpu.memory_space<vmem>>, vector<1x1x8xf32>
    %141 = vector.shape_cast %140 : vector<1x1x8xf32> to vector<1x8xf32>
    %142 = vector.broadcast %141 : vector<1x8xf32> to vector<10x8xf32>
    %143 = arith.addf %139, %142 : vector<10x8xf32>
    %cst_104 = arith.constant dense<0.000000e+00> : vector<10x10xf32>
    %144 = tpu.matmul %129, %136, %cst_104 {dimension_numbers = #tpu.dot_dimension_numbers<[1], [1], [0], [0], [0, 0, 1, 0], [], []>} : vector<10x8xf32>, vector<10x8xf32>, vector<10x10xf32> -> vector<10x10xf32>
    %cst_105 = arith.constant 0.353553385 : f32
    %145 = vector.broadcast %cst_105 : f32 to vector<10x10xf32>
    %146 = arith.mulf %144, %145 : vector<10x10xf32>
    %147 = arith.addf %146, %8 : vector<10x10xf32>
    %cst_106 = arith.constant dense<0xFF800000> : vector<10xf32>
    %148 = vector.multi_reduction <maximumf>, %147, %cst_106 [1] : vector<10x10xf32> to vector<10xf32>
    %149 = vector.shape_cast %148 : vector<10xf32> to vector<10x1xf32>
    %150 = vector.broadcast %149 : vector<10x1xf32> to vector<10x10xf32>
    %151 = arith.subf %147, %150 : vector<10x10xf32>
    %152 = math.exp %151 : vector<10x10xf32>
    %cst_107 = arith.constant dense<0.000000e+00> : vector<10xf32>
    %153 = vector.multi_reduction <add>, %152, %cst_107 [1] : vector<10x10xf32> to vector<10xf32>
    %154 = vector.shape_cast %153 : vector<10xf32> to vector<10x1xf32>
    %155 = tpu.reciprocal %154 {approx = true} : vector<10x1xf32> -> vector<10x1xf32>
    %156 = vector.broadcast %155 : vector<10x1xf32> to vector<10x10xf32>
    %157 = arith.mulf %152, %156 : vector<10x10xf32>
    %158 = arith.truncf %157 : vector<10x10xf32> to vector<10x10xbf16>
    %159 = arith.truncf %143 : vector<10x8xf32> to vector<10x8xbf16>
    %cst_108 = arith.constant dense<0.000000e+00> : vector<10x8xf32>
    %160 = tpu.matmul %158, %159, %cst_108 {dimension_numbers = #tpu.dot_dimension_numbers<[1], [0], [0], [1], [0, 0, 1, 1], [], []>} : vector<10x10xbf16>, vector<10x8xbf16>, vector<10x8xf32> -> vector<10x8xf32>
    %161 = arith.truncf %160 : vector<10x8xf32> to vector<10x8xbf16>
    %c0_109 = arith.constant 0 : index
    %c2_110 = arith.constant 2 : index
    %c0_111 = arith.constant 0 : index
    %c0_112 = arith.constant 0 : index
    %162 = vector.load %arg10[%c0_109, %c2_110, %c0_111, %c0_112] : memref<2x4x8x32xbf16, #tpu.memory_space<vmem>>, vector<1x1x8x32xbf16>
    %163 = vector.shape_cast %162 : vector<1x1x8x32xbf16> to vector<8x32xbf16>
    %cst_113 = arith.constant dense<0.000000e+00> : vector<10x32xf32>
    %164 = tpu.matmul %161, %163, %cst_113 {dimension_numbers = #tpu.dot_dimension_numbers<[1], [0], [0], [1], [0, 0, 1, 1], [], []>} : vector<10x8xbf16>, vector<8x32xbf16>, vector<10x32xf32> -> vector<10x32xf32>
    %165 = arith.addf %122, %164 : vector<10x32xf32>
    %c0_114 = arith.constant 0 : index
    %c3 = arith.constant 3 : index
    %c0_115 = arith.constant 0 : index
    %c0_116 = arith.constant 0 : index
    %166 = vector.load %arg8[%c0_114, %c3, %c0_115, %c0_116] : memref<2x12x32x8xbf16, #tpu.memory_space<vmem>>, vector<1x1x32x8xbf16>
    %167 = vector.shape_cast %166 : vector<1x1x32x8xbf16> to vector<32x8xbf16>
    %cst_117 = arith.constant dense<0.000000e+00> : vector<10x8xf32>
    %168 = tpu.matmul %35, %167, %cst_117 {dimension_numbers = #tpu.dot_dimension_numbers<[1], [0], [0], [1], [0, 0, 1, 1], [], []>} : vector<10x32xbf16>, vector<32x8xbf16>, vector<10x8xf32> -> vector<10x8xf32>
    %c0_118 = arith.constant 0 : index
    %c3_119 = arith.constant 3 : index
    %c0_120 = arith.constant 0 : index
    %169 = vector.load %arg9[%c0_118, %c3_119, %c0_120] : memref<2x12x8xf32, #tpu.memory_space<vmem>>, vector<1x1x8xf32>
    %170 = vector.shape_cast %169 : vector<1x1x8xf32> to vector<1x8xf32>
    %171 = vector.broadcast %170 : vector<1x8xf32> to vector<10x8xf32>
    %172 = arith.addf %168, %171 : vector<10x8xf32>
    %c0_121 = arith.constant 0 : index
    %c7 = arith.constant 7 : index
    %c0_122 = arith.constant 0 : index
    %c0_123 = arith.constant 0 : index
    %173 = vector.load %arg8[%c0_121, %c7, %c0_122, %c0_123] : memref<2x12x32x8xbf16, #tpu.memory_space<vmem>>, vector<1x1x32x8xbf16>
    %174 = vector.shape_cast %173 : vector<1x1x32x8xbf16> to vector<32x8xbf16>
    %cst_124 = arith.constant dense<0.000000e+00> : vector<10x8xf32>
    %175 = tpu.matmul %35, %174, %cst_124 {dimension_numbers = #tpu.dot_dimension_numbers<[1], [0], [0], [1], [0, 0, 1, 1], [], []>} : vector<10x32xbf16>, vector<32x8xbf16>, vector<10x8xf32> -> vector<10x8xf32>
    %c0_125 = arith.constant 0 : index
    %c7_126 = arith.constant 7 : index
    %c0_127 = arith.constant 0 : index
    %176 = vector.load %arg9[%c0_125, %c7_126, %c0_127] : memref<2x12x8xf32, #tpu.memory_space<vmem>>, vector<1x1x8xf32>
    %177 = vector.shape_cast %176 : vector<1x1x8xf32> to vector<1x8xf32>
    %178 = vector.broadcast %177 : vector<1x8xf32> to vector<10x8xf32>
    %179 = arith.addf %175, %178 : vector<10x8xf32>
    %c0_128 = arith.constant 0 : index
    %c11 = arith.constant 11 : index
    %c0_129 = arith.constant 0 : index
    %c0_130 = arith.constant 0 : index
    %180 = vector.load %arg8[%c0_128, %c11, %c0_129, %c0_130] : memref<2x12x32x8xbf16, #tpu.memory_space<vmem>>, vector<1x1x32x8xbf16>
    %181 = vector.shape_cast %180 : vector<1x1x32x8xbf16> to vector<32x8xbf16>
    %cst_131 = arith.constant dense<0.000000e+00> : vector<10x8xf32>
    %182 = tpu.matmul %35, %181, %cst_131 {dimension_numbers = #tpu.dot_dimension_numbers<[1], [0], [0], [1], [0, 0, 1, 1], [], []>} : vector<10x32xbf16>, vector<32x8xbf16>, vector<10x8xf32> -> vector<10x8xf32>
    %c0_132 = arith.constant 0 : index
    %c11_133 = arith.constant 11 : index
    %c0_134 = arith.constant 0 : index
    %183 = vector.load %arg9[%c0_132, %c11_133, %c0_134] : memref<2x12x8xf32, #tpu.memory_space<vmem>>, vector<1x1x8xf32>
    %184 = vector.shape_cast %183 : vector<1x1x8xf32> to vector<1x8xf32>
    %185 = vector.broadcast %184 : vector<1x8xf32> to vector<10x8xf32>
    %186 = arith.addf %182, %185 : vector<10x8xf32>
    %cst_135 = arith.constant dense<0.000000e+00> : vector<10x10xf32>
    %187 = tpu.matmul %172, %179, %cst_135 {dimension_numbers = #tpu.dot_dimension_numbers<[1], [1], [0], [0], [0, 0, 1, 0], [], []>} : vector<10x8xf32>, vector<10x8xf32>, vector<10x10xf32> -> vector<10x10xf32>
    %cst_136 = arith.constant 0.353553385 : f32
    %188 = vector.broadcast %cst_136 : f32 to vector<10x10xf32>
    %189 = arith.mulf %187, %188 : vector<10x10xf32>
    %190 = arith.addf %189, %8 : vector<10x10xf32>
    %cst_137 = arith.constant dense<0xFF800000> : vector<10xf32>
    %191 = vector.multi_reduction <maximumf>, %190, %cst_137 [1] : vector<10x10xf32> to vector<10xf32>
    %192 = vector.shape_cast %191 : vector<10xf32> to vector<10x1xf32>
    %193 = vector.broadcast %192 : vector<10x1xf32> to vector<10x10xf32>
    %194 = arith.subf %190, %193 : vector<10x10xf32>
    %195 = math.exp %194 : vector<10x10xf32>
    %cst_138 = arith.constant dense<0.000000e+00> : vector<10xf32>
    %196 = vector.multi_reduction <add>, %195, %cst_138 [1] : vector<10x10xf32> to vector<10xf32>
    %197 = vector.shape_cast %196 : vector<10xf32> to vector<10x1xf32>
    %198 = tpu.reciprocal %197 {approx = true} : vector<10x1xf32> -> vector<10x1xf32>
    %199 = vector.broadcast %198 : vector<10x1xf32> to vector<10x10xf32>
    %200 = arith.mulf %195, %199 : vector<10x10xf32>
    %201 = arith.truncf %200 : vector<10x10xf32> to vector<10x10xbf16>
    %202 = arith.truncf %186 : vector<10x8xf32> to vector<10x8xbf16>
    %cst_139 = arith.constant dense<0.000000e+00> : vector<10x8xf32>
    %203 = tpu.matmul %201, %202, %cst_139 {dimension_numbers = #tpu.dot_dimension_numbers<[1], [0], [0], [1], [0, 0, 1, 1], [], []>} : vector<10x10xbf16>, vector<10x8xbf16>, vector<10x8xf32> -> vector<10x8xf32>
    %204 = arith.truncf %203 : vector<10x8xf32> to vector<10x8xbf16>
    %c0_140 = arith.constant 0 : index
    %c3_141 = arith.constant 3 : index
    %c0_142 = arith.constant 0 : index
    %c0_143 = arith.constant 0 : index
    %205 = vector.load %arg10[%c0_140, %c3_141, %c0_142, %c0_143] : memref<2x4x8x32xbf16, #tpu.memory_space<vmem>>, vector<1x1x8x32xbf16>
    %206 = vector.shape_cast %205 : vector<1x1x8x32xbf16> to vector<8x32xbf16>
    %cst_144 = arith.constant dense<0.000000e+00> : vector<10x32xf32>
    %207 = tpu.matmul %204, %206, %cst_144 {dimension_numbers = #tpu.dot_dimension_numbers<[1], [0], [0], [1], [0, 0, 1, 1], [], []>} : vector<10x8xbf16>, vector<8x32xbf16>, vector<10x32xf32> -> vector<10x32xf32>
    %208 = arith.addf %165, %207 : vector<10x32xf32>
    %209 = arith.addf %7, %208 : vector<10x32xf32>
    %c0_145 = arith.constant 0 : index
    %c2_146 = arith.constant 2 : index
    %c0_147 = arith.constant 0 : index
    %210 = vector.load %arg7[%c0_145, %c2_146, %c0_147] : memref<2x6x32xf32, #tpu.memory_space<vmem>>, vector<1x1x32xf32>
    %211 = vector.shape_cast %210 : vector<1x1x32xf32> to vector<1x32xf32>
    %212 = vector.broadcast %211 : vector<1x32xf32> to vector<10x32xf32>
    %213 = arith.addf %209, %212 : vector<10x32xf32>
    %c0_148 = arith.constant 0 : index
    %c3_149 = arith.constant 3 : index
    %c0_150 = arith.constant 0 : index
    %214 = vector.load %arg7[%c0_148, %c3_149, %c0_150] : memref<2x6x32xf32, #tpu.memory_space<vmem>>, vector<1x1x32xf32>
    %215 = vector.shape_cast %214 : vector<1x1x32xf32> to vector<1x32xf32>
    %c0_151 = arith.constant 0 : index
    %c4_152 = arith.constant 4 : index
    %c0_153 = arith.constant 0 : index
    %216 = vector.load %arg7[%c0_151, %c4_152, %c0_153] : memref<2x6x32xf32, #tpu.memory_space<vmem>>, vector<1x1x32xf32>
    %217 = vector.shape_cast %216 : vector<1x1x32xf32> to vector<1x32xf32>
    %cst_154 = arith.constant dense<0.000000e+00> : vector<10xf32>
    %218 = vector.multi_reduction <add>, %213, %cst_154 [1] : vector<10x32xf32> to vector<10xf32>
    %219 = vector.shape_cast %218 : vector<10xf32> to vector<10x1xf32>
    %cst_155 = arith.constant 3.200000e+01 : f32
    %220 = vector.broadcast %cst_155 : f32 to vector<10x1xf32>
    %221 = arith.divf %219, %220 : vector<10x1xf32>
    %222 = vector.broadcast %221 : vector<10x1xf32> to vector<10x32xf32>
    %223 = arith.subf %213, %222 : vector<10x32xf32>
    %224 = arith.mulf %223, %223 : vector<10x32xf32>
    %cst_156 = arith.constant dense<0.000000e+00> : vector<10xf32>
    %225 = vector.multi_reduction <add>, %224, %cst_156 [1] : vector<10x32xf32> to vector<10xf32>
    %226 = vector.shape_cast %225 : vector<10xf32> to vector<10x1xf32>
    %cst_157 = arith.constant 3.200000e+01 : f32
    %227 = vector.broadcast %cst_157 : f32 to vector<10x1xf32>
    %228 = arith.divf %226, %227 : vector<10x1xf32>
    %229 = vector.broadcast %221 : vector<10x1xf32> to vector<10x32xf32>
    %230 = arith.subf %213, %229 : vector<10x32xf32>
    %cst_158 = arith.constant 9.99999997E-7 : f32
    %231 = vector.broadcast %cst_158 : f32 to vector<10x1xf32>
    %232 = arith.addf %228, %231 : vector<10x1xf32>
    %233 = math.rsqrt %232 : vector<10x1xf32>
    %234 = vector.broadcast %233 : vector<10x1xf32> to vector<10x32xf32>
    %235 = arith.mulf %230, %234 : vector<10x32xf32>
    %236 = vector.broadcast %215 : vector<1x32xf32> to vector<10x32xf32>
    %237 = arith.mulf %235, %236 : vector<10x32xf32>
    %238 = vector.broadcast %217 : vector<1x32xf32> to vector<10x32xf32>
    %239 = arith.addf %237, %238 : vector<10x32xf32>
    %240 = arith.truncf %239 : vector<10x32xf32> to vector<10x32xbf16>
    %c0_159 = arith.constant 0 : index
    %c0_160 = arith.constant 0 : index
    %c0_161 = arith.constant 0 : index
    %241 = vector.load %arg11[%c0_159, %c0_160, %c0_161] : memref<2x32x128xbf16, #tpu.memory_space<vmem>>, vector<1x32x128xbf16>
    %242 = vector.shape_cast %241 : vector<1x32x128xbf16> to vector<32x128xbf16>
    %cst_162 = arith.constant dense<0.000000e+00> : vector<10x128xf32>
    %243 = tpu.matmul %240, %242, %cst_162 {dimension_numbers = #tpu.dot_dimension_numbers<[1], [0], [0], [1], [0, 0, 1, 1], [], []>} : vector<10x32xbf16>, vector<32x128xbf16>, vector<10x128xf32> -> vector<10x128xf32>
    %c0_163 = arith.constant 0 : index
    %c0_164 = arith.constant 0 : index
    %c0_165 = arith.constant 0 : index
    %244 = vector.load %arg12[%c0_163, %c0_164, %c0_165] : memref<2x1x128xf32, #tpu.memory_space<vmem>>, vector<1x1x128xf32>
    %245 = vector.shape_cast %244 : vector<1x1x128xf32> to vector<1x128xf32>
    %246 = vector.broadcast %245 : vector<1x128xf32> to vector<10x128xf32>
    %247 = arith.addf %243, %246 : vector<10x128xf32>
    %cst_166 = arith.constant 5.000000e-01 : f32
    %248 = vector.broadcast %cst_166 : f32 to vector<10x128xf32>
    %249 = arith.mulf %248, %247 : vector<10x128xf32>
    %cst_167 = arith.constant 0.707106769 : f32
    %250 = vector.broadcast %cst_167 : f32 to vector<10x128xf32>
    %251 = arith.mulf %247, %250 : vector<10x128xf32>
    %252 = math.erf %251 : vector<10x128xf32>
    %cst_168 = arith.constant 1.000000e+00 : f32
    %253 = vector.broadcast %cst_168 : f32 to vector<10x128xf32>
    %254 = arith.addf %253, %252 : vector<10x128xf32>
    %255 = arith.mulf %249, %254 : vector<10x128xf32>
    %256 = arith.truncf %255 : vector<10x128xf32> to vector<10x128xbf16>
    %c0_169 = arith.constant 0 : index
    %c0_170 = arith.constant 0 : index
    %c0_171 = arith.constant 0 : index
    %257 = vector.load %arg13[%c0_169, %c0_170, %c0_171] : memref<2x128x32xbf16, #tpu.memory_space<vmem>>, vector<1x128x32xbf16>
    %258 = vector.shape_cast %257 : vector<1x128x32xbf16> to vector<128x32xbf16>
    %cst_172 = arith.constant dense<0.000000e+00> : vector<10x32xf32>
    %259 = tpu.matmul %256, %258, %cst_172 {dimension_numbers = #tpu.dot_dimension_numbers<[1], [0], [0], [1], [0, 0, 1, 1], [], []>} : vector<10x128xbf16>, vector<128x32xbf16>, vector<10x32xf32> -> vector<10x32xf32>
    %260 = arith.addf %213, %259 : vector<10x32xf32>
    %c0_173 = arith.constant 0 : index
    %c5_174 = arith.constant 5 : index
    %c0_175 = arith.constant 0 : index
    %261 = vector.load %arg7[%c0_173, %c5_174, %c0_175] : memref<2x6x32xf32, #tpu.memory_space<vmem>>, vector<1x1x32xf32>
    %262 = vector.shape_cast %261 : vector<1x1x32xf32> to vector<1x32xf32>
    %263 = vector.broadcast %262 : vector<1x32xf32> to vector<10x32xf32>
    %264 = arith.addf %260, %263 : vector<10x32xf32>
    %c1_176 = arith.constant 1 : index
    %c0_177 = arith.constant 0 : index
    %c0_178 = arith.constant 0 : index
    %265 = vector.load %arg7[%c1_176, %c0_177, %c0_178] : memref<2x6x32xf32, #tpu.memory_space<vmem>>, vector<1x1x32xf32>
    %266 = vector.shape_cast %265 : vector<1x1x32xf32> to vector<1x32xf32>
    %c1_179 = arith.constant 1 : index
    %c1_180 = arith.constant 1 : index
    %c0_181 = arith.constant 0 : index
    %267 = vector.load %arg7[%c1_179, %c1_180, %c0_181] : memref<2x6x32xf32, #tpu.memory_space<vmem>>, vector<1x1x32xf32>
    %268 = vector.shape_cast %267 : vector<1x1x32xf32> to vector<1x32xf32>
    %cst_182 = arith.constant dense<0.000000e+00> : vector<10xf32>
    %269 = vector.multi_reduction <add>, %264, %cst_182 [1] : vector<10x32xf32> to vector<10xf32>
    %270 = vector.shape_cast %269 : vector<10xf32> to vector<10x1xf32>
    %cst_183 = arith.constant 3.200000e+01 : f32
    %271 = vector.broadcast %cst_183 : f32 to vector<10x1xf32>
    %272 = arith.divf %270, %271 : vector<10x1xf32>
    %273 = vector.broadcast %272 : vector<10x1xf32> to vector<10x32xf32>
    %274 = arith.subf %264, %273 : vector<10x32xf32>
    %275 = arith.mulf %274, %274 : vector<10x32xf32>
    %cst_184 = arith.constant dense<0.000000e+00> : vector<10xf32>
    %276 = vector.multi_reduction <add>, %275, %cst_184 [1] : vector<10x32xf32> to vector<10xf32>
    %277 = vector.shape_cast %276 : vector<10xf32> to vector<10x1xf32>
    %cst_185 = arith.constant 3.200000e+01 : f32
    %278 = vector.broadcast %cst_185 : f32 to vector<10x1xf32>
    %279 = arith.divf %277, %278 : vector<10x1xf32>
    %280 = vector.broadcast %272 : vector<10x1xf32> to vector<10x32xf32>
    %281 = arith.subf %264, %280 : vector<10x32xf32>
    %cst_186 = arith.constant 9.99999997E-7 : f32
    %282 = vector.broadcast %cst_186 : f32 to vector<10x1xf32>
    %283 = arith.addf %279, %282 : vector<10x1xf32>
    %284 = math.rsqrt %283 : vector<10x1xf32>
    %285 = vector.broadcast %284 : vector<10x1xf32> to vector<10x32xf32>
    %286 = arith.mulf %281, %285 : vector<10x32xf32>
    %287 = vector.broadcast %266 : vector<1x32xf32> to vector<10x32xf32>
    %288 = arith.mulf %286, %287 : vector<10x32xf32>
    %289 = vector.broadcast %268 : vector<1x32xf32> to vector<10x32xf32>
    %290 = arith.addf %288, %289 : vector<10x32xf32>
    %291 = arith.truncf %290 : vector<10x32xf32> to vector<10x32xbf16>
    %cst_187 = arith.constant 0.000000e+00 : f32
    %292 = vector.broadcast %cst_187 : f32 to vector<10x32xf32>
    %c1_188 = arith.constant 1 : index
    %c0_189 = arith.constant 0 : index
    %c0_190 = arith.constant 0 : index
    %c0_191 = arith.constant 0 : index
    %293 = vector.load %arg8[%c1_188, %c0_189, %c0_190, %c0_191] : memref<2x12x32x8xbf16, #tpu.memory_space<vmem>>, vector<1x1x32x8xbf16>
    %294 = vector.shape_cast %293 : vector<1x1x32x8xbf16> to vector<32x8xbf16>
    %cst_192 = arith.constant dense<0.000000e+00> : vector<10x8xf32>
    %295 = tpu.matmul %291, %294, %cst_192 {dimension_numbers = #tpu.dot_dimension_numbers<[1], [0], [0], [1], [0, 0, 1, 1], [], []>} : vector<10x32xbf16>, vector<32x8xbf16>, vector<10x8xf32> -> vector<10x8xf32>
    %c1_193 = arith.constant 1 : index
    %c0_194 = arith.constant 0 : index
    %c0_195 = arith.constant 0 : index
    %296 = vector.load %arg9[%c1_193, %c0_194, %c0_195] : memref<2x12x8xf32, #tpu.memory_space<vmem>>, vector<1x1x8xf32>
    %297 = vector.shape_cast %296 : vector<1x1x8xf32> to vector<1x8xf32>
    %298 = vector.broadcast %297 : vector<1x8xf32> to vector<10x8xf32>
    %299 = arith.addf %295, %298 : vector<10x8xf32>
    %c1_196 = arith.constant 1 : index
    %c4_197 = arith.constant 4 : index
    %c0_198 = arith.constant 0 : index
    %c0_199 = arith.constant 0 : index
    %300 = vector.load %arg8[%c1_196, %c4_197, %c0_198, %c0_199] : memref<2x12x32x8xbf16, #tpu.memory_space<vmem>>, vector<1x1x32x8xbf16>
    %301 = vector.shape_cast %300 : vector<1x1x32x8xbf16> to vector<32x8xbf16>
    %cst_200 = arith.constant dense<0.000000e+00> : vector<10x8xf32>
    %302 = tpu.matmul %291, %301, %cst_200 {dimension_numbers = #tpu.dot_dimension_numbers<[1], [0], [0], [1], [0, 0, 1, 1], [], []>} : vector<10x32xbf16>, vector<32x8xbf16>, vector<10x8xf32> -> vector<10x8xf32>
    %c1_201 = arith.constant 1 : index
    %c4_202 = arith.constant 4 : index
    %c0_203 = arith.constant 0 : index
    %303 = vector.load %arg9[%c1_201, %c4_202, %c0_203] : memref<2x12x8xf32, #tpu.memory_space<vmem>>, vector<1x1x8xf32>
    %304 = vector.shape_cast %303 : vector<1x1x8xf32> to vector<1x8xf32>
    %305 = vector.broadcast %304 : vector<1x8xf32> to vector<10x8xf32>
    %306 = arith.addf %302, %305 : vector<10x8xf32>
    %c1_204 = arith.constant 1 : index
    %c8_205 = arith.constant 8 : index
    %c0_206 = arith.constant 0 : index
    %c0_207 = arith.constant 0 : index
    %307 = vector.load %arg8[%c1_204, %c8_205, %c0_206, %c0_207] : memref<2x12x32x8xbf16, #tpu.memory_space<vmem>>, vector<1x1x32x8xbf16>
    %308 = vector.shape_cast %307 : vector<1x1x32x8xbf16> to vector<32x8xbf16>
    %cst_208 = arith.constant dense<0.000000e+00> : vector<10x8xf32>
    %309 = tpu.matmul %291, %308, %cst_208 {dimension_numbers = #tpu.dot_dimension_numbers<[1], [0], [0], [1], [0, 0, 1, 1], [], []>} : vector<10x32xbf16>, vector<32x8xbf16>, vector<10x8xf32> -> vector<10x8xf32>
    %c1_209 = arith.constant 1 : index
    %c8_210 = arith.constant 8 : index
    %c0_211 = arith.constant 0 : index
    %310 = vector.load %arg9[%c1_209, %c8_210, %c0_211] : memref<2x12x8xf32, #tpu.memory_space<vmem>>, vector<1x1x8xf32>
    %311 = vector.shape_cast %310 : vector<1x1x8xf32> to vector<1x8xf32>
    %312 = vector.broadcast %311 : vector<1x8xf32> to vector<10x8xf32>
    %313 = arith.addf %309, %312 : vector<10x8xf32>
    %cst_212 = arith.constant dense<0.000000e+00> : vector<10x10xf32>
    %314 = tpu.matmul %299, %306, %cst_212 {dimension_numbers = #tpu.dot_dimension_numbers<[1], [1], [0], [0], [0, 0, 1, 0], [], []>} : vector<10x8xf32>, vector<10x8xf32>, vector<10x10xf32> -> vector<10x10xf32>
    %cst_213 = arith.constant 0.353553385 : f32
    %315 = vector.broadcast %cst_213 : f32 to vector<10x10xf32>
    %316 = arith.mulf %314, %315 : vector<10x10xf32>
    %317 = arith.addf %316, %8 : vector<10x10xf32>
    %cst_214 = arith.constant dense<0xFF800000> : vector<10xf32>
    %318 = vector.multi_reduction <maximumf>, %317, %cst_214 [1] : vector<10x10xf32> to vector<10xf32>
    %319 = vector.shape_cast %318 : vector<10xf32> to vector<10x1xf32>
    %320 = vector.broadcast %319 : vector<10x1xf32> to vector<10x10xf32>
    %321 = arith.subf %317, %320 : vector<10x10xf32>
    %322 = math.exp %321 : vector<10x10xf32>
    %cst_215 = arith.constant dense<0.000000e+00> : vector<10xf32>
    %323 = vector.multi_reduction <add>, %322, %cst_215 [1] : vector<10x10xf32> to vector<10xf32>
    %324 = vector.shape_cast %323 : vector<10xf32> to vector<10x1xf32>
    %325 = tpu.reciprocal %324 {approx = true} : vector<10x1xf32> -> vector<10x1xf32>
    %326 = vector.broadcast %325 : vector<10x1xf32> to vector<10x10xf32>
    %327 = arith.mulf %322, %326 : vector<10x10xf32>
    %328 = arith.truncf %327 : vector<10x10xf32> to vector<10x10xbf16>
    %329 = arith.truncf %313 : vector<10x8xf32> to vector<10x8xbf16>
    %cst_216 = arith.constant dense<0.000000e+00> : vector<10x8xf32>
    %330 = tpu.matmul %328, %329, %cst_216 {dimension_numbers = #tpu.dot_dimension_numbers<[1], [0], [0], [1], [0, 0, 1, 1], [], []>} : vector<10x10xbf16>, vector<10x8xbf16>, vector<10x8xf32> -> vector<10x8xf32>
    %331 = arith.truncf %330 : vector<10x8xf32> to vector<10x8xbf16>
    %c1_217 = arith.constant 1 : index
    %c0_218 = arith.constant 0 : index
    %c0_219 = arith.constant 0 : index
    %c0_220 = arith.constant 0 : index
    %332 = vector.load %arg10[%c1_217, %c0_218, %c0_219, %c0_220] : memref<2x4x8x32xbf16, #tpu.memory_space<vmem>>, vector<1x1x8x32xbf16>
    %333 = vector.shape_cast %332 : vector<1x1x8x32xbf16> to vector<8x32xbf16>
    %cst_221 = arith.constant dense<0.000000e+00> : vector<10x32xf32>
    %334 = tpu.matmul %331, %333, %cst_221 {dimension_numbers = #tpu.dot_dimension_numbers<[1], [0], [0], [1], [0, 0, 1, 1], [], []>} : vector<10x8xbf16>, vector<8x32xbf16>, vector<10x32xf32> -> vector<10x32xf32>
    %335 = arith.addf %292, %334 : vector<10x32xf32>
    %c1_222 = arith.constant 1 : index
    %c1_223 = arith.constant 1 : index
    %c0_224 = arith.constant 0 : index
    %c0_225 = arith.constant 0 : index
    %336 = vector.load %arg8[%c1_222, %c1_223, %c0_224, %c0_225] : memref<2x12x32x8xbf16, #tpu.memory_space<vmem>>, vector<1x1x32x8xbf16>
    %337 = vector.shape_cast %336 : vector<1x1x32x8xbf16> to vector<32x8xbf16>
    %cst_226 = arith.constant dense<0.000000e+00> : vector<10x8xf32>
    %338 = tpu.matmul %291, %337, %cst_226 {dimension_numbers = #tpu.dot_dimension_numbers<[1], [0], [0], [1], [0, 0, 1, 1], [], []>} : vector<10x32xbf16>, vector<32x8xbf16>, vector<10x8xf32> -> vector<10x8xf32>
    %c1_227 = arith.constant 1 : index
    %c1_228 = arith.constant 1 : index
    %c0_229 = arith.constant 0 : index
    %339 = vector.load %arg9[%c1_227, %c1_228, %c0_229] : memref<2x12x8xf32, #tpu.memory_space<vmem>>, vector<1x1x8xf32>
    %340 = vector.shape_cast %339 : vector<1x1x8xf32> to vector<1x8xf32>
    %341 = vector.broadcast %340 : vector<1x8xf32> to vector<10x8xf32>
    %342 = arith.addf %338, %341 : vector<10x8xf32>
    %c1_230 = arith.constant 1 : index
    %c5_231 = arith.constant 5 : index
    %c0_232 = arith.constant 0 : index
    %c0_233 = arith.constant 0 : index
    %343 = vector.load %arg8[%c1_230, %c5_231, %c0_232, %c0_233] : memref<2x12x32x8xbf16, #tpu.memory_space<vmem>>, vector<1x1x32x8xbf16>
    %344 = vector.shape_cast %343 : vector<1x1x32x8xbf16> to vector<32x8xbf16>
    %cst_234 = arith.constant dense<0.000000e+00> : vector<10x8xf32>
    %345 = tpu.matmul %291, %344, %cst_234 {dimension_numbers = #tpu.dot_dimension_numbers<[1], [0], [0], [1], [0, 0, 1, 1], [], []>} : vector<10x32xbf16>, vector<32x8xbf16>, vector<10x8xf32> -> vector<10x8xf32>
    %c1_235 = arith.constant 1 : index
    %c5_236 = arith.constant 5 : index
    %c0_237 = arith.constant 0 : index
    %346 = vector.load %arg9[%c1_235, %c5_236, %c0_237] : memref<2x12x8xf32, #tpu.memory_space<vmem>>, vector<1x1x8xf32>
    %347 = vector.shape_cast %346 : vector<1x1x8xf32> to vector<1x8xf32>
    %348 = vector.broadcast %347 : vector<1x8xf32> to vector<10x8xf32>
    %349 = arith.addf %345, %348 : vector<10x8xf32>
    %c1_238 = arith.constant 1 : index
    %c9_239 = arith.constant 9 : index
    %c0_240 = arith.constant 0 : index
    %c0_241 = arith.constant 0 : index
    %350 = vector.load %arg8[%c1_238, %c9_239, %c0_240, %c0_241] : memref<2x12x32x8xbf16, #tpu.memory_space<vmem>>, vector<1x1x32x8xbf16>
    %351 = vector.shape_cast %350 : vector<1x1x32x8xbf16> to vector<32x8xbf16>
    %cst_242 = arith.constant dense<0.000000e+00> : vector<10x8xf32>
    %352 = tpu.matmul %291, %351, %cst_242 {dimension_numbers = #tpu.dot_dimension_numbers<[1], [0], [0], [1], [0, 0, 1, 1], [], []>} : vector<10x32xbf16>, vector<32x8xbf16>, vector<10x8xf32> -> vector<10x8xf32>
    %c1_243 = arith.constant 1 : index
    %c9_244 = arith.constant 9 : index
    %c0_245 = arith.constant 0 : index
    %353 = vector.load %arg9[%c1_243, %c9_244, %c0_245] : memref<2x12x8xf32, #tpu.memory_space<vmem>>, vector<1x1x8xf32>
    %354 = vector.shape_cast %353 : vector<1x1x8xf32> to vector<1x8xf32>
    %355 = vector.broadcast %354 : vector<1x8xf32> to vector<10x8xf32>
    %356 = arith.addf %352, %355 : vector<10x8xf32>
    %cst_246 = arith.constant dense<0.000000e+00> : vector<10x10xf32>
    %357 = tpu.matmul %342, %349, %cst_246 {dimension_numbers = #tpu.dot_dimension_numbers<[1], [1], [0], [0], [0, 0, 1, 0], [], []>} : vector<10x8xf32>, vector<10x8xf32>, vector<10x10xf32> -> vector<10x10xf32>
    %cst_247 = arith.constant 0.353553385 : f32
    %358 = vector.broadcast %cst_247 : f32 to vector<10x10xf32>
    %359 = arith.mulf %357, %358 : vector<10x10xf32>
    %360 = arith.addf %359, %8 : vector<10x10xf32>
    %cst_248 = arith.constant dense<0xFF800000> : vector<10xf32>
    %361 = vector.multi_reduction <maximumf>, %360, %cst_248 [1] : vector<10x10xf32> to vector<10xf32>
    %362 = vector.shape_cast %361 : vector<10xf32> to vector<10x1xf32>
    %363 = vector.broadcast %362 : vector<10x1xf32> to vector<10x10xf32>
    %364 = arith.subf %360, %363 : vector<10x10xf32>
    %365 = math.exp %364 : vector<10x10xf32>
    %cst_249 = arith.constant dense<0.000000e+00> : vector<10xf32>
    %366 = vector.multi_reduction <add>, %365, %cst_249 [1] : vector<10x10xf32> to vector<10xf32>
    %367 = vector.shape_cast %366 : vector<10xf32> to vector<10x1xf32>
    %368 = tpu.reciprocal %367 {approx = true} : vector<10x1xf32> -> vector<10x1xf32>
    %369 = vector.broadcast %368 : vector<10x1xf32> to vector<10x10xf32>
    %370 = arith.mulf %365, %369 : vector<10x10xf32>
    %371 = arith.truncf %370 : vector<10x10xf32> to vector<10x10xbf16>
    %372 = arith.truncf %356 : vector<10x8xf32> to vector<10x8xbf16>
    %cst_250 = arith.constant dense<0.000000e+00> : vector<10x8xf32>
    %373 = tpu.matmul %371, %372, %cst_250 {dimension_numbers = #tpu.dot_dimension_numbers<[1], [0], [0], [1], [0, 0, 1, 1], [], []>} : vector<10x10xbf16>, vector<10x8xbf16>, vector<10x8xf32> -> vector<10x8xf32>
    %374 = arith.truncf %373 : vector<10x8xf32> to vector<10x8xbf16>
    %c1_251 = arith.constant 1 : index
    %c1_252 = arith.constant 1 : index
    %c0_253 = arith.constant 0 : index
    %c0_254 = arith.constant 0 : index
    %375 = vector.load %arg10[%c1_251, %c1_252, %c0_253, %c0_254] : memref<2x4x8x32xbf16, #tpu.memory_space<vmem>>, vector<1x1x8x32xbf16>
    %376 = vector.shape_cast %375 : vector<1x1x8x32xbf16> to vector<8x32xbf16>
    %cst_255 = arith.constant dense<0.000000e+00> : vector<10x32xf32>
    %377 = tpu.matmul %374, %376, %cst_255 {dimension_numbers = #tpu.dot_dimension_numbers<[1], [0], [0], [1], [0, 0, 1, 1], [], []>} : vector<10x8xbf16>, vector<8x32xbf16>, vector<10x32xf32> -> vector<10x32xf32>
    %378 = arith.addf %335, %377 : vector<10x32xf32>
    %c1_256 = arith.constant 1 : index
    %c2_257 = arith.constant 2 : index
    %c0_258 = arith.constant 0 : index
    %c0_259 = arith.constant 0 : index
    %379 = vector.load %arg8[%c1_256, %c2_257, %c0_258, %c0_259] : memref<2x12x32x8xbf16, #tpu.memory_space<vmem>>, vector<1x1x32x8xbf16>
    %380 = vector.shape_cast %379 : vector<1x1x32x8xbf16> to vector<32x8xbf16>
    %cst_260 = arith.constant dense<0.000000e+00> : vector<10x8xf32>
    %381 = tpu.matmul %291, %380, %cst_260 {dimension_numbers = #tpu.dot_dimension_numbers<[1], [0], [0], [1], [0, 0, 1, 1], [], []>} : vector<10x32xbf16>, vector<32x8xbf16>, vector<10x8xf32> -> vector<10x8xf32>
    %c1_261 = arith.constant 1 : index
    %c2_262 = arith.constant 2 : index
    %c0_263 = arith.constant 0 : index
    %382 = vector.load %arg9[%c1_261, %c2_262, %c0_263] : memref<2x12x8xf32, #tpu.memory_space<vmem>>, vector<1x1x8xf32>
    %383 = vector.shape_cast %382 : vector<1x1x8xf32> to vector<1x8xf32>
    %384 = vector.broadcast %383 : vector<1x8xf32> to vector<10x8xf32>
    %385 = arith.addf %381, %384 : vector<10x8xf32>
    %c1_264 = arith.constant 1 : index
    %c6_265 = arith.constant 6 : index
    %c0_266 = arith.constant 0 : index
    %c0_267 = arith.constant 0 : index
    %386 = vector.load %arg8[%c1_264, %c6_265, %c0_266, %c0_267] : memref<2x12x32x8xbf16, #tpu.memory_space<vmem>>, vector<1x1x32x8xbf16>
    %387 = vector.shape_cast %386 : vector<1x1x32x8xbf16> to vector<32x8xbf16>
    %cst_268 = arith.constant dense<0.000000e+00> : vector<10x8xf32>
    %388 = tpu.matmul %291, %387, %cst_268 {dimension_numbers = #tpu.dot_dimension_numbers<[1], [0], [0], [1], [0, 0, 1, 1], [], []>} : vector<10x32xbf16>, vector<32x8xbf16>, vector<10x8xf32> -> vector<10x8xf32>
    %c1_269 = arith.constant 1 : index
    %c6_270 = arith.constant 6 : index
    %c0_271 = arith.constant 0 : index
    %389 = vector.load %arg9[%c1_269, %c6_270, %c0_271] : memref<2x12x8xf32, #tpu.memory_space<vmem>>, vector<1x1x8xf32>
    %390 = vector.shape_cast %389 : vector<1x1x8xf32> to vector<1x8xf32>
    %391 = vector.broadcast %390 : vector<1x8xf32> to vector<10x8xf32>
    %392 = arith.addf %388, %391 : vector<10x8xf32>
    %c1_272 = arith.constant 1 : index
    %c10_273 = arith.constant 10 : index
    %c0_274 = arith.constant 0 : index
    %c0_275 = arith.constant 0 : index
    %393 = vector.load %arg8[%c1_272, %c10_273, %c0_274, %c0_275] : memref<2x12x32x8xbf16, #tpu.memory_space<vmem>>, vector<1x1x32x8xbf16>
    %394 = vector.shape_cast %393 : vector<1x1x32x8xbf16> to vector<32x8xbf16>
    %cst_276 = arith.constant dense<0.000000e+00> : vector<10x8xf32>
    %395 = tpu.matmul %291, %394, %cst_276 {dimension_numbers = #tpu.dot_dimension_numbers<[1], [0], [0], [1], [0, 0, 1, 1], [], []>} : vector<10x32xbf16>, vector<32x8xbf16>, vector<10x8xf32> -> vector<10x8xf32>
    %c1_277 = arith.constant 1 : index
    %c10_278 = arith.constant 10 : index
    %c0_279 = arith.constant 0 : index
    %396 = vector.load %arg9[%c1_277, %c10_278, %c0_279] : memref<2x12x8xf32, #tpu.memory_space<vmem>>, vector<1x1x8xf32>
    %397 = vector.shape_cast %396 : vector<1x1x8xf32> to vector<1x8xf32>
    %398 = vector.broadcast %397 : vector<1x8xf32> to vector<10x8xf32>
    %399 = arith.addf %395, %398 : vector<10x8xf32>
    %cst_280 = arith.constant dense<0.000000e+00> : vector<10x10xf32>
    %400 = tpu.matmul %385, %392, %cst_280 {dimension_numbers = #tpu.dot_dimension_numbers<[1], [1], [0], [0], [0, 0, 1, 0], [], []>} : vector<10x8xf32>, vector<10x8xf32>, vector<10x10xf32> -> vector<10x10xf32>
    %cst_281 = arith.constant 0.353553385 : f32
    %401 = vector.broadcast %cst_281 : f32 to vector<10x10xf32>
    %402 = arith.mulf %400, %401 : vector<10x10xf32>
    %403 = arith.addf %402, %8 : vector<10x10xf32>
    %cst_282 = arith.constant dense<0xFF800000> : vector<10xf32>
    %404 = vector.multi_reduction <maximumf>, %403, %cst_282 [1] : vector<10x10xf32> to vector<10xf32>
    %405 = vector.shape_cast %404 : vector<10xf32> to vector<10x1xf32>
    %406 = vector.broadcast %405 : vector<10x1xf32> to vector<10x10xf32>
    %407 = arith.subf %403, %406 : vector<10x10xf32>
    %408 = math.exp %407 : vector<10x10xf32>
    %cst_283 = arith.constant dense<0.000000e+00> : vector<10xf32>
    %409 = vector.multi_reduction <add>, %408, %cst_283 [1] : vector<10x10xf32> to vector<10xf32>
    %410 = vector.shape_cast %409 : vector<10xf32> to vector<10x1xf32>
    %411 = tpu.reciprocal %410 {approx = true} : vector<10x1xf32> -> vector<10x1xf32>
    %412 = vector.broadcast %411 : vector<10x1xf32> to vector<10x10xf32>
    %413 = arith.mulf %408, %412 : vector<10x10xf32>
    %414 = arith.truncf %413 : vector<10x10xf32> to vector<10x10xbf16>
    %415 = arith.truncf %399 : vector<10x8xf32> to vector<10x8xbf16>
    %cst_284 = arith.constant dense<0.000000e+00> : vector<10x8xf32>
    %416 = tpu.matmul %414, %415, %cst_284 {dimension_numbers = #tpu.dot_dimension_numbers<[1], [0], [0], [1], [0, 0, 1, 1], [], []>} : vector<10x10xbf16>, vector<10x8xbf16>, vector<10x8xf32> -> vector<10x8xf32>
    %417 = arith.truncf %416 : vector<10x8xf32> to vector<10x8xbf16>
    %c1_285 = arith.constant 1 : index
    %c2_286 = arith.constant 2 : index
    %c0_287 = arith.constant 0 : index
    %c0_288 = arith.constant 0 : index
    %418 = vector.load %arg10[%c1_285, %c2_286, %c0_287, %c0_288] : memref<2x4x8x32xbf16, #tpu.memory_space<vmem>>, vector<1x1x8x32xbf16>
    %419 = vector.shape_cast %418 : vector<1x1x8x32xbf16> to vector<8x32xbf16>
    %cst_289 = arith.constant dense<0.000000e+00> : vector<10x32xf32>
    %420 = tpu.matmul %417, %419, %cst_289 {dimension_numbers = #tpu.dot_dimension_numbers<[1], [0], [0], [1], [0, 0, 1, 1], [], []>} : vector<10x8xbf16>, vector<8x32xbf16>, vector<10x32xf32> -> vector<10x32xf32>
    %421 = arith.addf %378, %420 : vector<10x32xf32>
    %c1_290 = arith.constant 1 : index
    %c3_291 = arith.constant 3 : index
    %c0_292 = arith.constant 0 : index
    %c0_293 = arith.constant 0 : index
    %422 = vector.load %arg8[%c1_290, %c3_291, %c0_292, %c0_293] : memref<2x12x32x8xbf16, #tpu.memory_space<vmem>>, vector<1x1x32x8xbf16>
    %423 = vector.shape_cast %422 : vector<1x1x32x8xbf16> to vector<32x8xbf16>
    %cst_294 = arith.constant dense<0.000000e+00> : vector<10x8xf32>
    %424 = tpu.matmul %291, %423, %cst_294 {dimension_numbers = #tpu.dot_dimension_numbers<[1], [0], [0], [1], [0, 0, 1, 1], [], []>} : vector<10x32xbf16>, vector<32x8xbf16>, vector<10x8xf32> -> vector<10x8xf32>
    %c1_295 = arith.constant 1 : index
    %c3_296 = arith.constant 3 : index
    %c0_297 = arith.constant 0 : index
    %425 = vector.load %arg9[%c1_295, %c3_296, %c0_297] : memref<2x12x8xf32, #tpu.memory_space<vmem>>, vector<1x1x8xf32>
    %426 = vector.shape_cast %425 : vector<1x1x8xf32> to vector<1x8xf32>
    %427 = vector.broadcast %426 : vector<1x8xf32> to vector<10x8xf32>
    %428 = arith.addf %424, %427 : vector<10x8xf32>
    %c1_298 = arith.constant 1 : index
    %c7_299 = arith.constant 7 : index
    %c0_300 = arith.constant 0 : index
    %c0_301 = arith.constant 0 : index
    %429 = vector.load %arg8[%c1_298, %c7_299, %c0_300, %c0_301] : memref<2x12x32x8xbf16, #tpu.memory_space<vmem>>, vector<1x1x32x8xbf16>
    %430 = vector.shape_cast %429 : vector<1x1x32x8xbf16> to vector<32x8xbf16>
    %cst_302 = arith.constant dense<0.000000e+00> : vector<10x8xf32>
    %431 = tpu.matmul %291, %430, %cst_302 {dimension_numbers = #tpu.dot_dimension_numbers<[1], [0], [0], [1], [0, 0, 1, 1], [], []>} : vector<10x32xbf16>, vector<32x8xbf16>, vector<10x8xf32> -> vector<10x8xf32>
    %c1_303 = arith.constant 1 : index
    %c7_304 = arith.constant 7 : index
    %c0_305 = arith.constant 0 : index
    %432 = vector.load %arg9[%c1_303, %c7_304, %c0_305] : memref<2x12x8xf32, #tpu.memory_space<vmem>>, vector<1x1x8xf32>
    %433 = vector.shape_cast %432 : vector<1x1x8xf32> to vector<1x8xf32>
    %434 = vector.broadcast %433 : vector<1x8xf32> to vector<10x8xf32>
    %435 = arith.addf %431, %434 : vector<10x8xf32>
    %c1_306 = arith.constant 1 : index
    %c11_307 = arith.constant 11 : index
    %c0_308 = arith.constant 0 : index
    %c0_309 = arith.constant 0 : index
    %436 = vector.load %arg8[%c1_306, %c11_307, %c0_308, %c0_309] : memref<2x12x32x8xbf16, #tpu.memory_space<vmem>>, vector<1x1x32x8xbf16>
    %437 = vector.shape_cast %436 : vector<1x1x32x8xbf16> to vector<32x8xbf16>
    %cst_310 = arith.constant dense<0.000000e+00> : vector<10x8xf32>
    %438 = tpu.matmul %291, %437, %cst_310 {dimension_numbers = #tpu.dot_dimension_numbers<[1], [0], [0], [1], [0, 0, 1, 1], [], []>} : vector<10x32xbf16>, vector<32x8xbf16>, vector<10x8xf32> -> vector<10x8xf32>
    %c1_311 = arith.constant 1 : index
    %c11_312 = arith.constant 11 : index
    %c0_313 = arith.constant 0 : index
    %439 = vector.load %arg9[%c1_311, %c11_312, %c0_313] : memref<2x12x8xf32, #tpu.memory_space<vmem>>, vector<1x1x8xf32>
    %440 = vector.shape_cast %439 : vector<1x1x8xf32> to vector<1x8xf32>
    %441 = vector.broadcast %440 : vector<1x8xf32> to vector<10x8xf32>
    %442 = arith.addf %438, %441 : vector<10x8xf32>
    %cst_314 = arith.constant dense<0.000000e+00> : vector<10x10xf32>
    %443 = tpu.matmul %428, %435, %cst_314 {dimension_numbers = #tpu.dot_dimension_numbers<[1], [1], [0], [0], [0, 0, 1, 0], [], []>} : vector<10x8xf32>, vector<10x8xf32>, vector<10x10xf32> -> vector<10x10xf32>
    %cst_315 = arith.constant 0.353553385 : f32
    %444 = vector.broadcast %cst_315 : f32 to vector<10x10xf32>
    %445 = arith.mulf %443, %444 : vector<10x10xf32>
    %446 = arith.addf %445, %8 : vector<10x10xf32>
    %cst_316 = arith.constant dense<0xFF800000> : vector<10xf32>
    %447 = vector.multi_reduction <maximumf>, %446, %cst_316 [1] : vector<10x10xf32> to vector<10xf32>
    %448 = vector.shape_cast %447 : vector<10xf32> to vector<10x1xf32>
    %449 = vector.broadcast %448 : vector<10x1xf32> to vector<10x10xf32>
    %450 = arith.subf %446, %449 : vector<10x10xf32>
    %451 = math.exp %450 : vector<10x10xf32>
    %cst_317 = arith.constant dense<0.000000e+00> : vector<10xf32>
    %452 = vector.multi_reduction <add>, %451, %cst_317 [1] : vector<10x10xf32> to vector<10xf32>
    %453 = vector.shape_cast %452 : vector<10xf32> to vector<10x1xf32>
    %454 = tpu.reciprocal %453 {approx = true} : vector<10x1xf32> -> vector<10x1xf32>
    %455 = vector.broadcast %454 : vector<10x1xf32> to vector<10x10xf32>
    %456 = arith.mulf %451, %455 : vector<10x10xf32>
    %457 = arith.truncf %456 : vector<10x10xf32> to vector<10x10xbf16>
    %458 = arith.truncf %442 : vector<10x8xf32> to vector<10x8xbf16>
    %cst_318 = arith.constant dense<0.000000e+00> : vector<10x8xf32>
    %459 = tpu.matmul %457, %458, %cst_318 {dimension_numbers = #tpu.dot_dimension_numbers<[1], [0], [0], [1], [0, 0, 1, 1], [], []>} : vector<10x10xbf16>, vector<10x8xbf16>, vector<10x8xf32> -> vector<10x8xf32>
    %460 = arith.truncf %459 : vector<10x8xf32> to vector<10x8xbf16>
    %c1_319 = arith.constant 1 : index
    %c3_320 = arith.constant 3 : index
    %c0_321 = arith.constant 0 : index
    %c0_322 = arith.constant 0 : index
    %461 = vector.load %arg10[%c1_319, %c3_320, %c0_321, %c0_322] : memref<2x4x8x32xbf16, #tpu.memory_space<vmem>>, vector<1x1x8x32xbf16>
    %462 = vector.shape_cast %461 : vector<1x1x8x32xbf16> to vector<8x32xbf16>
    %cst_323 = arith.constant dense<0.000000e+00> : vector<10x32xf32>
    %463 = tpu.matmul %460, %462, %cst_323 {dimension_numbers = #tpu.dot_dimension_numbers<[1], [0], [0], [1], [0, 0, 1, 1], [], []>} : vector<10x8xbf16>, vector<8x32xbf16>, vector<10x32xf32> -> vector<10x32xf32>
    %464 = arith.addf %421, %463 : vector<10x32xf32>
    %465 = arith.addf %264, %464 : vector<10x32xf32>
    %c1_324 = arith.constant 1 : index
    %c2_325 = arith.constant 2 : index
    %c0_326 = arith.constant 0 : index
    %466 = vector.load %arg7[%c1_324, %c2_325, %c0_326] : memref<2x6x32xf32, #tpu.memory_space<vmem>>, vector<1x1x32xf32>
    %467 = vector.shape_cast %466 : vector<1x1x32xf32> to vector<1x32xf32>
    %468 = vector.broadcast %467 : vector<1x32xf32> to vector<10x32xf32>
    %469 = arith.addf %465, %468 : vector<10x32xf32>
    %c1_327 = arith.constant 1 : index
    %c3_328 = arith.constant 3 : index
    %c0_329 = arith.constant 0 : index
    %470 = vector.load %arg7[%c1_327, %c3_328, %c0_329] : memref<2x6x32xf32, #tpu.memory_space<vmem>>, vector<1x1x32xf32>
    %471 = vector.shape_cast %470 : vector<1x1x32xf32> to vector<1x32xf32>
    %c1_330 = arith.constant 1 : index
    %c4_331 = arith.constant 4 : index
    %c0_332 = arith.constant 0 : index
    %472 = vector.load %arg7[%c1_330, %c4_331, %c0_332] : memref<2x6x32xf32, #tpu.memory_space<vmem>>, vector<1x1x32xf32>
    %473 = vector.shape_cast %472 : vector<1x1x32xf32> to vector<1x32xf32>
    %cst_333 = arith.constant dense<0.000000e+00> : vector<10xf32>
    %474 = vector.multi_reduction <add>, %469, %cst_333 [1] : vector<10x32xf32> to vector<10xf32>
    %475 = vector.shape_cast %474 : vector<10xf32> to vector<10x1xf32>
    %cst_334 = arith.constant 3.200000e+01 : f32
    %476 = vector.broadcast %cst_334 : f32 to vector<10x1xf32>
    %477 = arith.divf %475, %476 : vector<10x1xf32>
    %478 = vector.broadcast %477 : vector<10x1xf32> to vector<10x32xf32>
    %479 = arith.subf %469, %478 : vector<10x32xf32>
    %480 = arith.mulf %479, %479 : vector<10x32xf32>
    %cst_335 = arith.constant dense<0.000000e+00> : vector<10xf32>
    %481 = vector.multi_reduction <add>, %480, %cst_335 [1] : vector<10x32xf32> to vector<10xf32>
    %482 = vector.shape_cast %481 : vector<10xf32> to vector<10x1xf32>
    %cst_336 = arith.constant 3.200000e+01 : f32
    %483 = vector.broadcast %cst_336 : f32 to vector<10x1xf32>
    %484 = arith.divf %482, %483 : vector<10x1xf32>
    %485 = vector.broadcast %477 : vector<10x1xf32> to vector<10x32xf32>
    %486 = arith.subf %469, %485 : vector<10x32xf32>
    %cst_337 = arith.constant 9.99999997E-7 : f32
    %487 = vector.broadcast %cst_337 : f32 to vector<10x1xf32>
    %488 = arith.addf %484, %487 : vector<10x1xf32>
    %489 = math.rsqrt %488 : vector<10x1xf32>
    %490 = vector.broadcast %489 : vector<10x1xf32> to vector<10x32xf32>
    %491 = arith.mulf %486, %490 : vector<10x32xf32>
    %492 = vector.broadcast %471 : vector<1x32xf32> to vector<10x32xf32>
    %493 = arith.mulf %491, %492 : vector<10x32xf32>
    %494 = vector.broadcast %473 : vector<1x32xf32> to vector<10x32xf32>
    %495 = arith.addf %493, %494 : vector<10x32xf32>
    %496 = arith.truncf %495 : vector<10x32xf32> to vector<10x32xbf16>
    %c1_338 = arith.constant 1 : index
    %c0_339 = arith.constant 0 : index
    %c0_340 = arith.constant 0 : index
    %497 = vector.load %arg11[%c1_338, %c0_339, %c0_340] : memref<2x32x128xbf16, #tpu.memory_space<vmem>>, vector<1x32x128xbf16>
    %498 = vector.shape_cast %497 : vector<1x32x128xbf16> to vector<32x128xbf16>
    %cst_341 = arith.constant dense<0.000000e+00> : vector<10x128xf32>
    %499 = tpu.matmul %496, %498, %cst_341 {dimension_numbers = #tpu.dot_dimension_numbers<[1], [0], [0], [1], [0, 0, 1, 1], [], []>} : vector<10x32xbf16>, vector<32x128xbf16>, vector<10x128xf32> -> vector<10x128xf32>
    %c1_342 = arith.constant 1 : index
    %c0_343 = arith.constant 0 : index
    %c0_344 = arith.constant 0 : index
    %500 = vector.load %arg12[%c1_342, %c0_343, %c0_344] : memref<2x1x128xf32, #tpu.memory_space<vmem>>, vector<1x1x128xf32>
    %501 = vector.shape_cast %500 : vector<1x1x128xf32> to vector<1x128xf32>
    %502 = vector.broadcast %501 : vector<1x128xf32> to vector<10x128xf32>
    %503 = arith.addf %499, %502 : vector<10x128xf32>
    %cst_345 = arith.constant 5.000000e-01 : f32
    %504 = vector.broadcast %cst_345 : f32 to vector<10x128xf32>
    %505 = arith.mulf %504, %503 : vector<10x128xf32>
    %cst_346 = arith.constant 0.707106769 : f32
    %506 = vector.broadcast %cst_346 : f32 to vector<10x128xf32>
    %507 = arith.mulf %503, %506 : vector<10x128xf32>
    %508 = math.erf %507 : vector<10x128xf32>
    %cst_347 = arith.constant 1.000000e+00 : f32
    %509 = vector.broadcast %cst_347 : f32 to vector<10x128xf32>
    %510 = arith.addf %509, %508 : vector<10x128xf32>
    %511 = arith.mulf %505, %510 : vector<10x128xf32>
    %512 = arith.truncf %511 : vector<10x128xf32> to vector<10x128xbf16>
    %c1_348 = arith.constant 1 : index
    %c0_349 = arith.constant 0 : index
    %c0_350 = arith.constant 0 : index
    %513 = vector.load %arg13[%c1_348, %c0_349, %c0_350] : memref<2x128x32xbf16, #tpu.memory_space<vmem>>, vector<1x128x32xbf16>
    %514 = vector.shape_cast %513 : vector<1x128x32xbf16> to vector<128x32xbf16>
    %cst_351 = arith.constant dense<0.000000e+00> : vector<10x32xf32>
    %515 = tpu.matmul %512, %514, %cst_351 {dimension_numbers = #tpu.dot_dimension_numbers<[1], [0], [0], [1], [0, 0, 1, 1], [], []>} : vector<10x128xbf16>, vector<128x32xbf16>, vector<10x32xf32> -> vector<10x32xf32>
    %516 = arith.addf %469, %515 : vector<10x32xf32>
    %c1_352 = arith.constant 1 : index
    %c5_353 = arith.constant 5 : index
    %c0_354 = arith.constant 0 : index
    %517 = vector.load %arg7[%c1_352, %c5_353, %c0_354] : memref<2x6x32xf32, #tpu.memory_space<vmem>>, vector<1x1x32xf32>
    %518 = vector.shape_cast %517 : vector<1x1x32xf32> to vector<1x32xf32>
    %519 = vector.broadcast %518 : vector<1x32xf32> to vector<10x32xf32>
    %520 = arith.addf %516, %519 : vector<10x32xf32>
    %c0_355 = arith.constant 0 : index
    %c0_356 = arith.constant 0 : index
    %521 = vector.load %arg6[%c0_355, %c0_356] : memref<2x32xf32, #tpu.memory_space<vmem>>, vector<1x32xf32>
    %c1_357 = arith.constant 1 : index
    %c0_358 = arith.constant 0 : index
    %522 = vector.load %arg6[%c1_357, %c0_358] : memref<2x32xf32, #tpu.memory_space<vmem>>, vector<1x32xf32>
    %cst_359 = arith.constant dense<0.000000e+00> : vector<10xf32>
    %523 = vector.multi_reduction <add>, %520, %cst_359 [1] : vector<10x32xf32> to vector<10xf32>
    %524 = vector.shape_cast %523 : vector<10xf32> to vector<10x1xf32>
    %cst_360 = arith.constant 3.200000e+01 : f32
    %525 = vector.broadcast %cst_360 : f32 to vector<10x1xf32>
    %526 = arith.divf %524, %525 : vector<10x1xf32>
    %527 = vector.broadcast %526 : vector<10x1xf32> to vector<10x32xf32>
    %528 = arith.subf %520, %527 : vector<10x32xf32>
    %529 = arith.mulf %528, %528 : vector<10x32xf32>
    %cst_361 = arith.constant dense<0.000000e+00> : vector<10xf32>
    %530 = vector.multi_reduction <add>, %529, %cst_361 [1] : vector<10x32xf32> to vector<10xf32>
    %531 = vector.shape_cast %530 : vector<10xf32> to vector<10x1xf32>
    %cst_362 = arith.constant 3.200000e+01 : f32
    %532 = vector.broadcast %cst_362 : f32 to vector<10x1xf32>
    %533 = arith.divf %531, %532 : vector<10x1xf32>
    %534 = vector.broadcast %526 : vector<10x1xf32> to vector<10x32xf32>
    %535 = arith.subf %520, %534 : vector<10x32xf32>
    %cst_363 = arith.constant 9.99999997E-7 : f32
    %536 = vector.broadcast %cst_363 : f32 to vector<10x1xf32>
    %537 = arith.addf %533, %536 : vector<10x1xf32>
    %538 = math.rsqrt %537 : vector<10x1xf32>
    %539 = vector.broadcast %538 : vector<10x1xf32> to vector<10x32xf32>
    %540 = arith.mulf %535, %539 : vector<10x32xf32>
    %541 = vector.broadcast %521 : vector<1x32xf32> to vector<10x32xf32>
    %542 = arith.mulf %540, %541 : vector<10x32xf32>
    %543 = vector.broadcast %522 : vector<1x32xf32> to vector<10x32xf32>
    %544 = arith.addf %542, %543 : vector<10x32xf32>
    %545 = vector.extract_strided_slice %544 {offsets = [0, 0], sizes = [2, 32], strides = [1, 1]} : vector<10x32xf32> to vector<2x32xf32>
    %c0_364 = arith.constant 0 : index
    %c0_365 = arith.constant 0 : index
    %546 = vector.load %arg20[%c0_364, %c0_365] : memref<2x32xf32, #tpu.memory_space<vmem>>, vector<2x32xf32>
    tpu.vector_store %arg20[%c0_364, %c0_365], %545 {strides = array<i32>} : memref<2x32xf32, #tpu.memory_space<vmem>>, vector<2x32xf32>,
    %c0_366 = arith.constant 0 : index
    %c0_367 = arith.constant 0 : index
    %547 = vector.load %arg2[%c0_366, %c0_367] : memref<2x256xf32, #tpu.memory_space<vmem>>, vector<2x256xf32>
    %548 = arith.truncf %547 : vector<2x256xf32> to vector<2x256xbf16>
    %c0_368 = arith.constant 0 : index
    %c0_369 = arith.constant 0 : index
    %549 = vector.load %arg14[%c0_368, %c0_369] : memref<256x512xbf16, #tpu.memory_space<vmem>>, vector<256x512xbf16>
    %cst_370 = arith.constant dense<0.000000e+00> : vector<2x512xf32>
    %550 = tpu.matmul %548, %549, %cst_370 {dimension_numbers = #tpu.dot_dimension_numbers<[1], [0], [0], [1], [0, 0, 1, 1], [], []>} : vector<2x256xbf16>, vector<256x512xbf16>, vector<2x512xf32> -> vector<2x512xf32>
    %c0_371 = arith.constant 0 : index
    %c0_372 = arith.constant 0 : index
    %551 = vector.load %arg16[%c0_371, %c0_372] : memref<2x512xf32, #tpu.memory_space<vmem>>, vector<1x512xf32>
    %552 = vector.broadcast %551 : vector<1x512xf32> to vector<2x512xf32>
    %553 = arith.addf %550, %552 : vector<2x512xf32>
    %cst_373 = arith.constant 0.000000e+00 : f32
    %554 = vector.broadcast %cst_373 : f32 to vector<2x512xf32>
    %555 = arith.cmpf oge, %553, %554 : vector<2x512xf32>
    %cst_374 = arith.constant 0.00999999977 : f32
    %556 = vector.broadcast %cst_374 : f32 to vector<2x512xf32>
    %557 = arith.mulf %556, %553 : vector<2x512xf32>
    %558 = arith.select %555, %553, %557 : vector<2x512xi1>, vector<2x512xf32>
    %559 = arith.truncf %558 : vector<2x512xf32> to vector<2x512xbf16>
    %c0_375 = arith.constant 0 : index
    %c0_376 = arith.constant 0 : index
    %560 = vector.load %arg15[%c0_375, %c0_376] : memref<512x512xbf16, #tpu.memory_space<vmem>>, vector<512x512xbf16>
    %cst_377 = arith.constant dense<0.000000e+00> : vector<2x512xf32>
    %561 = tpu.matmul %559, %560, %cst_377 {dimension_numbers = #tpu.dot_dimension_numbers<[1], [0], [0], [1], [0, 0, 1, 1], [], []>} : vector<2x512xbf16>, vector<512x512xbf16>, vector<2x512xf32> -> vector<2x512xf32>
    %c1_378 = arith.constant 1 : index
    %c0_379 = arith.constant 0 : index
    %562 = vector.load %arg16[%c1_378, %c0_379] : memref<2x512xf32, #tpu.memory_space<vmem>>, vector<1x512xf32>
    %563 = vector.broadcast %562 : vector<1x512xf32> to vector<2x512xf32>
    %564 = arith.addf %561, %563 : vector<2x512xf32>
    %cst_380 = arith.constant 0.000000e+00 : f32
    %565 = vector.broadcast %cst_380 : f32 to vector<2x512xf32>
    %566 = arith.cmpf oge, %564, %565 : vector<2x512xf32>
    %cst_381 = arith.constant 0.00999999977 : f32
    %567 = vector.broadcast %cst_381 : f32 to vector<2x512xf32>
    %568 = arith.mulf %567, %564 : vector<2x512xf32>
    %569 = arith.select %566, %564, %568 : vector<2x512xi1>, vector<2x512xf32>
    %c0_382 = arith.constant 0 : index
    %c0_383 = arith.constant 0 : index
    %570 = vector.load %arg21[%c0_382, %c0_383] : memref<2x512xf32, #tpu.memory_space<vmem>>, vector<2x512xf32>
    tpu.vector_store %arg21[%c0_382, %c0_383], %569 {strides = array<i32>} : memref<2x512xf32, #tpu.memory_space<vmem>>, vector<2x512xf32>,
    %571 = arith.truncf %545 : vector<2x32xf32> to vector<2x32xbf16>
    %c0_384 = arith.constant 0 : index
    %c0_385 = arith.constant 0 : index
    %572 = vector.load %arg17[%c0_384, %c0_385] : memref<544x4xbf16, #tpu.memory_space<vmem>>, vector<32x4xbf16>
    %cst_386 = arith.constant dense<0.000000e+00> : vector<2x4xf32>
    %573 = tpu.matmul %571, %572, %cst_386 {dimension_numbers = #tpu.dot_dimension_numbers<[1], [0], [0], [1], [0, 0, 1, 1], [], []>} : vector<2x32xbf16>, vector<32x4xbf16>, vector<2x4xf32> -> vector<2x4xf32>
    %574 = arith.truncf %569 : vector<2x512xf32> to vector<2x512xbf16>
    %c32 = arith.constant 32 : index
    %c0_387 = arith.constant 0 : index
    %575 = vector.load %arg17[%c32, %c0_387] : memref<544x4xbf16, #tpu.memory_space<vmem>>, vector<512x4xbf16>
    %cst_388 = arith.constant dense<0.000000e+00> : vector<2x4xf32>
    %576 = tpu.matmul %574, %575, %cst_388 {dimension_numbers = #tpu.dot_dimension_numbers<[1], [0], [0], [1], [0, 0, 1, 1], [], []>} : vector<2x512xbf16>, vector<512x4xbf16>, vector<2x4xf32> -> vector<2x4xf32>
    %577 = arith.addf %573, %576 : vector<2x4xf32>
    %c0_389 = arith.constant 0 : index
    %c0_390 = arith.constant 0 : index
    %578 = vector.load %arg18[%c0_389, %c0_390] : memref<1x4xf32, #tpu.memory_space<vmem>>, vector<1x4xf32>
    %579 = vector.broadcast %578 : vector<1x4xf32> to vector<2x4xf32>
    %580 = arith.addf %577, %579 : vector<2x4xf32>
    %c0_391 = arith.constant 0 : index
    %c0_392 = arith.constant 0 : index
    %581 = vector.load %arg19[%c0_391, %c0_392] : memref<2x4xf32, #tpu.memory_space<vmem>>, vector<2x4xf32>
    tpu.vector_store %arg19[%c0_391, %c0_392], %580 {strides = array<i32>} : memref<2x4xf32, #tpu.memory_space<vmem>>, vector<2x4xf32>,
    return
  }
  func.func @transform_0(%arg0: i32) -> (i32, i32) {
    %c0_i32 = arith.constant 0 : i32
    %c0_i32_0 = arith.constant 0 : i32
    return %arg0, %c0_i32 : i32, i32
  }
  func.func @transform_1(%arg0: i32) -> (i32, i32) {
    %c0_i32 = arith.constant 0 : i32
    %c0_i32_0 = arith.constant 0 : i32
    return %arg0, %c0_i32 : i32, i32
  }
  func.func @transform_2(%arg0: i32) -> (i32, i32) {
    %c0_i32 = arith.constant 0 : i32
    %c0_i32_0 = arith.constant 0 : i32
    %c0_i32_1 = arith.constant 0 : i32
    return %c0_i32, %c0_i32_0 : i32, i32
  }
  func.func @transform_3(%arg0: i32) -> (i32, i32) {
    %c0_i32 = arith.constant 0 : i32
    %c0_i32_0 = arith.constant 0 : i32
    %c0_i32_1 = arith.constant 0 : i32
    return %c0_i32, %c0_i32_0 : i32, i32
  }
  func.func @transform_4(%arg0: i32) -> (i32, i32) {
    %c0_i32 = arith.constant 0 : i32
    %c0_i32_0 = arith.constant 0 : i32
    %c0_i32_1 = arith.constant 0 : i32
    return %c0_i32, %c0_i32_0 : i32, i32
  }
  func.func @transform_5(%arg0: i32) -> (i32, i32) {
    %c0_i32 = arith.constant 0 : i32
    %c0_i32_0 = arith.constant 0 : i32
    %c0_i32_1 = arith.constant 0 : i32
    return %c0_i32, %c0_i32_0 : i32, i32
  }
  func.func @transform_6(%arg0: i32) -> (i32, i32, i32) {
    %c0_i32 = arith.constant 0 : i32
    %c0_i32_0 = arith.constant 0 : i32
    %c0_i32_1 = arith.constant 0 : i32
    %c0_i32_2 = arith.constant 0 : i32
    return %c0_i32, %c0_i32_0, %c0_i32_1 : i32, i32, i32
  }
  func.func @transform_7(%arg0: i32) -> (i32, i32, i32, i32) {
    %c0_i32 = arith.constant 0 : i32
    %c0_i32_0 = arith.constant 0 : i32
    %c0_i32_1 = arith.constant 0 : i32
    %c0_i32_2 = arith.constant 0 : i32
    %c0_i32_3 = arith.constant 0 : i32
    return %c0_i32, %c0_i32_0, %c0_i32_1, %c0_i32_2 : i32, i32, i32, i32
  }
  func.func @transform_8(%arg0: i32) -> (i32, i32, i32) {
    %c0_i32 = arith.constant 0 : i32
    %c0_i32_0 = arith.constant 0 : i32
    %c0_i32_1 = arith.constant 0 : i32
    %c0_i32_2 = arith.constant 0 : i32
    return %c0_i32, %c0_i32_0, %c0_i32_1 : i32, i32, i32
  }
  func.func @transform_9(%arg0: i32) -> (i32, i32, i32, i32) {
    %c0_i32 = arith.constant 0 : i32
    %c0_i32_0 = arith.constant 0 : i32
    %c0_i32_1 = arith.constant 0 : i32
    %c0_i32_2 = arith.constant 0 : i32
    %c0_i32_3 = arith.constant 0 : i32
    return %c0_i32, %c0_i32_0, %c0_i32_1, %c0_i32_2 : i32, i32, i32, i32
  }
  func.func @transform_10(%arg0: i32) -> (i32, i32, i32) {
    %c0_i32 = arith.constant 0 : i32
    %c0_i32_0 = arith.constant 0 : i32
    %c0_i32_1 = arith.constant 0 : i32
    %c0_i32_2 = arith.constant 0 : i32
    return %c0_i32, %c0_i32_0, %c0_i32_1 : i32, i32, i32
  }
  func.func @transform_11(%arg0: i32) -> (i32, i32, i32) {
    %c0_i32 = arith.constant 0 : i32
    %c0_i32_0 = arith.constant 0 : i32
    %c0_i32_1 = arith.constant 0 : i32
    %c0_i32_2 = arith.constant 0 : i32
    return %c0_i32, %c0_i32_0, %c0_i32_1 : i32, i32, i32
  }
  func.func @transform_12(%arg0: i32) -> (i32, i32, i32) {
    %c0_i32 = arith.constant 0 : i32
    %c0_i32_0 = arith.constant 0 : i32
    %c0_i32_1 = arith.constant 0 : i32
    %c0_i32_2 = arith.constant 0 : i32
    return %c0_i32, %c0_i32_0, %c0_i32_1 : i32, i32, i32
  }
  func.func @transform_13(%arg0: i32) -> (i32, i32) {
    %c0_i32 = arith.constant 0 : i32
    %c0_i32_0 = arith.constant 0 : i32
    %c0_i32_1 = arith.constant 0 : i32
    return %c0_i32, %c0_i32_0 : i32, i32
  }
  func.func @transform_14(%arg0: i32) -> (i32, i32) {
    %c0_i32 = arith.constant 0 : i32
    %c0_i32_0 = arith.constant 0 : i32
    %c0_i32_1 = arith.constant 0 : i32
    return %c0_i32, %c0_i32_0 : i32, i32
  }
  func.func @transform_15(%arg0: i32) -> (i32, i32) {
    %c0_i32 = arith.constant 0 : i32
    %c0_i32_0 = arith.constant 0 : i32
    %c0_i32_1 = arith.constant 0 : i32
    return %c0_i32, %c0_i32_0 : i32, i32
  }
  func.func @transform_16(%arg0: i32) -> (i32, i32) {
    %c0_i32 = arith.constant 0 : i32
    %c0_i32_0 = arith.constant 0 : i32
    %c0_i32_1 = arith.constant 0 : i32
    return %c0_i32, %c0_i32_0 : i32, i32
  }
  func.func @transform_17(%arg0: i32) -> (i32, i32) {
    %c0_i32 = arith.constant 0 : i32
    %c0_i32_0 = arith.constant 0 : i32
    %c0_i32_1 = arith.constant 0 : i32
    return %c0_i32, %c0_i32_0 : i32, i32
  }
  func.func @transform_18(%arg0: i32) -> (i32, i32) {
    %c0_i32 = arith.constant 0 : i32
    %c0_i32_0 = arith.constant 0 : i32
    return %arg0, %c0_i32 : i32, i32
  }
  func.func @transform_19(%arg0: i32) -> (i32, i32) {
    %c0_i32 = arith.constant 0 : i32
    %c0_i32_0 = arith.constant 0 : i32
    return %arg0, %c0_i32 : i32, i32
  }
  func.func @transform_20(%arg0: i32) -> (i32, i32) {
    %c0_i32 = arith.constant 0 : i32
    %c0_i32_0 = arith.constant 0 : i32
    return %arg0, %c0_i32 : i32, i32
  }
}

</mosaic_0001>

<bundles_post_ra>
// kernel: forward.1
= control target key start
LH: loop header
LB: loop body
LE: loop exit
PB: predicated region body
PF: predicated region fallthrough
CT: control target
= control target key end

     0   :  { %s9572_s0 = inlined_call_operand.vmem [shape: f32[8,192], index: 0, kind: input, shape index: {}]   ;;  %s9573_s1 = inlined_call_operand.vmem [shape: f32[2,256], index: 1, kind: input, shape index: {}]   ;;  %s9574_s2 = inlined_call_operand.vmem [shape: f32[10,32], index: 2, kind: input, shape index: {}]   ;;  %s9575_s3 = inlined_call_operand.vmem [shape: f32[10,10], index: 3, kind: input, shape index: {}]   ;;  %s9576_s4 = inlined_call_operand.vmem [shape: bf16[192,32], index: 4, kind: input, shape index: {}]   ;;  %s9577_s5 = inlined_call_operand.vmem [shape: f32[2,32], index: 5, kind: input, shape index: {}]   ;;  %s9578_s6 = inlined_call_operand.vmem [shape: f32[2,6,32], index: 6, kind: input, shape index: {}]   ;;  %s9579_s7 = inlined_call_operand.vmem [shape: bf16[2,12,32,8], index: 7, kind: input, shape index: {}]   ;;  %s9580_s8 = inlined_call_operand.vmem [shape: f32[2,12,8], index: 8, kind: input, shape index: {}]   ;;  %s9581_s9 = inlined_call_operand.vmem [shape: bf16[2,4,8,32], index: 9, kind: input, shape index: {}]   ;;  %s9582_s10 = inlined_call_operand.vmem [shape: bf16[2,32,128], index: 10, kind: input, shape index: {}]   ;;  %s9583_s11 = inlined_call_operand.vmem [shape: f32[2,1,128], index: 11, kind: input, shape index: {}]   ;;  %s9584_s12 = inlined_call_operand.vmem [shape: bf16[2,128,32], index: 12, kind: input, shape index: {}]   ;;  %s9585_s13 = inlined_call_operand.vmem [shape: bf16[256,512], index: 13, kind: input, shape index: {}]   ;;  %s9586_s14 = inlined_call_operand.vmem [shape: bf16[512,512], index: 14, kind: input, shape index: {}]   ;;  %s9587_s15 = inlined_call_operand.vmem [shape: f32[2,512], index: 15, kind: input, shape index: {}]   ;;  %s9588_s16 = inlined_call_operand.vmem [shape: bf16[544,4], index: 16, kind: input, shape index: {}]   ;;  %s9589_s17 = inlined_call_operand.vmem [shape: f32[1,4], index: 17, kind: input, shape index: {}]   ;;  %s9590_s18 = inlined_call_operand.hbm [shape: f32[2,4], index: 18, kind: output, shape index: {0}]   ;;  %s9591_s19 = inlined_call_operand.hbm [shape: f32[2,32], index: 19, kind: output, shape index: {1}]   ;;  %s9592_s20 = inlined_call_operand.hbm [shape: f32[2,512], index: 20, kind: output, shape index: {2}]  }
   0x1   :  { %9597 = sst [smem:[#allocation9_spill]] %s9572_s0 }
   0x2   :  { %9598 = sst [smem:[#allocation10_spill]] %s9573_s1 }
   0x3   :  { %9599 = sst [smem:[#allocation11_spill]] %s9574_s2 }
   0x4   :  { %9600 = sst [smem:[#allocation12_spill]] %s9575_s3 }
   0x5   :  { %9601 = sst [smem:[#allocation13_spill]] %s9576_s4 }
   0x6   :  { %26 = vsyncpa [#allocation3], 0  ;;  %s9602_s23 = sld [smem:[#allocation13_spill]]  ;;  %v7810_v1 = vmov 0   ;;  %s9603_s0 = sld [smem:[#allocation9_spill]]  ;;  %vm165_vm0 = vcmask 523264  }
   0x7   :  { %169 = vmatprep.subr.bf16.mxu0 %v7810_v1 }
   0xc   :  { %v7246_v0 = vld [vmem:[%s9602_s23] sm:$0xff]   ;;  %v7247_v2 = vld [vmem:[%s9602_s23 + $0x8] sm:$0xff]   ;;  %v7248_v3 = vld [vmem:[%s9602_s23 + $0x10] sm:$0xff]  }
   0xd   :  { %170 = vmatpush1.bf16.msra.mxu0 %v7246_v0  ;;  %v7249_v4 = vld [vmem:[%s9602_s23 + $0x18] sm:$0xff]   ;;  %v7250_v5 = vld [vmem:[%s9602_s23 + $0x20] sm:$0xff]   ;;  %v66_v6 = vld [vmem:[%s9603_s0 + $0x8] sm:$0xff] }
   0xe   :  { %171 = vmatprep.subr.bf16.mxu0 %v7810_v1  ;;  %v68_v7 = vpack.c.bf16 %v66_v6, %v66_v6  ;;  %v7251_v8 = vld [vmem:[%s9602_s23 + $0x28] sm:$0xff]   ;;  %v7252_v9 = vld [vmem:[%s9602_s23 + $0x30] sm:$0xff]   ;;  %v7253_v10 = vld [vmem:[%s9602_s23 + $0x38] sm:$0xff]  }
   0xf   :  { %v7254_v11 = vld [vmem:[%s9602_s23 + $0x40] sm:$0xff]   ;;  %v7255_v12 = vld [vmem:[%s9602_s23 + $0x48] sm:$0xff]   ;;  %v7256_v13 = vld [vmem:[%s9602_s23 + $0x50] sm:$0xff]  }
  0x10   :  { %6013 = vmatprep.mubr.msk.bf16.mxu0 %vm165_vm0, %v68_v7  ;;  %v7257_v14 = vld [vmem:[%s9602_s23 + $0x58] sm:$0xff]   ;;  %v65_v15 = vld [vmem:[%s9603_s0] sm:$0xff] }
  0x11   :  { %172 = vmatpush1.bf16.msra.mxu0 %v7247_v2  ;;  %v67_v16 = vpack.c.bf16 %v65_v15, %v65_v15 }
  0x12   :  { %173 = vmatprep.subr.bf16.mxu0 %v7810_v1 }
  0x15   :  { %174 = vmatpush1.bf16.msra.mxu0 %v7248_v3 }
  0x16   :  { %175 = vmatprep.subr.bf16.mxu0 %v7810_v1 }
  0x19   :  { %176 = vmatpush1.bf16.msra.mxu0 %v7249_v4 }
  0x1a   :  { %177 = vmatprep.subr.bf16.mxu0 %v7810_v1 }
  0x1d   :  { %178 = vmatpush1.bf16.msra.mxu0 %v7250_v5 }
  0x1e   :  { %179 = vmatprep.subr.bf16.mxu0 %v7810_v1 }
  0x21   :  { %180 = vmatpush1.bf16.msra.mxu0 %v7251_v8 }
  0x22   :  { %181 = vmatprep.subr.bf16.mxu0 %v7810_v1 }
  0x25   :  { %182 = vmatpush1.bf16.msra.mxu0 %v7252_v9 }
  0x26   :  { %183 = vmatprep.subr.bf16.mxu0 %v7810_v1 }
  0x29   :  { %184 = vmatpush1.bf16.msra.mxu0 %v7253_v10 }
  0x2a   :  { %185 = vmatprep.subr.bf16.mxu0 %v7810_v1 }
  0x2d   :  { %186 = vmatpush1.bf16.msra.mxu0 %v7254_v11 }
  0x2e   :  { %187 = vmatprep.subr.bf16.mxu0 %v7810_v1 }
  0x31   :  { %188 = vmatpush1.bf16.msra.mxu0 %v7255_v12 }
  0x32   :  { %189 = vmatprep.subr.bf16.mxu0 %v7810_v1 }
  0x35   :  { %190 = vmatpush1.bf16.msra.mxu0 %v7256_v13 }
  0x36   :  { %191 = vmatprep.subr.bf16.mxu0 %v7810_v1 }
  0x39   :  { %192 = vmatpush1.bf16.msra.mxu0 %v7257_v14 }
  0x3c   :  { %202 = vmatmul.mubr.bf16.vlgmr.msra.gmra.mrb[0].mxu0 %v67_v16 }
  0x3d   :  { %27 = vsyncpa [#allocation5], 0  ;;  %vm212_vm1 = vcmask 1041408   ;;  %s9604_s25 = sld [smem:[#allocation11_spill]]  ;;  %vm222_vm2 = vcmask 261120   ;;  %vm226_vm3 = vcmask 254976  }
  0x3e   :  { %v7258_v39 = vld [vmem:[%s9579_s7] sm:$0xff]   ;;  %v7811_v40 = vmov 0.0   ;;  %v7259_v41 = vld [vmem:[%s9579_s7 + $0x8] sm:$0xff]   ;;  %vm7812_vm4 = vmmov 0   ;;  %vm455_vm5 = vcmask 64512   ;;  %vm576_vm7 = vcmask 1044480  }
  0x3f   :  { %6771 = vmatprep.subr.bf16.mxu1 %v7811_v40  ;;  %6839 = vmatprep.subr.bf16.mxu0 %v7811_v40  ;;  %v6014_v50 = vld [vmem:[%s9578_s6] ss:$0 sm:$0xff]  ;;  %v6015_v54 = vld [vmem:[%s9578_s6 + $0x1] ss:$0 sm:$0xff]  ;;  %v7261_v60 = vld [vmem:[%s9579_s7 + $0x48] sm:$0xff]   ;;  %s9607_s22 = sld [smem:[#allocation12_spill]] }
  0x40   :  { %6772 = vmatpush3.bf16.msra.mxu1 %v7258_v39  ;;  %6775 = vmatprep.mubr.msk.bf16.mxu1 %vm7812_vm4, %v7811_v40  ;;  %v7260_v58 = vld [vmem:[%s9579_s7 + $0x40] sm:$0xff]   ;;  %v7263_v62 = vld [vmem:[%s9579_s7 + $0x88] sm:$0xff]   ;;  %vm8038_vm6 = vmpackc.low %vm455_vm5, %vm455_vm5  ;;  %vm551_vm8 = vcmask 74752   ;;  %vm547_vm9 = vcmask 80896   ;;  %vm980_vm10 = vcmask 1043456   ;;  %s9608_s26 = sld [smem:[#allocation10_spill]] }
  0x41   :  { %6773 = vmatprep.subr.bf16.mxu1 %v7811_v40  ;;  %6841 = vmatprep.mubr.msk.bf16.mxu0 %vm7812_vm4, %v7811_v40  ;;  %v7262_v61 = vld [vmem:[%s9579_s7 + $0x80] sm:$0xff]   ;;  %v6032_v14 = vld [vmem:[%s9580_s8 + $0x8] ss:$0 sm:$0xff]  ;;  %s7814_s28 = smov [#allocation4]  }
  0x42   :  { %v6016_v63 = vld [vmem:[%s9580_s8] ss:$0 sm:$0xff]  ;;  %v6024_v5 = vld [vmem:[%s9580_s8 + $0x4] ss:$0 sm:$0xff] }
  0x43   :  { %v214_v19 = vld [vmem:[%s9604_s25] sm:$0xff]  ;;  %v215_v23 = vld [vmem:[%s9604_s25 + $0x8] sm:$0x3] }
  0x44   :  { %6774 = vmatpush3.bf16.msra.mxu1 %v7259_v41 }
  0x45   :  { %6779 = vmatprep.subr.bf16.mxu1 %v7811_v40 }
 0x10f   :  { %v203_v17 = vpop.f32.mrb[0].mxu0 }
 0x110   :  { %v210_v18 = vrot.slane %v203_v17, 6  ;;  %v205_v20 = vpop.f32.mrb[1].mxu0 }
 0x111   :  { %v206_v21 = vpop.f32.mrb[2].mxu0 }
 0x112   :  { %v213_v22 = vsel %vm212_vm1, 0.0, %v210_v18  ;;  %v207_v24 = vpop.f32.mrb[3].mxu0  ;;  %v7972_v26 = vadd.f32 %v215_v23, %v210_v18 }
 0x113   :  { %v7970_v25 = vadd.f32 %v214_v19, %v213_v22 }
 0x114   :  { %v227_v28 = vsel %vm226_vm3, %v7972_v26, 0.0 }
 0x115   :  { %v223_v27 = vsel %vm222_vm2, %v7970_v25, 0.0 }
 0x116   :  { %224 = vadd.xlane.f32.xlu0 %v223_v27  ;;  %v8058_v27 = vld [vmem:[%s9607_s22 + $0x8] sm:$0x3] }
 0x11a   :  { %228 = vadd.xlane.f32.xlu0 %v227_v28 }
 0x1a3   :  { %v225_v29 = vpop.xlane.xlu0 %224 }
 0x1a4   :  { %v231_v30 = vmul.f32 0.03125, %v225_v29 }
 0x1a6   :  { %v233_v31 = vsub.f32 %v7970_v25, %v231_v30  ;;  %v8063_v30 = vld [vmem:[%s9607_s22] sm:$0xff] }
 0x1a7   :  { %v229_v32 = vpop.xlane.xlu0 %228 }
 0x1a8   :  { %v232_v33 = vmul.f32 0.03125, %v229_v32  ;;  %v235_v34 = vmul.f32 %v233_v31, %v233_v31 }
 0x1aa   :  { %v234_v35 = vsub.f32 %v7972_v26, %v232_v33  ;;  %v237_v36 = vsel %vm222_vm2, %v235_v34, 0.0 }
 0x1ab   :  { %238 = vadd.xlane.f32.xlu1 %v237_v36 }
 0x1ac   :  { %v236_v37 = vmul.f32 %v234_v35, %v234_v35 }
 0x1ae   :  { %v240_v38 = vsel %vm226_vm3, %v236_v37, 0.0 }
 0x1af   :  { %241 = vadd.xlane.f32.xlu1 %v240_v38 }
 0x238   :  { %v239_v42 = vpop.xlane.xlu1 %238 }
 0x239   :  { %v243_v43 = vmul.f32 0.03125, %v239_v42 }
 0x23b   :  { %v245_v44 = vadd.f32 1e-06, %v243_v43 }
 0x23c   :  { %v242_v45 = vpop.xlane.xlu1 %241 }
 0x23d   :  { %7648 = vrsqrt.f32 %v245_v44  ;;  %v244_v46 = vmul.f32 0.03125, %v242_v45 }
 0x23f   :  { %v246_v47 = vadd.f32 1e-06, %v244_v46 }
 0x241   :  { %7650 = vrsqrt.f32 %v246_v47 }
 0x247   :  { %v7649_v48 = vpop.eup %7648 }
 0x248   :  { %v249_v49 = vmul.f32 %v7649_v48, %v233_v31 }
 0x24a   :  { %v255_v52 = vmul.f32 %v6014_v50, %v249_v49 }
 0x24b   :  { %v7651_v51 = vpop.eup %7650 }
 0x24c   :  { %v250_v53 = vmul.f32 %v7651_v51, %v234_v35  ;;  %v261_v56 = vadd.f32 %v6015_v54, %v255_v52 }
 0x24e   :  { %v256_v55 = vmul.f32 %v6014_v50, %v250_v53  ;;  %v7264_v53 = vld [vmem:[%s9579_s7 + $0x10] sm:$0xff]  }
 0x250   :  { %v262_v57 = vadd.f32 %v6015_v54, %v256_v55  ;;  %v7265_v55 = vld [vmem:[%s9579_s7 + $0x18] sm:$0xff]  }
 0x252   :  { %v8005_v59 = vpack.c.bf16 %v262_v57, %v261_v56  ;;  %v7266_v56 = vld [vmem:[%s9579_s7 + $0x50] sm:$0xff]   ;;  %v7267_v57 = vld [vmem:[%s9579_s7 + $0x58] sm:$0xff]  }
 0x254   :  { %6776 = vmatmul.mubr.msk.bf16.vlgmr.msra.gmra.mrb[0].mxu1 %vm222_vm2, %v8005_v59 }
 0x255   :  { %6780 = vmatpush3.bf16.msra.mxu1 %v7260_v58  ;;  %6783 = vmatprep.mubr.msk.bf16.mxu1 %vm7812_vm4, %v7811_v40  ;;  %v7268_v58 = vld [vmem:[%s9579_s7 + $0x90] sm:$0xff]  }
 0x256   :  { %6781 = vmatprep.subr.bf16.mxu1 %v7811_v40 }
 0x259   :  { %6782 = vmatpush3.bf16.msra.mxu1 %v7261_v60  ;;  %v7269_v60 = vld [vmem:[%s9579_s7 + $0x98] sm:$0xff]  }
 0x25a   :  { %6787 = vmatprep.subr.bf16.mxu1 %v7811_v40 }
 0x25c   :  { %6784 = vmatmul.mubr.msk.bf16.vlgmr.msra.gmra.mrb[4].mxu1 %vm222_vm2, %v8005_v59 }
 0x25d   :  { %6788 = vmatpush3.bf16.msra.mxu1 %v7262_v61  ;;  %6791 = vmatprep.mubr.msk.bf16.mxu1 %vm7812_vm4, %v7811_v40 }
 0x25e   :  { %6789 = vmatprep.subr.bf16.mxu1 %v7811_v40 }
 0x261   :  { %6790 = vmatpush3.bf16.msra.mxu1 %v7263_v62 }
 0x264   :  { %6792 = vmatmul.mubr.msk.bf16.vlgmr.msra.gmra.mrb[8].mxu1 %vm222_vm2, %v8005_v59 }
 0x327   :  { %v322_v0 = vpop.f32.mrb[0].mxu1 }
 0x328   :  { %v323_v1 = vadd.f32 %v6016_v63, %v322_v0  ;;  %v6777_v2 = vpop.f32.mrb[1].mxu1 }
 0x329   :  { %v325_v3 = vpop.f32.mrb[2].mxu1  ;;  %v6045_v2 = vld [vmem:[%s9580_s8 + $0x1] ss:$0 sm:$0xff] }
 0x32a   :  { %v6778_v4 = vpop.f32.mrb[3].mxu1  ;;  %6799 = vmatprep.mubr.msk.f32.mxu1 %vm455_vm5, %v323_v1  ;;  %v326_v21 = vadd.f32 %v6016_v63, %v325_v3 }
 0x32f   :  { %v385_v6 = vpop.f32.mrb[4].mxu1 }
 0x330   :  { %v6785_v7 = vpop.f32.mrb[5].mxu1  ;;  %v386_v9 = vadd.f32 %v6024_v5, %v385_v6 }
 0x331   :  { %v388_v8 = vpop.f32.mrb[6].mxu1 }
 0x332   :  { %v389_v10 = vadd.f32 %v6024_v5, %v388_v8  ;;  %v6786_v11 = vpop.f32.mrb[7].mxu1  ;;  %v6053_v8 = vld [vmem:[%s9580_s8 + $0x5] ss:$0 sm:$0xff] }
 0x334   :  { %v7179_v13 = vpack.c.bf16 %v389_v10, %v386_v9 }
 0x336   :  { %7181 = vmatprep.subr.msk.bf16.mxu1 %vm8038_vm6, %v7179_v13 }
 0x337   :  { %v448_v15 = vpop.f32.mrb[8].mxu1  ;;  %7184 = vmatpush3.bf16.xpose.msk.msra.mxu1 %vm8038_vm6, %v7179_v13 }
 0x338   :  { %v6793_v16 = vpop.f32.mrb[9].mxu1  ;;  %6802 = vmatprep.subr.bf16.mxu1 %v7811_v40  ;;  %v449_v18 = vadd.f32 %v6032_v14, %v448_v15 }
 0x339   :  { %v451_v17 = vpop.f32.mrb[10].mxu1 }
 0x33a   :  { %v452_v19 = vadd.f32 %v6032_v14, %v451_v17  ;;  %v6794_v20 = vpop.f32.mrb[11].mxu1  ;;  %v6061_v17 = vld [vmem:[%s9580_s8 + $0x9] ss:$0 sm:$0xff] }
 0x33c   :  { %v572_v22 = vpack.c.bf16 %v452_v19, %v449_v18 }
 0x33e   :  { %6800 = vmatmul.mubr.msk.f32.vlgmr.msra.gmra.mrb[12].mxu1 %vm455_vm5, %v326_v21  ;;  %v578_v23 = vsel %vm576_vm7, %v572_v22, 0 }
 0x33f   :  { %6803 = vmatpush3.bf16.msra.mxu1 %v578_v23  ;;  %6804 = vmatprep.mubr.msk.bf16.mxu1 %vm7812_vm4, %v7811_v40 }
 0x340   :  { %6808 = vmatprep.subr.bf16.mxu1 %v7811_v40 }
 0x411   :  { %v6801_v24 = vpop.f32.mrb[12].mxu1 }
 0x412   :  { %v544_v28 = vmul.f32 0.35355338, %v6801_v24  ;;  %v534_v29 = vpop.f32.mrb[13].mxu1 }
 0x413   :  { %v543_v31 = vmul.f32 0.35355338, %v534_v29 }
 0x414   :  { %v546_v32 = vadd.f32 %v544_v28, %v8058_v27 }
 0x415   :  { %v545_v33 = vadd.f32 %v543_v31, %v8063_v30 }
 0x416   :  { %v552_v34 = vsel %vm551_vm8, %v546_v32, -inf }
 0x417   :  { %553 = vmax.xlane.f32.xlu1 %v552_v34  ;;  %v548_v35 = vsel %vm547_vm9, %v545_v33, -inf }
 0x418   :  { %549 = vmax.xlane.f32.xlu0 %v548_v35 }
 0x4a4   :  { %v554_v36 = vpop.xlane.xlu1 %553 }
 0x4a5   :  { %v556_v37 = vsub.f32 %v546_v32, %v554_v36  ;;  %v550_v38 = vpop.xlane.xlu0 %549 }
 0x4a6   :  { %v555_v39 = vsub.f32 %v545_v33, %v550_v38 }
 0x4a7   :  { %v559_v41 = vmul.f32 1.442695, %v556_v37 }
 0x4a8   :  { %v557_v42 = vmul.f32 1.442695, %v555_v39 }
 0x4a9   :  { %7652 = vpow2.f32 %v559_v41 }
 0x4aa   :  { %7654 = vpow2.f32 %v557_v42 }
 0x4b3   :  { %v7653_v43 = vpop.eup %7652 }
 0x4b4   :  { %v7655_v44 = vpop.eup %7654  ;;  %v564_v45 = vsel %vm551_vm8, %v7653_v43, 0.0 }
 0x4b5   :  { %565 = vadd.xlane.f32.xlu1 %v564_v45  ;;  %v561_v46 = vsel %vm547_vm9, %v7655_v44, 0.0 }
 0x4b6   :  { %562 = vadd.xlane.f32.xlu0 %v561_v46 }
 0x542   :  { %v566_v47 = vpop.xlane.xlu1 %565 }
 0x543   :  { %7656 = vrcp.f32 %v566_v47  ;;  %v563_v48 = vpop.xlane.xlu0 %562 }
 0x544   :  { %7658 = vrcp.f32 %v563_v48 }
 0x54d   :  { %v7657_v49 = vpop.eup %7656 }
 0x54e   :  { %v7659_v50 = vpop.eup %7658  ;;  %v570_v51 = vmul.f32 %v7657_v49, %v7653_v43 }
 0x54f   :  { %v569_v52 = vmul.f32 %v7659_v50, %v7655_v44 }
 0x551   :  { %v571_v54 = vpack.c.bf16 %v570_v51, %v569_v52 }
 0x553   :  { %6805 = vmatmul.mubr.msk.bf16.vlgmr.msra.gmra.mrb[16].mxu1 %vm547_vm9, %v571_v54 }
 0x554   :  { %6809 = vmatpush3.bf16.msra.mxu1 %v7264_v53  ;;  %6812 = vmatprep.mubr.msk.bf16.mxu1 %vm7812_vm4, %v7811_v40 }
 0x555   :  { %6810 = vmatprep.subr.bf16.mxu1 %v7811_v40 }
 0x558   :  { %6811 = vmatpush3.bf16.msra.mxu1 %v7265_v55  ;;  %v622_v55 = vld [vmem:[%s9581_s9] sm:$0xf] }
 0x559   :  { %6816 = vmatprep.subr.bf16.mxu1 %v7811_v40 }
 0x55b   :  { %6813 = vmatmul.mubr.msk.bf16.vlgmr.msra.gmra.mrb[20].mxu1 %vm222_vm2, %v8005_v59 }
 0x55c   :  { %6817 = vmatpush3.bf16.msra.mxu1 %v7266_v56  ;;  %6820 = vmatprep.mubr.msk.bf16.mxu1 %vm7812_vm4, %v7811_v40 }
 0x55d   :  { %6818 = vmatprep.subr.bf16.mxu1 %v7811_v40 }
 0x560   :  { %6819 = vmatpush3.bf16.msra.mxu1 %v7267_v57 }
 0x561   :  { %6824 = vmatprep.subr.bf16.mxu1 %v7811_v40 }
 0x563   :  { %6821 = vmatmul.mubr.msk.bf16.vlgmr.msra.gmra.mrb[24].mxu1 %vm222_vm2, %v8005_v59 }
 0x564   :  { %6825 = vmatpush3.bf16.msra.mxu1 %v7268_v58  ;;  %6828 = vmatprep.mubr.msk.bf16.mxu1 %vm7812_vm4, %v7811_v40  ;;  %v1029_v58 = vsel %vm980_vm10, %v622_v55, 0 }
 0x565   :  { %6826 = vmatprep.subr.bf16.mxu1 %v7811_v40 }
 0x568   :  { %6827 = vmatpush3.bf16.msra.mxu1 %v7269_v60  ;;  %v7270_v60 = vld [vmem:[%s9579_s7 + $0x60] sm:$0xff]  }
 0x56b   :  { %6829 = vmatmul.mubr.msk.bf16.vlgmr.msra.gmra.mrb[28].mxu1 %vm222_vm2, %v8005_v59 }
 0x626   :  { %v8107_v61 = vpop.f32.mrb[16].mxu1 }
 0x627   :  { %v6806_v62 = vpop.f32.mrb[17].mxu1 }
 0x628   :  { %v8109_v63 = vpop.f32.mrb[18].mxu1  ;;  %v7271_v62 = vld [vmem:[%s9579_s7 + $0x68] sm:$0xff]  }
 0x629   :  { %v621_v0 = vpack.c.bf16 %v8109_v63, %v8107_v61  ;;  %v6807_v1 = vpop.f32.mrb[19].mxu1  ;;  %v6070_v61 = vld [vmem:[%s9581_s9 + $0x4] sm:$0xf] }
 0x62a   :  { %v982_v63 = vsel %vm980_vm10, %v6070_v61, 0 }
 0x62e   :  { %v679_v3 = vpop.f32.mrb[20].mxu1 }
 0x62f   :  { %v680_v4 = vadd.f32 %v6045_v2, %v679_v3  ;;  %v6814_v5 = vpop.f32.mrb[21].mxu1  ;;  %v7272_v3 = vld [vmem:[%s9579_s7 + $0x20] sm:$0xff]  }
 0x630   :  { %v682_v6 = vpop.f32.mrb[22].mxu1 }
 0x631   :  { %v6815_v7 = vpop.f32.mrb[23].mxu1  ;;  %6836 = vmatprep.mubr.msk.f32.mxu1 %vm455_vm5, %v680_v4  ;;  %v683_v24 = vadd.f32 %v6045_v2, %v682_v6  ;;  %v7273_v6 = vld [vmem:[%s9579_s7 + $0x28] sm:$0xff]  }
 0x636   :  { %v742_v9 = vpop.f32.mrb[24].mxu1 }
 0x637   :  { %v6822_v10 = vpop.f32.mrb[25].mxu1  ;;  %v743_v13 = vadd.f32 %v6053_v8, %v742_v9 }
 0x638   :  { %v745_v11 = vpop.f32.mrb[26].mxu1  ;;  %v7274_v10 = vld [vmem:[%s9579_s7 + $0xa0] sm:$0xff]  }
 0x639   :  { %v746_v14 = vadd.f32 %v6053_v8, %v745_v11  ;;  %v6823_v15 = vpop.f32.mrb[27].mxu1 }
 0x63b   :  { %v7185_v16 = vpack.c.bf16 %v746_v14, %v743_v13  ;;  %v7275_v13 = vld [vmem:[%s9579_s7 + $0xa8] sm:$0xff]   ;;  %v6085_v14 = vld [vmem:[%s9580_s8 + $0x6] ss:$0 sm:$0xff] }
 0x63d   :  { %7187 = vmatprep.subr.msk.bf16.mxu1 %vm8038_vm6, %v7185_v16 }
 0x63e   :  { %v805_v18 = vpop.f32.mrb[28].mxu1  ;;  %7190 = vmatpush3.bf16.xpose.msk.msra.mxu1 %vm8038_vm6, %v7185_v16 }
 0x63f   :  { %v6830_v19 = vpop.f32.mrb[29].mxu1  ;;  %6845 = vmatprep.subr.bf16.mxu1 %v7811_v40  ;;  %v806_v21 = vadd.f32 %v6061_v17, %v805_v18 }
 0x640   :  { %v808_v20 = vpop.f32.mrb[30].mxu1 }
 0x641   :  { %v809_v22 = vadd.f32 %v6061_v17, %v808_v20  ;;  %v6831_v23 = vpop.f32.mrb[31].mxu1 }
 0x643   :  { %v926_v28 = vpack.c.bf16 %v809_v22, %v806_v21 }
 0x645   :  { %6837 = vmatmul.mubr.msk.f32.vlgmr.msra.gmra.mrb[14].mxu1 %vm455_vm5, %v683_v24  ;;  %v931_v29 = vsel %vm576_vm7, %v926_v28, 0 }
 0x646   :  { %6840 = vmatpush3.bf16.msra.mxu0 %v931_v29  ;;  %6847 = vmatprep.mubr.msk.bf16.mxu1 %vm7812_vm4, %v7811_v40 }
 0x647   :  { %6851 = vmatprep.subr.bf16.mxu0 %v7811_v40  ;;  %6846 = vmatpush3.bf16.msra.mxu1 %v982_v63 }
 0x648   :  { %6857 = vmatprep.subr.bf16.mxu1 %v7811_v40 }
 0x718   :  { %v6838_v31 = vpop.f32.mrb[14].mxu1 }
 0x719   :  { %v900_v32 = vmul.f32 0.35355338, %v6838_v31  ;;  %v890_v33 = vpop.f32.mrb[15].mxu1 }
 0x71a   :  { %v899_v34 = vmul.f32 0.35355338, %v890_v33 }
 0x71b   :  { %v902_v35 = vadd.f32 %v900_v32, %v8058_v27  ;;  %v6077_v32 = vld [vmem:[%s9580_s8 + $0x2] ss:$0 sm:$0xff] }
 0x71c   :  { %v901_v36 = vadd.f32 %v899_v34, %v8063_v30 }
 0x71d   :  { %v906_v37 = vsel %vm551_vm8, %v902_v35, -inf }
 0x71e   :  { %907 = vmax.xlane.f32.xlu1 %v906_v37  ;;  %v903_v38 = vsel %vm547_vm9, %v901_v36, -inf }
 0x71f   :  { %904 = vmax.xlane.f32.xlu0 %v903_v38 }
 0x7ab   :  { %v908_v39 = vpop.xlane.xlu1 %907 }
 0x7ac   :  { %v910_v41 = vsub.f32 %v902_v35, %v908_v39  ;;  %v905_v42 = vpop.xlane.xlu0 %904  ;;  %v6093_v39 = vld [vmem:[%s9580_s8 + $0xa] ss:$0 sm:$0xff] }
 0x7ad   :  { %v909_v43 = vsub.f32 %v901_v36, %v905_v42 }
 0x7ae   :  { %v913_v44 = vmul.f32 1.442695, %v910_v41 }
 0x7af   :  { %v911_v45 = vmul.f32 1.442695, %v909_v43 }
 0x7b0   :  { %7660 = vpow2.f32 %v913_v44 }
 0x7b1   :  { %7662 = vpow2.f32 %v911_v45 }
 0x7ba   :  { %v7661_v46 = vpop.eup %7660 }
 0x7bb   :  { %v7663_v47 = vpop.eup %7662  ;;  %v918_v48 = vsel %vm551_vm8, %v7661_v46, 0.0 }
 0x7bc   :  { %919 = vadd.xlane.f32.xlu1 %v918_v48  ;;  %v915_v49 = vsel %vm547_vm9, %v7663_v47, 0.0 }
 0x7bd   :  { %916 = vadd.xlane.f32.xlu0 %v915_v49 }
 0x849   :  { %v920_v50 = vpop.xlane.xlu1 %919 }
 0x84a   :  { %7664 = vrcp.f32 %v920_v50  ;;  %v917_v51 = vpop.xlane.xlu0 %916 }
 0x84b   :  { %7666 = vrcp.f32 %v917_v51 }
 0x854   :  { %v7665_v52 = vpop.eup %7664 }
 0x855   :  { %v7667_v53 = vpop.eup %7666  ;;  %v924_v54 = vmul.f32 %v7665_v52, %v7661_v46 }
 0x856   :  { %v923_v56 = vmul.f32 %v7667_v53, %v7663_v47 }
 0x858   :  { %v925_v57 = vpack.c.bf16 %v924_v54, %v923_v56 }
 0x85a   :  { %6842 = vmatmul.mubr.msk.bf16.vlgmr.msra.gmra.mrb[4].mxu0 %vm547_vm9, %v925_v57 }
 0x85b   :  { %6852 = vmatpush3.bf16.msra.mxu0 %v1029_v58  ;;  %6853 = vmatprep.mubr.msk.bf16.mxu0 %vm7812_vm4, %v7811_v40 }
 0x85c   :  { %6865 = vmatprep.subr.bf16.mxu0 %v7811_v40 }
 0x862   :  { %6854 = vmatmul.mubr.msk.bf16.vlgmr.msra.gmra.mrb[8].mxu0 %vm455_vm5, %v621_v0 }
 0x863   :  { %6866 = vmatpush3.bf16.msra.mxu0 %v7270_v60  ;;  %6869 = vmatprep.mubr.msk.bf16.mxu0 %vm7812_vm4, %v7811_v40 }
 0x864   :  { %6867 = vmatprep.subr.bf16.mxu0 %v7811_v40 }
 0x867   :  { %6868 = vmatpush3.bf16.msra.mxu0 %v7271_v62 }
 0x86a   :  { %6870 = vmatmul.mubr.msk.bf16.vlgmr.msra.gmra.mrb[12].mxu0 %vm222_vm2, %v8005_v59 }
 0x92d   :  { %v967_v0 = vpop.f32.mrb[4].mxu0 }
 0x92e   :  { %v6843_v1 = vpop.f32.mrb[5].mxu0 }
 0x92f   :  { %v970_v2 = vpop.f32.mrb[6].mxu0 }
 0x930   :  { %v974_v4 = vpack.c.bf16 %v970_v2, %v967_v0  ;;  %v6844_v5 = vpop.f32.mrb[7].mxu0 }
 0x932   :  { %6848 = vmatmul.mubr.msk.bf16.vlgmr.msra.gmra.mrb[32].mxu1 %vm455_vm5, %v974_v4 }
 0x933   :  { %6858 = vmatpush3.bf16.msra.mxu1 %v7272_v3  ;;  %6861 = vmatprep.mubr.msk.bf16.mxu1 %vm7812_vm4, %v7811_v40 }
 0x934   :  { %6859 = vmatprep.subr.bf16.mxu1 %v7811_v40 }
 0x935   :  { %v1065_v7 = vpop.f32.mrb[8].mxu0 }
 0x936   :  { %v6855_v8 = vpop.f32.mrb[9].mxu0 }
 0x937   :  { %v1068_v9 = vpop.f32.mrb[10].mxu0  ;;  %6860 = vmatpush3.bf16.msra.mxu1 %v7273_v6 }
 0x938   :  { %v6856_v11 = vpop.f32.mrb[11].mxu0  ;;  %6873 = vmatprep.subr.bf16.mxu1 %v7811_v40 }
 0x93a   :  { %6862 = vmatmul.mubr.msk.bf16.vlgmr.msra.gmra.mrb[36].mxu1 %vm222_vm2, %v8005_v59 }
 0x93b   :  { %6874 = vmatpush3.bf16.msra.mxu1 %v7274_v10  ;;  %6877 = vmatprep.mubr.msk.bf16.mxu1 %vm7812_vm4, %v7811_v40  ;;  %v7276_v10 = vld [vmem:[%s9579_s7 + $0x30] sm:$0xff]  }
 0x93c   :  { %6875 = vmatprep.subr.bf16.mxu1 %v7811_v40 }
 0x93d   :  { %v1191_v15 = vpop.f32.mrb[12].mxu0 }
 0x93e   :  { %v6871_v16 = vpop.f32.mrb[13].mxu0  ;;  %v1192_v18 = vadd.f32 %v6085_v14, %v1191_v15  ;;  %v7279_v15 = vld [vmem:[%s9579_s7 + $0xb8] sm:$0xff]  }
 0x93f   :  { %v1194_v17 = vpop.f32.mrb[14].mxu0  ;;  %6876 = vmatpush3.bf16.msra.mxu1 %v7275_v13  ;;  %v7277_v13 = vld [vmem:[%s9579_s7 + $0x38] sm:$0xff]   ;;  %v6102_v16 = vld [vmem:[%s9581_s9 + $0x8] sm:$0xf] }
 0x940   :  { %v1195_v19 = vadd.f32 %v6085_v14, %v1194_v17  ;;  %v6872_v20 = vpop.f32.mrb[15].mxu0  ;;  %6888 = vmatprep.subr.bf16.mxu1 %v7811_v40  ;;  %v7278_v14 = vld [vmem:[%s9579_s7 + $0xb0] sm:$0xff]   ;;  %v1430_v17 = vsel %vm980_vm10, %v6102_v16, 0 }
 0x942   :  { %v7191_v21 = vpack.c.bf16 %v1195_v19, %v1192_v18  ;;  %6878 = vmatmul.mubr.msk.bf16.vlgmr.msra.gmra.mrb[40].mxu1 %vm222_vm2, %v8005_v59 }
 0x943   :  { %6890 = vmatprep.mubr.msk.bf16.mxu1 %vm7812_vm4, %v7811_v40 }
 0x944   :  { %7193 = vmatprep.subr.msk.bf16.mxu0 %vm8038_vm6, %v7191_v21 }
 0x945   :  { %7196 = vmatpush3.bf16.xpose.msk.msra.mxu0 %vm8038_vm6, %v7191_v21  ;;  %v7280_v21 = vld [vmem:[%s9579_s7 + $0x70] sm:$0xff]  }
 0x946   :  { %6894 = vmatprep.subr.bf16.mxu0 %v7811_v40 }
 0xa05   :  { %v1018_v22 = vpop.f32.mrb[32].mxu1 }
 0xa06   :  { %v8202_v23 = vadd.f32 %v1065_v7, %v1018_v22  ;;  %v6849_v24 = vpop.f32.mrb[33].mxu1 }
 0xa07   :  { %v1021_v28 = vpop.f32.mrb[34].mxu1 }
 0xa08   :  { %v8204_v29 = vadd.f32 %v1068_v9, %v1021_v28  ;;  %v6850_v31 = vpop.f32.mrb[35].mxu1  ;;  %v7281_v28 = vld [vmem:[%s9579_s7 + $0x78] sm:$0xff]  }
 0xa0d   :  { %v1128_v33 = vpop.f32.mrb[36].mxu1 }
 0xa0e   :  { %v1129_v34 = vadd.f32 %v6077_v32, %v1128_v33  ;;  %v6863_v35 = vpop.f32.mrb[37].mxu1 }
 0xa0f   :  { %v1131_v36 = vpop.f32.mrb[38].mxu1 }
 0xa10   :  { %v1132_v37 = vadd.f32 %v6077_v32, %v1131_v36  ;;  %v6864_v38 = vpop.f32.mrb[39].mxu1  ;;  %6885 = vmatprep.mubr.msk.f32.mxu0 %vm455_vm5, %v1129_v34  ;;  %v6108_v32 = vld [vmem:[%s9580_s8 + $0x3] ss:$0 sm:$0xff] }
 0xa11   :  { %v6124_v38 = vld [vmem:[%s9580_s8 + $0xb] ss:$0 sm:$0xff] }
 0xa12   :  { %6886 = vmatmul.mubr.msk.f32.vlgmr.msra.gmra.mrb[16].mxu0 %vm455_vm5, %v1132_v37 }
 0xa13   :  { %6896 = vmatprep.mubr.msk.bf16.mxu0 %vm7812_vm4, %v7811_v40  ;;  %6895 = vmatpush3.bf16.msra.mxu0 %v1430_v17 }
 0xa14   :  { %6908 = vmatprep.subr.bf16.mxu0 %v7811_v40 }
 0xa15   :  { %v1254_v41 = vpop.f32.mrb[40].mxu1 }
 0xa16   :  { %v6879_v42 = vpop.f32.mrb[41].mxu1  ;;  %v1255_v44 = vadd.f32 %v6093_v39, %v1254_v41 }
 0xa17   :  { %v1257_v43 = vpop.f32.mrb[42].mxu1 }
 0xa18   :  { %v1258_v45 = vadd.f32 %v6093_v39, %v1257_v43  ;;  %v6880_v46 = vpop.f32.mrb[43].mxu1 }
 0xa1a   :  { %v1375_v47 = vpack.c.bf16 %v1258_v45, %v1255_v44 }
 0xa1c   :  { %v1380_v48 = vsel %vm576_vm7, %v1375_v47, 0 }
 0xa1d   :  { %6889 = vmatpush3.bf16.msra.mxu1 %v1380_v48 }
 0xa1e   :  { %6900 = vmatprep.subr.bf16.mxu1 %v7811_v40 }
 0xae5   :  { %v6887_v49 = vpop.f32.mrb[16].mxu0 }
 0xae6   :  { %v1349_v50 = vmul.f32 0.35355338, %v6887_v49  ;;  %v1339_v51 = vpop.f32.mrb[17].mxu0 }
 0xae7   :  { %v1348_v52 = vmul.f32 0.35355338, %v1339_v51 }
 0xae8   :  { %v1351_v53 = vadd.f32 %v1349_v50, %v8058_v27 }
 0xae9   :  { %v1350_v54 = vadd.f32 %v1348_v52, %v8063_v30  ;;  %v6116_v52 = vld [vmem:[%s9580_s8 + $0x7] ss:$0 sm:$0xff] }
 0xaea   :  { %v1355_v55 = vsel %vm551_vm8, %v1351_v53, -inf }
 0xaeb   :  { %1356 = vmax.xlane.f32.xlu1 %v1355_v55  ;;  %v1352_v56 = vsel %vm547_vm9, %v1350_v54, -inf }
 0xaec   :  { %1353 = vmax.xlane.f32.xlu0 %v1352_v56 }
 0xb78   :  { %v1357_v57 = vpop.xlane.xlu1 %1356 }
 0xb79   :  { %v1359_v58 = vsub.f32 %v1351_v53, %v1357_v57  ;;  %v1354_v60 = vpop.xlane.xlu0 %1353 }
 0xb7a   :  { %v1358_v62 = vsub.f32 %v1350_v54, %v1354_v60 }
 0xb7b   :  { %v1362_v61 = vmul.f32 1.442695, %v1359_v58 }
 0xb7c   :  { %v1360_v63 = vmul.f32 1.442695, %v1358_v62 }
 0xb7d   :  { %7668 = vpow2.f32 %v1362_v61 }
 0xb7e   :  { %7670 = vpow2.f32 %v1360_v63 }
 0xb87   :  { %v7669_v0 = vpop.eup %7668 }
 0xb88   :  { %v7671_v1 = vpop.eup %7670  ;;  %v1367_v2 = vsel %vm551_vm8, %v7669_v0, 0.0 }
 0xb89   :  { %1368 = vadd.xlane.f32.xlu1 %v1367_v2  ;;  %v1364_v3 = vsel %vm547_vm9, %v7671_v1, 0.0 }
 0xb8a   :  { %1365 = vadd.xlane.f32.xlu0 %v1364_v3 }
 0xc16   :  { %v1369_v4 = vpop.xlane.xlu1 %1368 }
 0xc17   :  { %7672 = vrcp.f32 %v1369_v4  ;;  %v1366_v5 = vpop.xlane.xlu0 %1365 }
 0xc18   :  { %7674 = vrcp.f32 %v1366_v5 }
 0xc21   :  { %v7673_v6 = vpop.eup %7672 }
 0xc22   :  { %v7675_v7 = vpop.eup %7674  ;;  %v1373_v8 = vmul.f32 %v7673_v6, %v7669_v0 }
 0xc23   :  { %v1372_v9 = vmul.f32 %v7675_v7, %v7671_v1 }
 0xc25   :  { %v1374_v11 = vpack.c.bf16 %v1373_v8, %v1372_v9 }
 0xc27   :  { %6891 = vmatmul.mubr.msk.bf16.vlgmr.msra.gmra.mrb[44].mxu1 %vm547_vm9, %v1374_v11 }
 0xc28   :  { %6901 = vmatpush3.bf16.msra.mxu1 %v7276_v10  ;;  %6904 = vmatprep.mubr.msk.bf16.mxu1 %vm7812_vm4, %v7811_v40 }
 0xc29   :  { %6902 = vmatprep.subr.bf16.mxu1 %v7811_v40 }
 0xc2c   :  { %6903 = vmatpush3.bf16.msra.mxu1 %v7277_v13  ;;  %v6133_v13 = vld [vmem:[%s9581_s9 + $0xc] sm:$0xf] }
 0xc2d   :  { %6916 = vmatprep.subr.bf16.mxu1 %v7811_v40 }
 0xc2f   :  { %6905 = vmatmul.mubr.msk.bf16.vlgmr.msra.gmra.mrb[48].mxu1 %vm222_vm2, %v8005_v59 }
 0xc30   :  { %6917 = vmatpush3.bf16.msra.mxu1 %v7278_v14  ;;  %6920 = vmatprep.mubr.msk.bf16.mxu1 %vm7812_vm4, %v7811_v40  ;;  %v1833_v14 = vsel %vm980_vm10, %v6133_v13, 0  ;;  %v7290_v13 = vld [vmem:[%s9584_s12 + $0x30] sm:$0xff]  }
 0xc31   :  { %6918 = vmatprep.subr.bf16.mxu1 %v7811_v40 }
 0xc34   :  { %6919 = vmatpush3.bf16.msra.mxu1 %v7279_v15 }
 0xc35   :  { %6937 = vmatprep.subr.bf16.mxu1 %v7811_v40 }
 0xc37   :  { %6921 = vmatmul.mubr.msk.bf16.vlgmr.msra.gmra.mrb[52].mxu1 %vm222_vm2, %v8005_v59 }
 0xc38   :  { %6939 = vmatprep.mubr.msk.bf16.mxu1 %vm7812_vm4, %v7811_v40  ;;  %6938 = vmatpush3.bf16.msra.mxu1 %v1833_v14  ;;  %v7291_v14 = vld [vmem:[%s9584_s12 + $0x38] sm:$0xff]  }
 0xc39   :  { %6951 = vmatprep.subr.bf16.mxu1 %v7811_v40 }
 0xcfa   :  { %v1416_v18 = vpop.f32.mrb[44].mxu1 }
 0xcfb   :  { %v6892_v19 = vpop.f32.mrb[45].mxu1 }
 0xcfc   :  { %v1419_v20 = vpop.f32.mrb[46].mxu1 }
 0xcfd   :  { %v1423_v22 = vpack.c.bf16 %v1419_v20, %v1416_v18  ;;  %v6893_v24 = vpop.f32.mrb[47].mxu1 }
 0xcff   :  { %6897 = vmatmul.mubr.msk.bf16.vlgmr.msra.gmra.mrb[20].mxu0 %vm455_vm5, %v1423_v22 }
 0xd00   :  { %6909 = vmatpush3.bf16.msra.mxu0 %v7280_v21  ;;  %6912 = vmatprep.mubr.msk.bf16.mxu0 %vm7812_vm4, %v7811_v40 }
 0xd01   :  { %6910 = vmatprep.subr.bf16.mxu0 %v7811_v40 }
 0xd02   :  { %v1531_v31 = vpop.f32.mrb[48].mxu1 }
 0xd03   :  { %v6906_v33 = vpop.f32.mrb[49].mxu1  ;;  %v1532_v37 = vadd.f32 %v6108_v32, %v1531_v31 }
 0xd04   :  { %v1534_v34 = vpop.f32.mrb[50].mxu1  ;;  %6911 = vmatpush3.bf16.msra.mxu0 %v7281_v28 }
 0xd05   :  { %v1535_v35 = vadd.f32 %v6108_v32, %v1534_v34  ;;  %v6907_v36 = vpop.f32.mrb[51].mxu1 }
 0xd06   :  { %v6135_v36 = vld [vmem:[%s9578_s6 + $0x2] ss:$0 sm:$0xff] }
 0xd07   :  { %6913 = vmatmul.mubr.msk.bf16.vlgmr.msra.gmra.mrb[24].mxu0 %vm222_vm2, %v8005_v59 }
 0xd08   :  { %6928 = vmatprep.mubr.msk.f32.mxu0 %vm455_vm5, %v1532_v37 }
 0xd0a   :  { %v1657_v39 = vpop.f32.mrb[52].mxu1 }
 0xd0b   :  { %v6922_v41 = vpop.f32.mrb[53].mxu1  ;;  %v1658_v43 = vadd.f32 %v6124_v38, %v1657_v39 }
 0xd0c   :  { %v1660_v42 = vpop.f32.mrb[54].mxu1 }
 0xd0d   :  { %v1661_v44 = vadd.f32 %v6124_v38, %v1660_v42  ;;  %v6923_v45 = vpop.f32.mrb[55].mxu1 }
 0xd0f   :  { %v1778_v46 = vpack.c.bf16 %v1661_v44, %v1658_v43 }
 0xdd2   :  { %v1466_v47 = vpop.f32.mrb[20].mxu0 }
 0xdd3   :  { %v8276_v48 = vadd.f32 %v1466_v47, %v8202_v23  ;;  %v6898_v49 = vpop.f32.mrb[21].mxu0  ;;  %v1783_v23 = vsel %vm576_vm7, %v1778_v46, 0 }
 0xdd4   :  { %v1469_v50 = vpop.f32.mrb[22].mxu0 }
 0xdd5   :  { %v8279_v59 = vadd.f32 %v1469_v50, %v8204_v29  ;;  %v6899_v51 = vpop.f32.mrb[23].mxu0 }
 0xdda   :  { %v1594_v53 = vpop.f32.mrb[24].mxu0 }
 0xddb   :  { %v6914_v54 = vpop.f32.mrb[25].mxu0  ;;  %v1595_v56 = vadd.f32 %v6116_v52, %v1594_v53 }
 0xddc   :  { %v1597_v55 = vpop.f32.mrb[26].mxu0  ;;  %v7282_v54 = vld [vmem:[%s9582_s10] sm:$0xff]  }
 0xddd   :  { %v1598_v57 = vadd.f32 %v6116_v52, %v1597_v55  ;;  %v6915_v58 = vpop.f32.mrb[27].mxu0  ;;  %v7283_v55 = vld [vmem:[%s9582_s10 + $0x8] sm:$0xff]  }
 0xddf   :  { %v7197_v60 = vpack.c.bf16 %v1598_v57, %v1595_v56  ;;  %v7284_v56 = vld [vmem:[%s9584_s12] sm:$0xff]   ;;  %v7285_v57 = vld [vmem:[%s9584_s12 + $0x8] sm:$0xff]  }
 0xde1   :  { %7199 = vmatprep.subr.msk.bf16.mxu0 %vm8038_vm6, %v7197_v60 }
 0xde2   :  { %7202 = vmatpush3.bf16.xpose.msk.msra.mxu0 %vm8038_vm6, %v7197_v60 }
 0xde3   :  { %6931 = vmatprep.subr.bf16.mxu0 %v7811_v40 }
 0xde9   :  { %6929 = vmatmul.mubr.msk.f32.vlgmr.msra.gmra.mrb[18].mxu0 %vm455_vm5, %v1535_v35 }
 0xdea   :  { %6932 = vmatpush3.bf16.msra.mxu0 %v1783_v23  ;;  %6933 = vmatprep.mubr.msk.bf16.mxu0 %vm7812_vm4, %v7811_v40 }
 0xdeb   :  { %6943 = vmatprep.subr.bf16.mxu0 %v7811_v40 }
 0xebc   :  { %v6930_v29 = vpop.f32.mrb[18].mxu0 }
 0xebd   :  { %v1752_v62 = vmul.f32 0.35355338, %v6930_v29  ;;  %v1742_v61 = vpop.f32.mrb[19].mxu0 }
 0xebe   :  { %v1751_v63 = vmul.f32 0.35355338, %v1742_v61 }
 0xebf   :  { %v1754_v0 = vadd.f32 %v1752_v62, %v8058_v27 }
 0xec0   :  { %v1753_v1 = vadd.f32 %v1751_v63, %v8063_v30 }
 0xec1   :  { %v1758_v2 = vsel %vm551_vm8, %v1754_v0, -inf }
 0xec2   :  { %1759 = vmax.xlane.f32.xlu1 %v1758_v2  ;;  %v1755_v3 = vsel %vm547_vm9, %v1753_v1, -inf }
 0xec3   :  { %1756 = vmax.xlane.f32.xlu0 %v1755_v3 }
 0xf4f   :  { %v1760_v4 = vpop.xlane.xlu1 %1759 }
 0xf50   :  { %v1762_v5 = vsub.f32 %v1754_v0, %v1760_v4  ;;  %v1757_v6 = vpop.xlane.xlu0 %1756  ;;  %v6136_v0 = vld [vmem:[%s9578_s6 + $0x3] ss:$0 sm:$0xff] }
 0xf51   :  { %v1761_v7 = vsub.f32 %v1753_v1, %v1757_v6 }
 0xf52   :  { %v1765_v8 = vmul.f32 1.442695, %v1762_v5  ;;  %v6137_v5 = vld [vmem:[%s9578_s6 + $0x4] ss:$0 sm:$0xff] }
 0xf53   :  { %v1763_v9 = vmul.f32 1.442695, %v1761_v7 }
 0xf54   :  { %7676 = vpow2.f32 %v1765_v8 }
 0xf55   :  { %7678 = vpow2.f32 %v1763_v9 }
 0xf5e   :  { %v7677_v10 = vpop.eup %7676 }
 0xf5f   :  { %v7679_v11 = vpop.eup %7678  ;;  %v1770_v27 = vsel %vm551_vm8, %v7677_v10, 0.0 }
 0xf60   :  { %1771 = vadd.xlane.f32.xlu1 %v1770_v27  ;;  %v1767_v30 = vsel %vm547_vm9, %v7679_v11, 0.0  ;;  %v7288_v27 = vld [vmem:[%s9584_s12 + $0x20] sm:$0xff]  }
 0xf61   :  { %1768 = vadd.xlane.f32.xlu0 %v1767_v30  ;;  %v7289_v30 = vld [vmem:[%s9584_s12 + $0x28] sm:$0xff]  }
 0xfed   :  { %v1772_v15 = vpop.xlane.xlu1 %1771 }
 0xfee   :  { %7680 = vrcp.f32 %v1772_v15  ;;  %v1769_v16 = vpop.xlane.xlu0 %1768  ;;  %v6138_v15 = vld [vmem:[%s9583_s11] ss:$0 sm:$0xff] }
 0xfef   :  { %7682 = vrcp.f32 %v1769_v16 }
 0xff8   :  { %v7681_v17 = vpop.eup %7680 }
 0xff9   :  { %v7683_v18 = vpop.eup %7682  ;;  %v1776_v19 = vmul.f32 %v7681_v17, %v7677_v10  ;;  %v7286_v10 = vld [vmem:[%s9584_s12 + $0x10] sm:$0xff]  }
 0xffa   :  { %v1775_v20 = vmul.f32 %v7683_v18, %v7679_v11  ;;  %v7287_v11 = vld [vmem:[%s9584_s12 + $0x18] sm:$0xff]  }
 0xffc   :  { %v1777_v21 = vpack.c.bf16 %v1776_v19, %v1775_v20 }
 0xffe   :  { %6934 = vmatmul.mubr.msk.bf16.vlgmr.msra.gmra.mrb[28].mxu0 %vm547_vm9, %v1777_v21 }
 0xfff   :  { %6947 = vmatprep.mubr.msk.bf16.mxu0 %vm7812_vm4, %v7811_v40  ;;  %6944 = vmatpush3.bf16.msra.mxu0 %v7282_v54 }
0x1000   :  { %6945 = vmatprep.subr.bf16.mxu0 %v7811_v40 }
0x1003   :  { %6946 = vmatpush3.bf16.msra.mxu0 %v7283_v55 }
0x1004   :  { %6971 = vmatprep.subr.bf16.mxu0 %v7811_v40 }
0x10d1   :  { %v1819_v22 = vpop.f32.mrb[28].mxu0 }
0x10d2   :  { %v6935_v24 = vpop.f32.mrb[29].mxu0 }
0x10d3   :  { %v1822_v28 = vpop.f32.mrb[30].mxu0 }
0x10d4   :  { %v1826_v31 = vpack.c.bf16 %v1822_v28, %v1819_v22  ;;  %v6936_v32 = vpop.f32.mrb[31].mxu0 }
0x10d6   :  { %6940 = vmatmul.mubr.msk.bf16.vlgmr.msra.gmra.mrb[56].mxu1 %vm455_vm5, %v1826_v31 }
0x10d7   :  { %6967 = vmatprep.mubr.msk.bf16.mxu1 %vm7812_vm4, %v7811_v40  ;;  %6952 = vmatpush3.bf16.msra.mxu1 %v7284_v56 }
0x10d8   :  { %6953 = vmatprep.subr.bf16.mxu1 %v7811_v40 }
0x10db   :  { %6954 = vmatpush3.bf16.msra.mxu1 %v7285_v57 }
0x10dc   :  { %6955 = vmatprep.subr.bf16.mxu1 %v7811_v40 }
0x10df   :  { %6956 = vmatpush3.bf16.msra.mxu1 %v7286_v10 }
0x10e0   :  { %6957 = vmatprep.subr.bf16.mxu1 %v7811_v40 }
0x10e3   :  { %6958 = vmatpush3.bf16.msra.mxu1 %v7287_v11  ;;  %v7294_v11 = vld [vmem:[%s9579_s7 + $0x100] sm:$0xff]  }
0x10e4   :  { %6959 = vmatprep.subr.bf16.mxu1 %v7811_v40 }
0x10e7   :  { %6960 = vmatpush3.bf16.msra.mxu1 %v7288_v27 }
0x10e8   :  { %6961 = vmatprep.subr.bf16.mxu1 %v7811_v40 }
0x10eb   :  { %6962 = vmatpush3.bf16.msra.mxu1 %v7289_v30  ;;  %v7295_v30 = vld [vmem:[%s9579_s7 + $0x108] sm:$0xff]  }
0x10ec   :  { %6963 = vmatprep.subr.bf16.mxu1 %v7811_v40 }
0x10ef   :  { %6964 = vmatpush3.bf16.msra.mxu1 %v7290_v13  ;;  %v7296_v13 = vld [vmem:[%s9579_s7 + $0x140] sm:$0xff]  }
0x10f0   :  { %6965 = vmatprep.subr.bf16.mxu1 %v7811_v40 }
0x10f3   :  { %6966 = vmatpush3.bf16.msra.mxu1 %v7291_v14  ;;  %v7297_v14 = vld [vmem:[%s9579_s7 + $0x148] sm:$0xff]  }
0x10f4   :  { %7002 = vmatprep.subr.bf16.mxu1 %v7811_v40 }
0x11a9   :  { %v1869_v33 = vpop.f32.mrb[56].mxu1 }
0x11aa   :  { %v1876_v34 = vadd.f32 %v1869_v33, %v8276_v48  ;;  %v6941_v35 = vpop.f32.mrb[57].mxu1 }
0x11ab   :  { %v1872_v37 = vpop.f32.mrb[58].mxu1 }
0x11ac   :  { %v1878_v38 = vadd.f32 %v1876_v34, %v7970_v25  ;;  %v1877_v39 = vadd.f32 %v1872_v37, %v8279_v59  ;;  %v6942_v41 = vpop.f32.mrb[59].mxu1 }
0x11ad   :  { %v6150_v41 = vld [vmem:[%s9578_s6 + $0x5] ss:$0 sm:$0xff] }
0x11ae   :  { %v8317_v42 = vadd.f32 %v6135_v36, %v1878_v38  ;;  %v1879_v43 = vadd.f32 %v1877_v39, %v7972_v26 }
0x11b0   :  { %v8320_v44 = vadd.f32 %v6135_v36, %v1879_v43  ;;  %v1889_v45 = vsel %vm222_vm2, %v8317_v42, 0.0 }
0x11b1   :  { %1890 = vadd.xlane.f32.xlu0 %v1889_v45 }
0x11b2   :  { %v1892_v46 = vsel %vm226_vm3, %v8320_v44, 0.0 }
0x11b3   :  { %1893 = vadd.xlane.f32.xlu1 %v1892_v46 }
0x123e   :  { %v1891_v47 = vpop.xlane.xlu0 %1890 }
0x123f   :  { %v1895_v48 = vmul.f32 0.03125, %v1891_v47 }
0x1240   :  { %v1894_v25 = vpop.xlane.xlu1 %1893 }
0x1241   :  { %v1897_v49 = vsub.f32 %v8317_v42, %v1895_v48  ;;  %v1896_v50 = vmul.f32 0.03125, %v1894_v25 }
0x1243   :  { %v1898_v59 = vsub.f32 %v8320_v44, %v1896_v50  ;;  %v1899_v51 = vmul.f32 %v1897_v49, %v1897_v49 }
0x1245   :  { %v1901_v26 = vsel %vm222_vm2, %v1899_v51, 0.0  ;;  %v1900_v52 = vmul.f32 %v1898_v59, %v1898_v59 }
0x1246   :  { %1902 = vadd.xlane.f32.xlu0 %v1901_v26 }
0x1247   :  { %v1904_v53 = vsel %vm226_vm3, %v1900_v52, 0.0 }
0x1248   :  { %1905 = vadd.xlane.f32.xlu1 %v1904_v53 }
0x12d3   :  { %v1903_v58 = vpop.xlane.xlu0 %1902 }
0x12d4   :  { %v1907_v60 = vmul.f32 0.03125, %v1903_v58  ;;  %v7292_v58 = vld [vmem:[%s9579_s7 + $0xc0] sm:$0xff]  }
0x12d5   :  { %v1906_v23 = vpop.xlane.xlu1 %1905 }
0x12d6   :  { %v1909_v29 = vadd.f32 1e-06, %v1907_v60  ;;  %v1908_v62 = vmul.f32 0.03125, %v1906_v23  ;;  %v7293_v60 = vld [vmem:[%s9579_s7 + $0xc8] sm:$0xff]  }
0x12d8   :  { %7684 = vrsqrt.f32 %v1909_v29  ;;  %v1910_v61 = vadd.f32 1e-06, %v1908_v62 }
0x12da   :  { %7686 = vrsqrt.f32 %v1910_v61 }
0x12e2   :  { %v7685_v63 = vpop.eup %7684 }
0x12e3   :  { %v1913_v1 = vmul.f32 %v7685_v63, %v1897_v49 }
0x12e4   :  { %v7687_v2 = vpop.eup %7686 }
0x12e5   :  { %v1919_v3 = vmul.f32 %v6136_v0, %v1913_v1  ;;  %v1914_v4 = vmul.f32 %v7687_v2, %v1898_v59  ;;  %v6153_v2 = vld [vmem:[%s9578_s6 + $0x8] ss:$0 sm:$0xff] }
0x12e7   :  { %v1920_v6 = vmul.f32 %v6136_v0, %v1914_v4  ;;  %v1925_v7 = vadd.f32 %v6137_v5, %v1919_v3 }
0x12e9   :  { %v1926_v8 = vadd.f32 %v6137_v5, %v1920_v6 }
0x12eb   :  { %v1927_v9 = vpack.c.bf16 %v1926_v8, %v1925_v7  ;;  %v6154_v7 = vld [vmem:[%s9578_s6 + $0x9] ss:$0 sm:$0xff] }
0x12ed   :  { %6948 = vmatmul.mubr.msk.bf16.vlgmr.msra.gmra.mrb[32].mxu0 %vm222_vm2, %v1927_v9 }
0x12ee   :  { %6975 = vmatprep.mubr.msk.bf16.mxu0 %vm7812_vm4, %v7811_v40  ;;  %6972 = vmatpush3.bf16.msra.mxu0 %v7292_v58 }
0x12ef   :  { %6973 = vmatprep.subr.bf16.mxu0 %v7811_v40 }
0x12f2   :  { %6974 = vmatpush3.bf16.msra.mxu0 %v7293_v60 }
0x12f3   :  { %6979 = vmatprep.subr.bf16.mxu0 %v7811_v40 }
0x13c0   :  { %v1988_v16 = vpop.f32.mrb[32].mxu0 }
0x13c1   :  { %v1989_v17 = vadd.f32 %v6138_v15, %v1988_v16  ;;  %v6949_v18 = vpop.f32.mrb[33].mxu0 }
0x13c2   :  { %v1991_v19 = vpop.f32.mrb[34].mxu0 }
0x13c3   :  { %v1997_v20 = vmul.f32 0.70710677, %v1989_v17  ;;  %v1992_v21 = vadd.f32 %v6138_v15, %v1991_v19  ;;  %v6950_v22 = vpop.f32.mrb[35].mxu0  ;;  %v1995_v33 = vmul.f32 0.5, %v1989_v17  ;;  %v6160_v15 = vld [vmem:[%s9580_s8 + $0x10] ss:$0 sm:$0xff] }
0x13c5   :  { %7688 = verf.f32 %v1997_v20  ;;  %v1998_v24 = vmul.f32 0.70710677, %v1992_v21  ;;  %v1996_v34 = vmul.f32 0.5, %v1992_v21  ;;  %v6169_v21 = vld [vmem:[%s9580_s8 + $0x14] ss:$0 sm:$0xff] }
0x13c7   :  { %7690 = verf.f32 %v1998_v24 }
0x13cf   :  { %v7689_v28 = vpop.eup %7688 }
0x13d0   :  { %v2001_v31 = vadd.f32 1.0, %v7689_v28 }
0x13d1   :  { %v7691_v32 = vpop.eup %7690 }
0x13d2   :  { %v2002_v35 = vadd.f32 1.0, %v7691_v32  ;;  %v2003_v36 = vmul.f32 %v2001_v31, %v1995_v33 }
0x13d4   :  { %v2004_v37 = vmul.f32 %v2002_v35, %v1996_v34  ;;  %v6178_v35 = vld [vmem:[%s9580_s8 + $0x18] ss:$0 sm:$0xff] }
0x13d6   :  { %v2005_v38 = vpack.c.bf16 %v2004_v37, %v2003_v36 }
0x13d8   :  { %6968 = vmatmul.mubr.bf16.vlgmr.msra.gmra.mrb[60].mxu1 %v2005_v38 }
0x13d9   :  { %7004 = vmatprep.mubr.msk.bf16.mxu1 %vm7812_vm4, %v7811_v40 }
0x14ab   :  { %v2104_v39 = vpop.f32.mrb[60].mxu1 }
0x14ac   :  { %v2111_v43 = vadd.f32 %v2104_v39, %v8317_v42  ;;  %v6969_v45 = vpop.f32.mrb[61].mxu1 }
0x14ad   :  { %v2107_v46 = vpop.f32.mrb[62].mxu1  ;;  %v7298_v45 = vld [vmem:[%s9579_s7 + $0xd0] sm:$0xff]  }
0x14ae   :  { %v8388_v47 = vadd.f32 %v6150_v41, %v2111_v43  ;;  %v2112_v48 = vadd.f32 %v2107_v46, %v8320_v44  ;;  %v6970_v25 = vpop.f32.mrb[63].mxu1 }
0x14b0   :  { %v8391_v49 = vadd.f32 %v6150_v41, %v2112_v48  ;;  %v2123_v50 = vsel %vm222_vm2, %v8388_v47, 0.0 }
0x14b1   :  { %2124 = vadd.xlane.f32.xlu0 %v2123_v50  ;;  %v7299_v50 = vld [vmem:[%s9579_s7 + $0xd8] sm:$0xff]  }
0x14b2   :  { %v2126_v59 = vsel %vm226_vm3, %v8391_v49, 0.0 }
0x14b3   :  { %2127 = vadd.xlane.f32.xlu1 %v2126_v59  ;;  %v7300_v59 = vld [vmem:[%s9579_s7 + $0x150] sm:$0xff]  }
0x153e   :  { %v2125_v51 = vpop.xlane.xlu0 %2124 }
0x153f   :  { %v2129_v26 = vmul.f32 0.03125, %v2125_v51  ;;  %v7301_v51 = vld [vmem:[%s9579_s7 + $0x158] sm:$0xff]  }
0x1540   :  { %v2128_v42 = vpop.xlane.xlu1 %2127 }
0x1541   :  { %v2131_v52 = vsub.f32 %v8388_v47, %v2129_v26  ;;  %v2130_v53 = vmul.f32 0.03125, %v2128_v42 }
0x1543   :  { %v2132_v54 = vsub.f32 %v8391_v49, %v2130_v53  ;;  %v2133_v44 = vmul.f32 %v2131_v52, %v2131_v52 }
0x1545   :  { %v2135_v55 = vsel %vm222_vm2, %v2133_v44, 0.0  ;;  %v2134_v56 = vmul.f32 %v2132_v54, %v2132_v54 }
0x1546   :  { %2136 = vadd.xlane.f32.xlu0 %v2135_v55  ;;  %v8495_v55 = vld [vmem:[%s9607_s22] sm:$0xff] }
0x1547   :  { %v2138_v57 = vsel %vm226_vm3, %v2134_v56, 0.0 }
0x1548   :  { %2139 = vadd.xlane.f32.xlu1 %v2138_v57 }
0x15d3   :  { %v2137_v23 = vpop.xlane.xlu0 %2136 }
0x15d4   :  { %v2141_v29 = vmul.f32 0.03125, %v2137_v23 }
0x15d5   :  { %v2140_v62 = vpop.xlane.xlu1 %2139 }
0x15d6   :  { %v2143_v61 = vadd.f32 1e-06, %v2141_v29  ;;  %v2142_v63 = vmul.f32 0.03125, %v2140_v62  ;;  %v6193_v29 = vld [vmem:[%s9580_s8 + $0x11] ss:$0 sm:$0xff] }
0x15d8   :  { %7692 = vrsqrt.f32 %v2143_v61  ;;  %v2144_v0 = vadd.f32 1e-06, %v2142_v63 }
0x15da   :  { %7694 = vrsqrt.f32 %v2144_v0  ;;  %v6211_v0 = vld [vmem:[%s9580_s8 + $0x19] ss:$0 sm:$0xff] }
0x15e2   :  { %v7693_v1 = vpop.eup %7692 }
0x15e3   :  { %v2147_v3 = vmul.f32 %v7693_v1, %v2131_v52 }
0x15e4   :  { %v7695_v4 = vpop.eup %7694 }
0x15e5   :  { %v2153_v5 = vmul.f32 %v6153_v2, %v2147_v3  ;;  %v2148_v6 = vmul.f32 %v7695_v4, %v2132_v54  ;;  %v8489_v54 = vld [vmem:[%s9607_s22 + $0x8] sm:$0x3] }
0x15e7   :  { %v2154_v8 = vmul.f32 %v6153_v2, %v2148_v6  ;;  %v2159_v9 = vadd.f32 %v6154_v7, %v2153_v5 }
0x15e9   :  { %v2160_v10 = vadd.f32 %v6154_v7, %v2154_v8 }
0x15eb   :  { %v8418_v27 = vpack.c.bf16 %v2160_v10, %v2159_v9 }
0x15ed   :  { %6976 = vmatmul.mubr.msk.bf16.vlgmr.msra.gmra.mrb[36].mxu0 %vm222_vm2, %v8418_v27 }
0x15ee   :  { %6980 = vmatpush3.bf16.msra.mxu0 %v7294_v11  ;;  %6983 = vmatprep.mubr.msk.bf16.mxu0 %vm7812_vm4, %v7811_v40 }
0x15ef   :  { %6981 = vmatprep.subr.bf16.mxu0 %v7811_v40 }
0x15f2   :  { %6982 = vmatpush3.bf16.msra.mxu0 %v7295_v30 }
0x15f3   :  { %6987 = vmatprep.subr.bf16.mxu0 %v7811_v40 }
0x15f5   :  { %6984 = vmatmul.mubr.msk.bf16.vlgmr.msra.gmra.mrb[40].mxu0 %vm222_vm2, %v8418_v27 }
0x15f6   :  { %6988 = vmatpush3.bf16.msra.mxu0 %v7296_v13  ;;  %6991 = vmatprep.mubr.msk.bf16.mxu0 %vm7812_vm4, %v7811_v40 }
0x15f7   :  { %6989 = vmatprep.subr.bf16.mxu0 %v7811_v40 }
0x15fa   :  { %6990 = vmatpush3.bf16.msra.mxu0 %v7297_v14 }
0x15fd   :  { %6992 = vmatmul.mubr.msk.bf16.vlgmr.msra.gmra.mrb[44].mxu0 %vm222_vm2, %v8418_v27 }
0x16c0   :  { %v2222_v16 = vpop.f32.mrb[36].mxu0 }
0x16c1   :  { %v2223_v17 = vadd.f32 %v6160_v15, %v2222_v16  ;;  %v6977_v18 = vpop.f32.mrb[37].mxu0 }
0x16c2   :  { %v2225_v19 = vpop.f32.mrb[38].mxu0 }
0x16c3   :  { %v6978_v20 = vpop.f32.mrb[39].mxu0  ;;  %6999 = vmatprep.mubr.msk.f32.mxu0 %vm455_vm5, %v2223_v17  ;;  %v2226_v46 = vadd.f32 %v6160_v15, %v2225_v19 }
0x16c8   :  { %v2285_v22 = vpop.f32.mrb[40].mxu0 }
0x16c9   :  { %v6985_v24 = vpop.f32.mrb[41].mxu0  ;;  %v2286_v31 = vadd.f32 %v6169_v21, %v2285_v22 }
0x16ca   :  { %v2288_v28 = vpop.f32.mrb[42].mxu0 }
0x16cb   :  { %v2289_v32 = vadd.f32 %v6169_v21, %v2288_v28  ;;  %v6986_v33 = vpop.f32.mrb[43].mxu0  ;;  %v7302_v28 = vld [vmem:[%s9579_s7 + $0x110] sm:$0xff]  }
0x16cd   :  { %v7203_v34 = vpack.c.bf16 %v2289_v32, %v2286_v31  ;;  %v7303_v32 = vld [vmem:[%s9579_s7 + $0x118] sm:$0xff]  }
0x16cf   :  { %7205 = vmatprep.subr.msk.bf16.mxu0 %vm8038_vm6, %v7203_v34 }
0x16d0   :  { %v2348_v36 = vpop.f32.mrb[44].mxu0  ;;  %7208 = vmatpush3.bf16.xpose.msk.msra.mxu0 %vm8038_vm6, %v7203_v34 }
0x16d1   :  { %v6993_v37 = vpop.f32.mrb[45].mxu0  ;;  %7008 = vmatprep.subr.bf16.mxu0 %v7811_v40  ;;  %v2349_v39 = vadd.f32 %v6178_v35, %v2348_v36 }
0x16d2   :  { %v2351_v38 = vpop.f32.mrb[46].mxu0 }
0x16d3   :  { %v2352_v41 = vadd.f32 %v6178_v35, %v2351_v38  ;;  %v6994_v43 = vpop.f32.mrb[47].mxu0 }
0x16d5   :  { %v2469_v48 = vpack.c.bf16 %v2352_v41, %v2349_v39  ;;  %v6202_v39 = vld [vmem:[%s9580_s8 + $0x15] ss:$0 sm:$0xff] }
0x16d7   :  { %7000 = vmatmul.mubr.msk.f32.vlgmr.msra.gmra.mrb[48].mxu0 %vm455_vm5, %v2226_v46  ;;  %v2474_v25 = vsel %vm576_vm7, %v2469_v48, 0 }
0x16d8   :  { %7003 = vmatpush3.bf16.msra.mxu1 %v2474_v25  ;;  %7009 = vmatpush3.bf16.msra.mxu0 %v7298_v45 }
0x16d9   :  { %7010 = vmatprep.subr.bf16.mxu0 %v7811_v40  ;;  %7012 = vmatprep.mubr.msk.bf16.mxu0 %vm7812_vm4, %v7811_v40 }
0x16da   :  { %7016 = vmatprep.subr.bf16.mxu1 %v7811_v40 }
0x16dc   :  { %7011 = vmatpush3.bf16.msra.mxu0 %v7299_v50 }
0x16dd   :  { %7024 = vmatprep.subr.bf16.mxu0 %v7811_v40 }
0x16df   :  { %7013 = vmatmul.mubr.msk.bf16.vlgmr.msra.gmra.mrb[52].mxu0 %vm222_vm2, %v8418_v27 }
0x16e0   :  { %7025 = vmatpush3.bf16.msra.mxu0 %v7300_v59  ;;  %7028 = vmatprep.mubr.msk.bf16.mxu0 %vm7812_vm4, %v7811_v40 }
0x16e1   :  { %7026 = vmatprep.subr.bf16.mxu0 %v7811_v40 }
0x16e4   :  { %7027 = vmatpush3.bf16.msra.mxu0 %v7301_v51 }
0x16e5   :  { %7045 = vmatprep.subr.bf16.mxu0 %v7811_v40 }
0x16e7   :  { %7029 = vmatmul.mubr.msk.bf16.vlgmr.msra.gmra.mrb[56].mxu0 %vm222_vm2, %v8418_v27 }
0x16e8   :  { %7047 = vmatprep.mubr.msk.bf16.mxu0 %vm7812_vm4, %v7811_v40 }
0x17aa   :  { %v7001_v26 = vpop.f32.mrb[48].mxu0 }
0x17ab   :  { %v2443_v42 = vmul.f32 0.35355338, %v7001_v26  ;;  %v2433_v52 = vpop.f32.mrb[49].mxu0 }
0x17ac   :  { %v2442_v53 = vmul.f32 0.35355338, %v2433_v52 }
0x17ad   :  { %v2445_v44 = vadd.f32 %v8489_v54, %v2443_v42 }
0x17ae   :  { %v2444_v56 = vadd.f32 %v8495_v55, %v2442_v53 }
0x17af   :  { %v2449_v57 = vsel %vm551_vm8, %v2445_v44, -inf }
0x17b0   :  { %2450 = vmax.xlane.f32.xlu1 %v2449_v57  ;;  %v2446_v58 = vsel %vm547_vm9, %v2444_v56, -inf }
0x17b1   :  { %2447 = vmax.xlane.f32.xlu0 %v2446_v58 }
0x17b2   :  { %v2576_v60 = vpop.f32.mrb[52].mxu0 }
0x17b3   :  { %v7014_v23 = vpop.f32.mrb[53].mxu0  ;;  %v2577_v33 = vadd.f32 %v6193_v29, %v2576_v60 }
0x17b4   :  { %v2579_v62 = vpop.f32.mrb[54].mxu0 }
0x17b5   :  { %v2580_v61 = vadd.f32 %v6193_v29, %v2579_v62  ;;  %v7015_v63 = vpop.f32.mrb[55].mxu0 }
0x17ba   :  { %v2702_v1 = vpop.f32.mrb[56].mxu0 }
0x17bb   :  { %v7030_v2 = vpop.f32.mrb[57].mxu0  ;;  %v2703_v4 = vadd.f32 %v6211_v0, %v2702_v1 }
0x17bc   :  { %v2705_v3 = vpop.f32.mrb[58].mxu0 }
0x17bd   :  { %v2706_v5 = vadd.f32 %v6211_v0, %v2705_v3  ;;  %v7031_v6 = vpop.f32.mrb[59].mxu0  ;;  %v6220_v3 = vld [vmem:[%s9581_s9 + $0x14] sm:$0xf] }
0x17bf   :  { %v2823_v7 = vpack.c.bf16 %v2706_v5, %v2703_v4  ;;  %v2878_v4 = vsel %vm980_vm10, %v6220_v3, 0 }
0x17c0   :  { %7046 = vmatpush3.bf16.msra.mxu0 %v2878_v4 }
0x17c1   :  { %v2828_v59 = vsel %vm576_vm7, %v2823_v7, 0  ;;  %7057 = vmatprep.subr.bf16.mxu0 %v7811_v40 }
0x183d   :  { %v2451_v8 = vpop.xlane.xlu1 %2450 }
0x183e   :  { %v2453_v9 = vsub.f32 %v2445_v44, %v2451_v8  ;;  %v2448_v10 = vpop.xlane.xlu0 %2447 }
0x183f   :  { %v2452_v11 = vsub.f32 %v2444_v56, %v2448_v10  ;;  %v6187_v10 = vld [vmem:[%s9581_s9 + $0x10] sm:$0xf] }
0x1840   :  { %v2456_v30 = vmul.f32 1.442695, %v2453_v9 }
0x1841   :  { %v2454_v13 = vmul.f32 1.442695, %v2452_v11 }
0x1842   :  { %7696 = vpow2.f32 %v2456_v30 }
0x1843   :  { %7698 = vpow2.f32 %v2454_v13  ;;  %v2925_v13 = vsel %vm980_vm10, %v6187_v10, 0 }
0x184c   :  { %v7697_v14 = vpop.eup %7696 }
0x184d   :  { %v7699_v15 = vpop.eup %7698  ;;  %v2461_v16 = vsel %vm551_vm8, %v7697_v14, 0.0 }
0x184e   :  { %2462 = vadd.xlane.f32.xlu1 %v2461_v16  ;;  %v2458_v17 = vsel %vm547_vm9, %v7699_v15, 0.0 }
0x184f   :  { %2459 = vadd.xlane.f32.xlu0 %v2458_v17 }
0x18db   :  { %v2463_v18 = vpop.xlane.xlu1 %2462 }
0x18dc   :  { %7700 = vrcp.f32 %v2463_v18  ;;  %v2460_v19 = vpop.xlane.xlu0 %2459 }
0x18dd   :  { %7702 = vrcp.f32 %v2460_v19  ;;  %v7306_v19 = vld [vmem:[%s9579_s7 + $0xe0] sm:$0xff]  }
0x18e6   :  { %v7701_v20 = vpop.eup %7700 }
0x18e7   :  { %v7703_v21 = vpop.eup %7702  ;;  %v2467_v22 = vmul.f32 %v7701_v20, %v7697_v14  ;;  %v7304_v14 = vld [vmem:[%s9579_s7 + $0x120] sm:$0xff]  }
0x18e8   :  { %v2466_v24 = vmul.f32 %v7703_v21, %v7699_v15  ;;  %v7305_v15 = vld [vmem:[%s9579_s7 + $0x128] sm:$0xff]  }
0x18ea   :  { %v2468_v31 = vpack.c.bf16 %v2467_v22, %v2466_v24  ;;  %v7307_v22 = vld [vmem:[%s9579_s7 + $0xe8] sm:$0xff]  }
0x18ec   :  { %7005 = vmatmul.mubr.msk.bf16.vlgmr.msra.gmra.mrb[64].mxu1 %vm547_vm9, %v2468_v31 }
0x18ed   :  { %7017 = vmatpush3.bf16.msra.mxu1 %v7302_v28  ;;  %7020 = vmatprep.mubr.msk.bf16.mxu1 %vm7812_vm4, %v7811_v40 }
0x18ee   :  { %7018 = vmatprep.subr.bf16.mxu1 %v7811_v40 }
0x18f1   :  { %7019 = vmatpush3.bf16.msra.mxu1 %v7303_v32  ;;  %v7308_v32 = vld [vmem:[%s9579_s7 + $0x160] sm:$0xff]  }
0x18f4   :  { %7021 = vmatmul.mubr.msk.bf16.vlgmr.msra.gmra.mrb[68].mxu1 %vm222_vm2, %v8418_v27 }
0x18f5   :  { %7036 = vmatprep.mubr.msk.f32.mxu1 %vm455_vm5, %v2577_v33 }
0x19bf   :  { %v8521_v34 = vpop.f32.mrb[64].mxu1 }
0x19c0   :  { %v7006_v35 = vpop.f32.mrb[65].mxu1 }
0x19c1   :  { %v8523_v36 = vpop.f32.mrb[66].mxu1  ;;  %v6237_v35 = vld [vmem:[%s9580_s8 + $0x16] ss:$0 sm:$0xff] }
0x19c2   :  { %v2517_v37 = vpack.c.bf16 %v8523_v36, %v8521_v34  ;;  %v7007_v38 = vpop.f32.mrb[67].mxu1  ;;  %v7309_v34 = vld [vmem:[%s9579_s7 + $0x168] sm:$0xff]  }
0x19c7   :  { %v2639_v41 = vpop.f32.mrb[68].mxu1 }
0x19c8   :  { %v7022_v43 = vpop.f32.mrb[69].mxu1  ;;  %v2640_v46 = vadd.f32 %v6202_v39, %v2639_v41 }
0x19c9   :  { %v2642_v45 = vpop.f32.mrb[70].mxu1 }
0x19ca   :  { %v2643_v48 = vadd.f32 %v6202_v39, %v2642_v45  ;;  %v7023_v25 = vpop.f32.mrb[71].mxu1 }
0x19cc   :  { %v7209_v50 = vpack.c.bf16 %v2643_v48, %v2640_v46 }
0x19ce   :  { %7211 = vmatprep.subr.msk.bf16.mxu1 %vm8038_vm6, %v7209_v50 }
0x19cf   :  { %7214 = vmatpush3.bf16.xpose.msk.msra.mxu1 %vm8038_vm6, %v7209_v50 }
0x19d0   :  { %7039 = vmatprep.subr.bf16.mxu1 %v7811_v40 }
0x19d6   :  { %7037 = vmatmul.mubr.msk.f32.vlgmr.msra.gmra.mrb[72].mxu1 %vm455_vm5, %v2580_v61 }
0x19d7   :  { %7040 = vmatpush3.bf16.msra.mxu1 %v2828_v59  ;;  %7041 = vmatprep.mubr.msk.bf16.mxu1 %vm7812_vm4, %v7811_v40 }
0x19d8   :  { %7051 = vmatprep.subr.bf16.mxu1 %v7811_v40 }
0x1aa9   :  { %v7038_v51 = vpop.f32.mrb[72].mxu1 }
0x1aaa   :  { %v2797_v26 = vmul.f32 0.35355338, %v7038_v51  ;;  %v2787_v42 = vpop.f32.mrb[73].mxu1 }
0x1aab   :  { %v2796_v52 = vmul.f32 0.35355338, %v2787_v42 }
0x1aac   :  { %v2799_v53 = vadd.f32 %v8489_v54, %v2797_v26  ;;  %v6228_v26 = vld [vmem:[%s9580_s8 + $0x12] ss:$0 sm:$0xff] }
0x1aad   :  { %v2798_v44 = vadd.f32 %v8495_v55, %v2796_v52 }
0x1aae   :  { %v2803_v56 = vsel %vm551_vm8, %v2799_v53, -inf }
0x1aaf   :  { %2804 = vmax.xlane.f32.xlu1 %v2803_v56  ;;  %v2800_v57 = vsel %vm547_vm9, %v2798_v44, -inf }
0x1ab0   :  { %2801 = vmax.xlane.f32.xlu0 %v2800_v57 }
0x1b3c   :  { %v2805_v58 = vpop.xlane.xlu1 %2804 }
0x1b3d   :  { %v2807_v60 = vsub.f32 %v2799_v53, %v2805_v58  ;;  %v2802_v23 = vpop.xlane.xlu0 %2801  ;;  %v6246_v58 = vld [vmem:[%s9580_s8 + $0x1a] ss:$0 sm:$0xff] }
0x1b3e   :  { %v2806_v29 = vsub.f32 %v2798_v44, %v2802_v23 }
0x1b3f   :  { %v2810_v62 = vmul.f32 1.442695, %v2807_v60 }
0x1b40   :  { %v2808_v61 = vmul.f32 1.442695, %v2806_v29 }
0x1b41   :  { %7704 = vpow2.f32 %v2810_v62 }
0x1b42   :  { %7706 = vpow2.f32 %v2808_v61 }
0x1b4b   :  { %v7705_v63 = vpop.eup %7704 }
0x1b4c   :  { %v7707_v0 = vpop.eup %7706  ;;  %v2815_v1 = vsel %vm551_vm8, %v7705_v63, 0.0 }
0x1b4d   :  { %2816 = vadd.xlane.f32.xlu1 %v2815_v1  ;;  %v2812_v2 = vsel %vm547_vm9, %v7707_v0, 0.0 }
0x1b4e   :  { %2813 = vadd.xlane.f32.xlu0 %v2812_v2 }
0x1bda   :  { %v2817_v5 = vpop.xlane.xlu1 %2816 }
0x1bdb   :  { %7708 = vrcp.f32 %v2817_v5  ;;  %v2814_v6 = vpop.xlane.xlu0 %2813 }
0x1bdc   :  { %7710 = vrcp.f32 %v2814_v6 }
0x1be5   :  { %v7709_v7 = vpop.eup %7708 }
0x1be6   :  { %v7711_v8 = vpop.eup %7710  ;;  %v2821_v9 = vmul.f32 %v7709_v7, %v7705_v63 }
0x1be7   :  { %v2820_v11 = vmul.f32 %v7711_v8, %v7707_v0 }
0x1be9   :  { %v2822_v30 = vpack.c.bf16 %v2821_v9, %v2820_v11 }
0x1beb   :  { %7042 = vmatmul.mubr.msk.bf16.vlgmr.msra.gmra.mrb[76].mxu1 %vm547_vm9, %v2822_v30 }
0x1bec   :  { %7052 = vmatpush3.bf16.msra.mxu1 %v2925_v13  ;;  %7053 = vmatprep.mubr.msk.bf16.mxu1 %vm7812_vm4, %v7811_v40 }
0x1bed   :  { %7065 = vmatprep.subr.bf16.mxu1 %v7811_v40 }
0x1bf3   :  { %7054 = vmatmul.mubr.msk.bf16.vlgmr.msra.gmra.mrb[80].mxu1 %vm455_vm5, %v2517_v37 }
0x1bf4   :  { %7066 = vmatpush3.bf16.msra.mxu1 %v7304_v14  ;;  %7069 = vmatprep.mubr.msk.bf16.mxu1 %vm7812_vm4, %v7811_v40 }
0x1bf5   :  { %7067 = vmatprep.subr.bf16.mxu1 %v7811_v40 }
0x1bf8   :  { %7068 = vmatpush3.bf16.msra.mxu1 %v7305_v15 }
0x1bfb   :  { %7070 = vmatmul.mubr.msk.bf16.vlgmr.msra.gmra.mrb[84].mxu1 %vm222_vm2, %v8418_v27 }
0x1cbe   :  { %v2864_v16 = vpop.f32.mrb[76].mxu1 }
0x1cbf   :  { %v7043_v17 = vpop.f32.mrb[77].mxu1 }
0x1cc0   :  { %v2867_v18 = vpop.f32.mrb[78].mxu1 }
0x1cc1   :  { %v2871_v20 = vpack.c.bf16 %v2867_v18, %v2864_v16  ;;  %v7044_v21 = vpop.f32.mrb[79].mxu1 }
0x1cc3   :  { %7048 = vmatmul.mubr.msk.bf16.vlgmr.msra.gmra.mrb[60].mxu0 %vm455_vm5, %v2871_v20 }
0x1cc4   :  { %7058 = vmatpush3.bf16.msra.mxu0 %v7306_v19  ;;  %7061 = vmatprep.mubr.msk.bf16.mxu0 %vm7812_vm4, %v7811_v40 }
0x1cc5   :  { %7059 = vmatprep.subr.bf16.mxu0 %v7811_v40 }
0x1cc6   :  { %v2961_v24 = vpop.f32.mrb[80].mxu1 }
0x1cc7   :  { %v7055_v28 = vpop.f32.mrb[81].mxu1 }
0x1cc8   :  { %v2964_v31 = vpop.f32.mrb[82].mxu1  ;;  %7060 = vmatpush3.bf16.msra.mxu0 %v7307_v22 }
0x1cc9   :  { %v7056_v33 = vpop.f32.mrb[83].mxu1  ;;  %7073 = vmatprep.subr.bf16.mxu0 %v7811_v40 }
0x1ccb   :  { %7062 = vmatmul.mubr.msk.bf16.vlgmr.msra.gmra.mrb[64].mxu0 %vm222_vm2, %v8418_v27 }
0x1ccc   :  { %7074 = vmatpush3.bf16.msra.mxu0 %v7308_v32  ;;  %7077 = vmatprep.mubr.msk.bf16.mxu0 %vm7812_vm4, %v7811_v40  ;;  %v7310_v32 = vld [vmem:[%s9579_s7 + $0xf0] sm:$0xff]  }
0x1ccd   :  { %7075 = vmatprep.subr.bf16.mxu0 %v7811_v40 }
0x1cce   :  { %v3087_v36 = vpop.f32.mrb[84].mxu1 }
0x1ccf   :  { %v7071_v37 = vpop.f32.mrb[85].mxu1  ;;  %v3088_v39 = vadd.f32 %v6237_v35, %v3087_v36  ;;  %v7313_v36 = vld [vmem:[%s9579_s7 + $0x178] sm:$0xff]  }
0x1cd0   :  { %v3090_v38 = vpop.f32.mrb[86].mxu1  ;;  %7076 = vmatpush3.bf16.msra.mxu0 %v7309_v34  ;;  %v7311_v34 = vld [vmem:[%s9579_s7 + $0xf8] sm:$0xff]  }
0x1cd1   :  { %v3091_v41 = vadd.f32 %v6237_v35, %v3090_v38  ;;  %v7072_v43 = vpop.f32.mrb[87].mxu1  ;;  %7088 = vmatprep.subr.bf16.mxu0 %v7811_v40  ;;  %v7312_v35 = vld [vmem:[%s9579_s7 + $0x170] sm:$0xff]   ;;  %v6255_v37 = vld [vmem:[%s9581_s9 + $0x18] sm:$0xf] }
0x1cd2   :  { %v3326_v38 = vsel %vm980_vm10, %v6255_v37, 0 }
0x1cd3   :  { %v7215_v45 = vpack.c.bf16 %v3091_v41, %v3088_v39  ;;  %7078 = vmatmul.mubr.msk.bf16.vlgmr.msra.gmra.mrb[68].mxu0 %vm222_vm2, %v8418_v27 }
0x1cd4   :  { %7090 = vmatprep.mubr.msk.bf16.mxu0 %vm7812_vm4, %v7811_v40 }
0x1cd5   :  { %7217 = vmatprep.subr.msk.bf16.mxu1 %vm8038_vm6, %v7215_v45 }
0x1cd6   :  { %7220 = vmatpush3.bf16.xpose.msk.msra.mxu1 %vm8038_vm6, %v7215_v45  ;;  %v7314_v45 = vld [vmem:[%s9579_s7 + $0x130] sm:$0xff]  }
0x1cd7   :  { %7094 = vmatprep.subr.bf16.mxu1 %v7811_v40 }
0x1d96   :  { %v2914_v46 = vpop.f32.mrb[60].mxu0 }
0x1d97   :  { %v8606_v48 = vadd.f32 %v2961_v24, %v2914_v46  ;;  %v7049_v25 = vpop.f32.mrb[61].mxu0 }
0x1d98   :  { %v2917_v50 = vpop.f32.mrb[62].mxu0 }
0x1d99   :  { %v8608_v59 = vadd.f32 %v2964_v31, %v2917_v50  ;;  %v7050_v51 = vpop.f32.mrb[63].mxu0  ;;  %v7315_v50 = vld [vmem:[%s9579_s7 + $0x138] sm:$0xff]  }
0x1d9e   :  { %v3024_v42 = vpop.f32.mrb[64].mxu0 }
0x1d9f   :  { %v3025_v52 = vadd.f32 %v6228_v26, %v3024_v42  ;;  %v7063_v53 = vpop.f32.mrb[65].mxu0 }
0x1da0   :  { %v3027_v44 = vpop.f32.mrb[66].mxu0 }
0x1da1   :  { %v3028_v56 = vadd.f32 %v6228_v26, %v3027_v44  ;;  %v7064_v57 = vpop.f32.mrb[67].mxu0  ;;  %7085 = vmatprep.mubr.msk.f32.mxu1 %vm455_vm5, %v3025_v52  ;;  %v6262_v26 = vld [vmem:[%s9580_s8 + $0x13] ss:$0 sm:$0xff] }
0x1da2   :  { %v6280_v57 = vld [vmem:[%s9580_s8 + $0x1b] ss:$0 sm:$0xff] }
0x1da3   :  { %7086 = vmatmul.mubr.msk.f32.vlgmr.msra.gmra.mrb[74].mxu1 %vm455_vm5, %v3028_v56 }
0x1da4   :  { %7096 = vmatprep.mubr.msk.bf16.mxu1 %vm7812_vm4, %v7811_v40  ;;  %7095 = vmatpush3.bf16.msra.mxu1 %v3326_v38 }
0x1da5   :  { %7108 = vmatprep.subr.bf16.mxu1 %v7811_v40 }
0x1da6   :  { %v3150_v60 = vpop.f32.mrb[68].mxu0 }
0x1da7   :  { %v7079_v23 = vpop.f32.mrb[69].mxu0  ;;  %v3151_v62 = vadd.f32 %v6246_v58, %v3150_v60 }
0x1da8   :  { %v3153_v29 = vpop.f32.mrb[70].mxu0 }
0x1da9   :  { %v3154_v61 = vadd.f32 %v6246_v58, %v3153_v29  ;;  %v7080_v63 = vpop.f32.mrb[71].mxu0 }
0x1dab   :  { %v3271_v0 = vpack.c.bf16 %v3154_v61, %v3151_v62 }
0x1dad   :  { %v3276_v1 = vsel %vm576_vm7, %v3271_v0, 0 }
0x1dae   :  { %7089 = vmatpush3.bf16.msra.mxu0 %v3276_v1 }
0x1daf   :  { %7100 = vmatprep.subr.bf16.mxu0 %v7811_v40 }
0x1e76   :  { %v7087_v2 = vpop.f32.mrb[74].mxu1 }
0x1e77   :  { %v3245_v3 = vmul.f32 0.35355338, %v7087_v2  ;;  %v3235_v4 = vpop.f32.mrb[75].mxu1 }
0x1e78   :  { %v3244_v5 = vmul.f32 0.35355338, %v3235_v4 }
0x1e79   :  { %v3247_v6 = vadd.f32 %v8489_v54, %v3245_v3 }
0x1e7a   :  { %v3246_v7 = vadd.f32 %v8495_v55, %v3244_v5  ;;  %v6271_v5 = vld [vmem:[%s9580_s8 + $0x17] ss:$0 sm:$0xff] }
0x1e7b   :  { %v3251_v8 = vsel %vm551_vm8, %v3247_v6, -inf }
0x1e7c   :  { %3252 = vmax.xlane.f32.xlu1 %v3251_v8  ;;  %v3248_v9 = vsel %vm547_vm9, %v3246_v7, -inf }
0x1e7d   :  { %3249 = vmax.xlane.f32.xlu0 %v3248_v9 }
0x1f09   :  { %v3253_v10 = vpop.xlane.xlu1 %3252 }
0x1f0a   :  { %v3255_v11 = vsub.f32 %v3247_v6, %v3253_v10  ;;  %v3250_v30 = vpop.xlane.xlu0 %3249 }
0x1f0b   :  { %v3254_v13 = vsub.f32 %v3246_v7, %v3250_v30 }
0x1f0c   :  { %v3258_v14 = vmul.f32 1.442695, %v3255_v11 }
0x1f0d   :  { %v3256_v15 = vmul.f32 1.442695, %v3254_v13 }
0x1f0e   :  { %7712 = vpow2.f32 %v3258_v14 }
0x1f0f   :  { %7714 = vpow2.f32 %v3256_v15 }
0x1f18   :  { %v7713_v16 = vpop.eup %7712 }
0x1f19   :  { %v7715_v17 = vpop.eup %7714  ;;  %v3263_v18 = vsel %vm551_vm8, %v7713_v16, 0.0 }
0x1f1a   :  { %3264 = vadd.xlane.f32.xlu1 %v3263_v18  ;;  %v3260_v19 = vsel %vm547_vm9, %v7715_v17, 0.0 }
0x1f1b   :  { %3261 = vadd.xlane.f32.xlu0 %v3260_v19 }
0x1fa7   :  { %v3265_v20 = vpop.xlane.xlu1 %3264 }
0x1fa8   :  { %7716 = vrcp.f32 %v3265_v20  ;;  %v3262_v21 = vpop.xlane.xlu0 %3261 }
0x1fa9   :  { %7718 = vrcp.f32 %v3262_v21 }
0x1fb2   :  { %v7717_v22 = vpop.eup %7716 }
0x1fb3   :  { %v7719_v24 = vpop.eup %7718  ;;  %v3269_v28 = vmul.f32 %v7717_v22, %v7713_v16 }
0x1fb4   :  { %v3268_v31 = vmul.f32 %v7719_v24, %v7715_v17 }
0x1fb6   :  { %v3270_v33 = vpack.c.bf16 %v3269_v28, %v3268_v31 }
0x1fb8   :  { %7091 = vmatmul.mubr.msk.bf16.vlgmr.msra.gmra.mrb[72].mxu0 %vm547_vm9, %v3270_v33  ;;  %v6289_v33 = vld [vmem:[%s9581_s9 + $0x1c] sm:$0xf] }
0x1fb9   :  { %7101 = vmatpush3.bf16.msra.mxu0 %v7310_v32  ;;  %7104 = vmatprep.mubr.msk.bf16.mxu0 %vm7812_vm4, %v7811_v40 }
0x1fba   :  { %7102 = vmatprep.subr.bf16.mxu0 %v7811_v40 }
0x1fbd   :  { %7103 = vmatpush3.bf16.msra.mxu0 %v7311_v34  ;;  %v3729_v34 = vsel %vm980_vm10, %v6289_v33, 0  ;;  %v7324_v33 = vld [vmem:[%s9585_s13 + $0x40] ss:$16 sps:$4 sm:$0xff]  }
0x1fbe   :  { %7116 = vmatprep.subr.bf16.mxu0 %v7811_v40 }
0x1fc0   :  { %7105 = vmatmul.mubr.msk.bf16.vlgmr.msra.gmra.mrb[76].mxu0 %vm222_vm2, %v8418_v27 }
0x1fc1   :  { %7117 = vmatpush3.bf16.msra.mxu0 %v7312_v35  ;;  %7120 = vmatprep.mubr.msk.bf16.mxu0 %vm7812_vm4, %v7811_v40 }
0x1fc2   :  { %7118 = vmatprep.subr.bf16.mxu0 %v7811_v40 }
0x1fc5   :  { %7119 = vmatpush3.bf16.msra.mxu0 %v7313_v36 }
0x1fc6   :  { %7137 = vmatprep.subr.bf16.mxu0 %v7811_v40 }
0x1fc8   :  { %7121 = vmatmul.mubr.msk.bf16.vlgmr.msra.gmra.mrb[80].mxu0 %vm222_vm2, %v8418_v27 }
0x1fc9   :  { %7139 = vmatprep.mubr.msk.bf16.mxu0 %vm7812_vm4, %v7811_v40  ;;  %7138 = vmatpush3.bf16.msra.mxu0 %v3729_v34  ;;  %v7329_v34 = vld [vmem:[%s9585_s13 + $0x64] ss:$16 sps:$4 sm:$0xff]  }
0x1fca   :  { %7151 = vmatprep.subr.bf16.mxu0 %v7811_v40 }
0x208b   :  { %v3312_v39 = vpop.f32.mrb[72].mxu0 }
0x208c   :  { %v7092_v41 = vpop.f32.mrb[73].mxu0 }
0x208d   :  { %v3315_v43 = vpop.f32.mrb[74].mxu0 }
0x208e   :  { %v3319_v46 = vpack.c.bf16 %v3315_v43, %v3312_v39  ;;  %v7093_v25 = vpop.f32.mrb[75].mxu0 }
0x2090   :  { %7097 = vmatmul.mubr.msk.bf16.vlgmr.msra.gmra.mrb[88].mxu1 %vm455_vm5, %v3319_v46 }
0x2091   :  { %7109 = vmatpush3.bf16.msra.mxu1 %v7314_v45  ;;  %7112 = vmatprep.mubr.msk.bf16.mxu1 %vm7812_vm4, %v7811_v40 }
0x2092   :  { %7110 = vmatprep.subr.bf16.mxu1 %v7811_v40 }
0x2093   :  { %v3427_v51 = vpop.f32.mrb[76].mxu0 }
0x2094   :  { %v7106_v42 = vpop.f32.mrb[77].mxu0  ;;  %v3428_v56 = vadd.f32 %v6262_v26, %v3427_v51 }
0x2095   :  { %v3430_v52 = vpop.f32.mrb[78].mxu0  ;;  %7111 = vmatpush3.bf16.msra.mxu1 %v7315_v50 }
0x2096   :  { %v3431_v53 = vadd.f32 %v6262_v26, %v3430_v52  ;;  %v7107_v44 = vpop.f32.mrb[79].mxu0 }
0x2098   :  { %7113 = vmatmul.mubr.msk.bf16.vlgmr.msra.gmra.mrb[92].mxu1 %vm222_vm2, %v8418_v27 }
0x2099   :  { %7128 = vmatprep.mubr.msk.f32.mxu1 %vm455_vm5, %v3428_v56 }
0x209b   :  { %v3553_v58 = vpop.f32.mrb[80].mxu0 }
0x209c   :  { %v7122_v60 = vpop.f32.mrb[81].mxu0  ;;  %v3554_v29 = vadd.f32 %v6280_v57, %v3553_v58 }
0x209d   :  { %v3556_v23 = vpop.f32.mrb[82].mxu0 }
0x209e   :  { %v3557_v62 = vadd.f32 %v6280_v57, %v3556_v23  ;;  %v7123_v61 = vpop.f32.mrb[83].mxu0 }
0x20a0   :  { %v3674_v63 = vpack.c.bf16 %v3557_v62, %v3554_v29 }
0x2163   :  { %v3362_v0 = vpop.f32.mrb[88].mxu1 }
0x2164   :  { %v8680_v1 = vadd.f32 %v3362_v0, %v8606_v48  ;;  %v7098_v2 = vpop.f32.mrb[89].mxu1  ;;  %v3679_v48 = vsel %vm576_vm7, %v3674_v63, 0 }
0x2165   :  { %v3365_v3 = vpop.f32.mrb[90].mxu1 }
0x2166   :  { %v8683_v27 = vadd.f32 %v3365_v3, %v8608_v59  ;;  %v7099_v4 = vpop.f32.mrb[91].mxu1 }
0x216b   :  { %v3490_v6 = vpop.f32.mrb[92].mxu1 }
0x216c   :  { %v7114_v7 = vpop.f32.mrb[93].mxu1  ;;  %v3491_v9 = vadd.f32 %v6271_v5, %v3490_v6  ;;  %v7316_v6 = vld [vmem:[%s9582_s10 + $0x10] sm:$0xff]  }
0x216d   :  { %v3493_v8 = vpop.f32.mrb[94].mxu1  ;;  %v7317_v7 = vld [vmem:[%s9582_s10 + $0x18] sm:$0xff]  }
0x216e   :  { %v3494_v10 = vadd.f32 %v6271_v5, %v3493_v8  ;;  %v7115_v11 = vpop.f32.mrb[95].mxu1  ;;  %v7320_v8 = vld [vmem:[%s9585_s13 + $0x4] ss:$16 sps:$4 sm:$0xff]  }
0x2170   :  { %v7221_v30 = vpack.c.bf16 %v3494_v10, %v3491_v9  ;;  %v7342_v9 = vld [vmem:[%s9584_s12 + $0x40] sm:$0xff]   ;;  %v7346_v10 = vld [vmem:[%s9584_s12 + $0x48] sm:$0xff]  }
0x2172   :  { %7223 = vmatprep.subr.msk.bf16.mxu1 %vm8038_vm6, %v7221_v30 }
0x2173   :  { %7226 = vmatpush3.bf16.xpose.msk.msra.mxu1 %vm8038_vm6, %v7221_v30 }
0x2174   :  { %7131 = vmatprep.subr.bf16.mxu1 %v7811_v40 }
0x217a   :  { %7129 = vmatmul.mubr.msk.f32.vlgmr.msra.gmra.mrb[96].mxu1 %vm455_vm5, %v3431_v53  ;;  %v6292_v53 = vld [vmem:[%s9578_s6 + $0xa] ss:$0 sm:$0xff] }
0x217b   :  { %7132 = vmatpush3.bf16.msra.mxu1 %v3679_v48  ;;  %7133 = vmatprep.mubr.msk.bf16.mxu1 %vm7812_vm4, %v7811_v40 }
0x217c   :  { %7143 = vmatprep.subr.bf16.mxu1 %v7811_v40 }
0x224d   :  { %v7130_v59 = vpop.f32.mrb[96].mxu1 }
0x224e   :  { %v3648_v13 = vmul.f32 0.35355338, %v7130_v59  ;;  %v3638_v14 = vpop.f32.mrb[97].mxu1 }
0x224f   :  { %v3647_v15 = vmul.f32 0.35355338, %v3638_v14 }
0x2250   :  { %v3650_v16 = vadd.f32 %v8489_v54, %v3648_v13 }
0x2251   :  { %v3649_v12 = vadd.f32 %v8495_v55, %v3647_v15 }
0x2252   :  { %v3654_v17 = vsel %vm551_vm8, %v3650_v16, -inf }
0x2253   :  { %3655 = vmax.xlane.f32.xlu1 %v3654_v17  ;;  %v3651_v18 = vsel %vm547_vm9, %v3649_v12, -inf }
0x2254   :  { %3652 = vmax.xlane.f32.xlu0 %v3651_v18 }
0x22e0   :  { %v3656_v19 = vpop.xlane.xlu1 %3655 }
0x22e1   :  { %v3658_v20 = vsub.f32 %v3650_v16, %v3656_v19  ;;  %v3653_v21 = vpop.xlane.xlu0 %3652  ;;  %v6295_v16 = vld [vmem:[%s9578_s6 + $0xb] ss:$0 sm:$0xff] }
0x22e2   :  { %v3657_v22 = vsub.f32 %v3649_v12, %v3653_v21 }
0x22e3   :  { %v3661_v24 = vmul.f32 1.442695, %v3658_v20  ;;  %v6296_v20 = vld [vmem:[%s9578_s6 + $0xc] ss:$0 sm:$0xff] }
0x22e4   :  { %v3659_v28 = vmul.f32 1.442695, %v3657_v22 }
0x22e5   :  { %7720 = vpow2.f32 %v3661_v24 }
0x22e6   :  { %7722 = vpow2.f32 %v3659_v28  ;;  %v7318_v28 = vld [vmem:[%s9585_s13] ss:$16 sps:$4 sm:$0xff]  }
0x22ef   :  { %v7721_v31 = vpop.eup %7720 }
0x22f0   :  { %v7723_v32 = vpop.eup %7722  ;;  %v3666_v54 = vsel %vm551_vm8, %v7721_v31, 0.0 }
0x22f1   :  { %3667 = vadd.xlane.f32.xlu1 %v3666_v54  ;;  %v3663_v55 = vsel %vm547_vm9, %v7723_v32, 0.0  ;;  %v7321_v54 = vld [vmem:[%s9585_s13 + $0x20] ss:$16 sps:$4 sm:$0xff]  }
0x22f2   :  { %3664 = vadd.xlane.f32.xlu0 %v3663_v55  ;;  %v7326_v55 = vld [vmem:[%s9585_s13 + $0x44] ss:$16 sps:$4 sm:$0xff]  }
0x237e   :  { %v3668_v35 = vpop.xlane.xlu1 %3667 }
0x237f   :  { %7724 = vrcp.f32 %v3668_v35  ;;  %v3665_v36 = vpop.xlane.xlu0 %3664  ;;  %v7327_v35 = vld [vmem:[%s9585_s13 + $0x60] ss:$16 sps:$4 sm:$0xff]  }
0x2380   :  { %7726 = vrcp.f32 %v3665_v36  ;;  %v7332_v36 = vld [vmem:[%s9585_s13 + $0x84] ss:$16 sps:$4 sm:$0xff]  }
0x2389   :  { %v7725_v37 = vpop.eup %7724 }
0x238a   :  { %v7727_v38 = vpop.eup %7726  ;;  %v3672_v39 = vmul.f32 %v7725_v37, %v7721_v31  ;;  %v7330_v37 = vld [vmem:[%s9585_s13 + $0x80] ss:$16 sps:$4 sm:$0xff]  }
0x238b   :  { %v3671_v41 = vmul.f32 %v7727_v38, %v7723_v32  ;;  %v7323_v32 = vld [vmem:[%s9585_s13 + $0x24] ss:$16 sps:$4 sm:$0xff]  }
0x238c   :  { %v7335_v38 = vld [vmem:[%s9585_s13 + $0xa4] ss:$16 sps:$4 sm:$0xff]  }
0x238d   :  { %v3673_v43 = vpack.c.bf16 %v3672_v39, %v3671_v41  ;;  %v7333_v39 = vld [vmem:[%s9585_s13 + $0xa0] ss:$16 sps:$4 sm:$0xff]   ;;  %v7338_v41 = vld [vmem:[%s9585_s13 + $0xc4] ss:$16 sps:$4 sm:$0xff]  }
0x238f   :  { %7134 = vmatmul.mubr.msk.bf16.vlgmr.msra.gmra.mrb[100].mxu1 %vm547_vm9, %v3673_v43  ;;  %v7336_v43 = vld [vmem:[%s9585_s13 + $0xc0] ss:$16 sps:$4 sm:$0xff]  }
0x2390   :  { %7147 = vmatprep.mubr.msk.bf16.mxu1 %vm7812_vm4, %v7811_v40  ;;  %7144 = vmatpush3.bf16.msra.mxu1 %v7316_v6 }
0x2391   :  { %7145 = vmatprep.subr.bf16.mxu1 %v7811_v40 }
0x2394   :  { %7146 = vmatpush3.bf16.msra.mxu1 %v7317_v7 }
0x2395   :  { %4462 = vmatprep.subr.bf16.mxu1 %v7320_v8  ;;  %v7422_v8 = vld [vmem:[%s9586_s14] ss:$16 sps:$4 sm:$0xff]  }
0x2462   :  { %v3715_v45 = vpop.f32.mrb[100].mxu1 }
0x2463   :  { %v7135_v46 = vpop.f32.mrb[101].mxu1 }
0x2464   :  { %v3718_v25 = vpop.f32.mrb[102].mxu1  ;;  %v7339_v46 = vld [vmem:[%s9585_s13 + $0xe0] ss:$16 sps:$4 sm:$0xff]  }
0x2465   :  { %v3722_v50 = vpack.c.bf16 %v3718_v25, %v3715_v45  ;;  %v7136_v51 = vpop.f32.mrb[103].mxu1  ;;  %v7341_v45 = vld [vmem:[%s9585_s13 + $0xe4] ss:$16 sps:$4 sm:$0xff]  }
0x2466   :  { %v7345_v25 = vld [vmem:[%s9585_s13 + $0x104] ss:$16 sps:$4 sm:$0xff]  }
0x2467   :  { %7140 = vmatmul.mubr.msk.bf16.vlgmr.msra.gmra.mrb[84].mxu0 %vm455_vm5, %v3722_v50  ;;  %v7343_v50 = vld [vmem:[%s9585_s13 + $0x100] ss:$16 sps:$4 sm:$0xff]   ;;  %v7349_v51 = vld [vmem:[%s9585_s13 + $0x124] ss:$16 sps:$4 sm:$0xff]  }
0x2468   :  { %7167 = vmatprep.mubr.msk.bf16.mxu0 %vm7812_vm4, %v7811_v40  ;;  %7152 = vmatpush3.bf16.msra.mxu0 %v7342_v9  ;;  %v7424_v9 = vld [vmem:[%s9586_s14 + $0x4] ss:$16 sps:$4 sm:$0xff]  }
0x2469   :  { %7153 = vmatprep.subr.bf16.mxu0 %v7811_v40 }
0x246c   :  { %7154 = vmatpush3.bf16.msra.mxu0 %v7346_v10  ;;  %v7430_v10 = vld [vmem:[%s9586_s14 + $0x24] ss:$16 sps:$4 sm:$0xff]  }
0x246d   :  { %7155 = vmatprep.subr.bf16.mxu0 %v7811_v40 }
0x253a   :  { %v3765_v26 = vpop.f32.mrb[84].mxu0 }
0x253b   :  { %v3772_v42 = vadd.f32 %v3765_v26, %v8680_v1  ;;  %v7141_v52 = vpop.f32.mrb[85].mxu0  ;;  %v7347_v26 = vld [vmem:[%s9585_s13 + $0x120] ss:$16 sps:$4 sm:$0xff]  }
0x253c   :  { %v3768_v44 = vpop.f32.mrb[86].mxu0  ;;  %v7353_v52 = vld [vmem:[%s9585_s13 + $0x144] ss:$16 sps:$4 sm:$0xff]  }
0x253d   :  { %v3774_v56 = vadd.f32 %v3772_v42, %v8388_v47  ;;  %v3773_v57 = vadd.f32 %v3768_v44, %v8683_v27  ;;  %v7142_v58 = vpop.f32.mrb[87].mxu0  ;;  %v7350_v42 = vld [vmem:[%s9584_s12 + $0x50] sm:$0xff]   ;;  %v7354_v44 = vld [vmem:[%s9584_s12 + $0x58] sm:$0xff]  }
0x253e   :  { %7156 = vmatpush3.bf16.msra.mxu0 %v7350_v42  ;;  %v7358_v58 = vld [vmem:[%s9584_s12 + $0x60] sm:$0xff]  }
0x253f   :  { %v8721_v60 = vadd.f32 %v6292_v53, %v3774_v56  ;;  %v3775_v23 = vadd.f32 %v3773_v57, %v8391_v49  ;;  %7157 = vmatprep.subr.bf16.mxu0 %v7811_v40  ;;  %v7357_v56 = vld [vmem:[%s9585_s13 + $0x164] ss:$16 sps:$4 sm:$0xff]   ;;  %v7355_v57 = vld [vmem:[%s9585_s13 + $0x160] ss:$16 sps:$4 sm:$0xff]  }
0x2541   :  { %v3785_v29 = vsel %vm222_vm2, %v8721_v60, 0.0  ;;  %v3782_v62 = vadd.f32 %v6292_v53, %v3775_v23  ;;  %v7351_v53 = vld [vmem:[%s9585_s13 + $0x140] ss:$16 sps:$4 sm:$0xff]   ;;  %v7361_v23 = vld [vmem:[%s9585_s13 + $0x184] ss:$16 sps:$4 sm:$0xff]  }
0x2542   :  { %3786 = vadd.xlane.f32.xlu0 %v3785_v29  ;;  %7158 = vmatpush3.bf16.msra.mxu0 %v7354_v44  ;;  %v7359_v29 = vld [vmem:[%s9585_s13 + $0x180] ss:$16 sps:$4 sm:$0xff]  }
0x2543   :  { %v3788_v61 = vsel %vm226_vm3, %v3782_v62, 0.0  ;;  %7159 = vmatprep.subr.bf16.mxu0 %v7811_v40 }
0x2544   :  { %3789 = vadd.xlane.f32.xlu1 %v3788_v61  ;;  %v7365_v61 = vld [vmem:[%s9585_s13 + $0x1a4] ss:$16 sps:$4 sm:$0xff]  }
0x2546   :  { %7160 = vmatpush3.bf16.msra.mxu0 %v7358_v58  ;;  %v7374_v58 = vld [vmem:[%s9585_s13 + $0x8] ss:$16 sps:$4 sm:$0xff]  }
0x2547   :  { %7161 = vmatprep.subr.bf16.mxu0 %v7811_v40 }
0x25cf   :  { %v3787_v63 = vpop.xlane.xlu0 %3786 }
0x25d0   :  { %v3791_v0 = vmul.f32 0.03125, %v3787_v63  ;;  %v7363_v63 = vld [vmem:[%s9585_s13 + $0x1a0] ss:$16 sps:$4 sm:$0xff]  }
0x25d1   :  { %v3790_v1 = vpop.xlane.xlu1 %3789 }
0x25d2   :  { %v3793_v47 = vsub.f32 %v8721_v60, %v3791_v0  ;;  %v3792_v2 = vmul.f32 0.03125, %v3790_v1  ;;  %v7366_v0 = vld [vmem:[%s9584_s12 + $0x70] sm:$0xff]  }
0x25d3   :  { %v7369_v1 = vld [vmem:[%s9585_s13 + $0x1c4] ss:$16 sps:$4 sm:$0xff]  }
0x25d4   :  { %v3794_v3 = vsub.f32 %v3782_v62, %v3792_v2  ;;  %v3795_v27 = vmul.f32 %v3793_v47, %v3793_v47  ;;  %v7362_v62 = vld [vmem:[%s9584_s12 + $0x68] sm:$0xff]   ;;  %v7370_v2 = vld [vmem:[%s9584_s12 + $0x78] sm:$0xff]  }
0x25d5   :  { %7162 = vmatpush3.bf16.msra.mxu0 %v7362_v62  ;;  %v7377_v62 = vld [vmem:[%s9585_s13 + $0x28] ss:$16 sps:$4 sm:$0xff]  }
0x25d6   :  { %v3797_v4 = vsel %vm222_vm2, %v3795_v27, 0.0  ;;  %v3796_v5 = vmul.f32 %v3794_v3, %v3794_v3  ;;  %7163 = vmatprep.subr.bf16.mxu0 %v7811_v40  ;;  %v7371_v27 = vld [vmem:[%s9585_s13 + $0x1e0] ss:$16 sps:$4 sm:$0xff]  }
0x25d7   :  { %3798 = vadd.xlane.f32.xlu0 %v3797_v4  ;;  %v6334_v4 = vld.sshfl [vmem:[%s9608_s26] sm:$0x33 pattern:$0x76325410] }
0x25d8   :  { %v3800_v49 = vsel %vm226_vm3, %v3796_v5, 0.0  ;;  %v4051_v5 = vcombine.high %v6334_v4, %v6334_v4  ;;  %v8877_v6 = vpack.c.bf16 %v6334_v4, %v6334_v4  ;;  %v7394_v4 = vld [vmem:[%s9585_s13 + $0xcc] ss:$16 sps:$4 sm:$0xff]  }
0x25d9   :  { %3801 = vadd.xlane.f32.xlu1 %v3800_v49  ;;  %7164 = vmatpush3.bf16.msra.mxu0 %v7366_v0  ;;  %v7376_v49 = vld [vmem:[%s9585_s13 + $0xc] ss:$16 sps:$4 sm:$0xff]  }
0x25da   :  { %7165 = vmatprep.subr.bf16.mxu0 %v7811_v40  ;;  %v8879_v7 = vpack.c.bf16 %v4051_v5, %v4051_v5  ;;  %v7385_v0 = vld [vmem:[%s9585_s13 + $0x6c] ss:$16 sps:$4 sm:$0xff]   ;;  %v7392_v5 = vld [vmem:[%s9585_s13 + $0xc8] ss:$16 sps:$4 sm:$0xff]  }
0x25dd   :  { %7166 = vmatpush3.bf16.msra.mxu0 %v7370_v2  ;;  %v7386_v2 = vld [vmem:[%s9585_s13 + $0x88] ss:$16 sps:$4 sm:$0xff]  }
0x25de   :  { %4503 = vmatprep.subr.bf16.mxu0 %v7376_v49  ;;  %v7397_v49 = vld [vmem:[%s9585_s13 + $0xec] ss:$16 sps:$4 sm:$0xff]  }
0x2664   :  { %v3799_v11 = vpop.xlane.xlu0 %3798 }
0x2665   :  { %v3803_v30 = vmul.f32 0.03125, %v3799_v11  ;;  %v7428_v11 = vld [vmem:[%s9586_s14 + $0x20] ss:$16 sps:$4 sm:$0xff]  }
0x2666   :  { %v3802_v48 = vpop.xlane.xlu1 %3801 }
0x2667   :  { %v3805_v59 = vadd.f32 1e-06, %v3803_v30  ;;  %v3804_v13 = vmul.f32 0.03125, %v3802_v48  ;;  %v7436_v30 = vld [vmem:[%s9586_s14 + $0x44] ss:$16 sps:$4 sm:$0xff]  }
0x2668   :  { %v7434_v48 = vld [vmem:[%s9586_s14 + $0x40] ss:$16 sps:$4 sm:$0xff]  }
0x2669   :  { %7728 = vrsqrt.f32 %v3805_v59  ;;  %v3806_v14 = vadd.f32 1e-06, %v3804_v13  ;;  %v7442_v59 = vld [vmem:[%s9586_s14 + $0x64] ss:$16 sps:$4 sm:$0xff]   ;;  %v7440_v13 = vld [vmem:[%s9586_s14 + $0x60] ss:$16 sps:$4 sm:$0xff]  }
0x266b   :  { %7730 = vrsqrt.f32 %v3806_v14  ;;  %v7448_v14 = vld [vmem:[%s9586_s14 + $0x84] ss:$16 sps:$4 sm:$0xff]  }
0x2673   :  { %v7729_v15 = vpop.eup %7728 }
0x2674   :  { %v3809_v12 = vmul.f32 %v7729_v15, %v3793_v47  ;;  %v7367_v47 = vld [vmem:[%s9585_s13 + $0x1c0] ss:$16 sps:$4 sm:$0xff]  }
0x2675   :  { %v7731_v17 = vpop.eup %7730  ;;  %v7446_v15 = vld [vmem:[%s9586_s14 + $0x80] ss:$16 sps:$4 sm:$0xff]  }
0x2676   :  { %v3815_v18 = vmul.f32 %v6295_v16, %v3809_v12  ;;  %v3810_v19 = vmul.f32 %v7731_v17, %v3794_v3  ;;  %v7373_v3 = vld [vmem:[%s9585_s13 + $0x1e4] ss:$16 sps:$4 sm:$0xff]   ;;  %v7452_v12 = vld [vmem:[%s9586_s14 + $0xa0] ss:$16 sps:$4 sm:$0xff]  }
0x2677   :  { %v7460_v17 = vld [vmem:[%s9586_s14 + $0xc4] ss:$16 sps:$4 sm:$0xff]  }
0x2678   :  { %v3816_v21 = vmul.f32 %v6295_v16, %v3810_v19  ;;  %v3821_v22 = vadd.f32 %v6296_v20, %v3815_v18  ;;  %v7454_v16 = vld [vmem:[%s9586_s14 + $0xa4] ss:$16 sps:$4 sm:$0xff]   ;;  %v7458_v18 = vld [vmem:[%s9586_s14 + $0xc0] ss:$16 sps:$4 sm:$0xff]  }
0x2679   :  { %v7466_v19 = vld [vmem:[%s9586_s14 + $0xe4] ss:$16 sps:$4 sm:$0xff]  }
0x267a   :  { %v3822_v24 = vadd.f32 %v6296_v20, %v3816_v21  ;;  %v7464_v20 = vld [vmem:[%s9586_s14 + $0xe0] ss:$16 sps:$4 sm:$0xff]   ;;  %v7472_v21 = vld [vmem:[%s9586_s14 + $0x104] ss:$16 sps:$4 sm:$0xff]  }
0x267c   :  { %v3823_v31 = vpack.c.bf16 %v3822_v24, %v3821_v22  ;;  %v7470_v22 = vld [vmem:[%s9586_s14 + $0x100] ss:$16 sps:$4 sm:$0xff]   ;;  %v7478_v24 = vld [vmem:[%s9586_s14 + $0x124] ss:$16 sps:$4 sm:$0xff]  }
0x267e   :  { %7148 = vmatmul.mubr.msk.bf16.vlgmr.msra.gmra.mrb[104].mxu1 %vm222_vm2, %v3823_v31  ;;  %v7484_v31 = vld [vmem:[%s9586_s14 + $0x144] ss:$16 sps:$4 sm:$0xff]  }
0x267f   :  { %4463 = vmatpush1.bf16.msra.mxu1 %v7318_v28  ;;  %4494 = vmatprep.mubr.bf16.mxu1 %v8879_v7  ;;  %v7476_v28 = vld [vmem:[%s9586_s14 + $0x120] ss:$16 sps:$4 sm:$0xff]  }
0x2680   :  { %4464 = vmatprep.subr.bf16.mxu1 %v7323_v32  ;;  %v6302_v32 = vld [vmem:[%s9583_s11 + $0x1] ss:$0 sm:$0xff] }
0x2683   :  { %4465 = vmatpush1.bf16.msra.mxu1 %v7321_v54  ;;  %v7482_v54 = vld [vmem:[%s9586_s14 + $0x140] ss:$16 sps:$4 sm:$0xff]  }
0x2684   :  { %4466 = vmatprep.subr.bf16.mxu1 %v7326_v55 }
0x2687   :  { %4467 = vmatpush1.bf16.msra.mxu1 %v7324_v33 }
0x2688   :  { %4468 = vmatprep.subr.bf16.mxu1 %v7329_v34 }
0x268b   :  { %4469 = vmatpush1.bf16.msra.mxu1 %v7327_v35  ;;  %v7490_v35 = vld [vmem:[%s9586_s14 + $0x164] ss:$16 sps:$4 sm:$0xff]  }
0x268c   :  { %4470 = vmatprep.subr.bf16.mxu1 %v7332_v36 }
0x268f   :  { %4471 = vmatpush1.bf16.msra.mxu1 %v7330_v37 }
0x2690   :  { %4472 = vmatprep.subr.bf16.mxu1 %v7335_v38 }
0x2693   :  { %4473 = vmatpush1.bf16.msra.mxu1 %v7333_v39 }
0x2694   :  { %4474 = vmatprep.subr.bf16.mxu1 %v7338_v41  ;;  %v7488_v41 = vld [vmem:[%s9586_s14 + $0x160] ss:$16 sps:$4 sm:$0xff]  }
0x2697   :  { %4475 = vmatpush1.bf16.msra.mxu1 %v7336_v43 }
0x2698   :  { %4476 = vmatprep.subr.bf16.mxu1 %v7341_v45  ;;  %v7496_v45 = vld [vmem:[%s9586_s14 + $0x184] ss:$16 sps:$4 sm:$0xff]  }
0x269b   :  { %4477 = vmatpush1.bf16.msra.mxu1 %v7339_v46  ;;  %v7494_v46 = vld [vmem:[%s9586_s14 + $0x180] ss:$16 sps:$4 sm:$0xff]  }
0x269c   :  { %4478 = vmatprep.subr.bf16.mxu1 %v7345_v25  ;;  %v7502_v25 = vld [vmem:[%s9586_s14 + $0x1a4] ss:$16 sps:$4 sm:$0xff]  }
0x269f   :  { %4479 = vmatpush1.bf16.msra.mxu1 %v7343_v50  ;;  %v7500_v50 = vld [vmem:[%s9586_s14 + $0x1a0] ss:$16 sps:$4 sm:$0xff]  }
0x26a0   :  { %4480 = vmatprep.subr.bf16.mxu1 %v7349_v51 }
0x26a3   :  { %4481 = vmatpush1.bf16.msra.mxu1 %v7347_v26 }
0x26a4   :  { %4482 = vmatprep.subr.bf16.mxu1 %v7353_v52 }
0x26a7   :  { %4483 = vmatpush1.bf16.msra.mxu1 %v7351_v53 }
0x26a8   :  { %4484 = vmatprep.subr.bf16.mxu1 %v7357_v56 }
0x26ab   :  { %4485 = vmatpush1.bf16.msra.mxu1 %v7355_v57 }
0x26ac   :  { %4486 = vmatprep.subr.bf16.mxu1 %v7361_v23 }
0x26af   :  { %4487 = vmatpush1.bf16.msra.mxu1 %v7359_v29  ;;  %v7379_v29 = vld [vmem:[%s9585_s13 + $0x2c] ss:$16 sps:$4 sm:$0xff]  }
0x26b0   :  { %4488 = vmatprep.subr.bf16.mxu1 %v7365_v61  ;;  %v7382_v61 = vld [vmem:[%s9585_s13 + $0x4c] ss:$16 sps:$4 sm:$0xff]  }
0x26b3   :  { %4489 = vmatpush1.bf16.msra.mxu1 %v7363_v63  ;;  %v7380_v63 = vld [vmem:[%s9585_s13 + $0x48] ss:$16 sps:$4 sm:$0xff]  }
0x26b4   :  { %4490 = vmatprep.subr.bf16.mxu1 %v7369_v1  ;;  %v7383_v1 = vld [vmem:[%s9585_s13 + $0x68] ss:$16 sps:$4 sm:$0xff]  }
0x26b7   :  { %4491 = vmatpush1.bf16.msra.mxu1 %v7367_v47  ;;  %v7388_v47 = vld [vmem:[%s9585_s13 + $0x8c] ss:$16 sps:$4 sm:$0xff]  }
0x26b8   :  { %4492 = vmatprep.subr.bf16.mxu1 %v7373_v3  ;;  %v7391_v3 = vld [vmem:[%s9585_s13 + $0xac] ss:$16 sps:$4 sm:$0xff]  }
0x26bb   :  { %4493 = vmatpush1.bf16.msra.mxu1 %v7371_v27  ;;  %v7389_v27 = vld [vmem:[%s9585_s13 + $0xa8] ss:$16 sps:$4 sm:$0xff]  }
0x26bc   :  { %5351 = vmatprep.subr.bf16.mxu1 %v7424_v9  ;;  %v7398_v9 = vld [vmem:[%s9585_s13 + $0x108] ss:$16 sps:$4 sm:$0xff]  }
0x26be   :  { %4495 = vmatmul.mubr.bf16.vlgmr.msra.gmra.mrb[108].mxu1 %v8877_v6 }
0x26bf   :  { %5352 = vmatpush1.bf16.msra.mxu1 %v7422_v8  ;;  %v7400_v8 = vld [vmem:[%s9585_s13 + $0x10c] ss:$16 sps:$4 sm:$0xff]  }
0x26c0   :  { %5353 = vmatprep.subr.bf16.mxu1 %v7430_v10  ;;  %v7403_v10 = vld [vmem:[%s9585_s13 + $0x12c] ss:$16 sps:$4 sm:$0xff]  }
0x26c3   :  { %5354 = vmatpush1.bf16.msra.mxu1 %v7428_v11  ;;  %v7401_v11 = vld [vmem:[%s9585_s13 + $0x128] ss:$16 sps:$4 sm:$0xff]  }
0x26c4   :  { %5355 = vmatprep.subr.bf16.mxu1 %v7436_v30  ;;  %v7406_v30 = vld [vmem:[%s9585_s13 + $0x14c] ss:$16 sps:$4 sm:$0xff]  }
0x26c7   :  { %5356 = vmatpush1.bf16.msra.mxu1 %v7434_v48  ;;  %v7404_v48 = vld [vmem:[%s9585_s13 + $0x148] ss:$16 sps:$4 sm:$0xff]  }
0x26c8   :  { %5357 = vmatprep.subr.bf16.mxu1 %v7442_v59  ;;  %v7409_v59 = vld [vmem:[%s9585_s13 + $0x16c] ss:$16 sps:$4 sm:$0xff]  }
0x26cb   :  { %5358 = vmatpush1.bf16.msra.mxu1 %v7440_v13  ;;  %v7407_v13 = vld [vmem:[%s9585_s13 + $0x168] ss:$16 sps:$4 sm:$0xff]  }
0x26cc   :  { %5359 = vmatprep.subr.bf16.mxu1 %v7448_v14  ;;  %v7412_v14 = vld [vmem:[%s9585_s13 + $0x18c] ss:$16 sps:$4 sm:$0xff]  }
0x26cf   :  { %5360 = vmatpush1.bf16.msra.mxu1 %v7446_v15  ;;  %v7410_v15 = vld [vmem:[%s9585_s13 + $0x188] ss:$16 sps:$4 sm:$0xff]  }
0x26d0   :  { %5361 = vmatprep.subr.bf16.mxu1 %v7454_v16  ;;  %v7415_v16 = vld [vmem:[%s9585_s13 + $0x1ac] ss:$16 sps:$4 sm:$0xff]  }
0x26d3   :  { %5362 = vmatpush1.bf16.msra.mxu1 %v7452_v12  ;;  %v7413_v12 = vld [vmem:[%s9585_s13 + $0x1a8] ss:$16 sps:$4 sm:$0xff]  }
0x26d4   :  { %5363 = vmatprep.subr.bf16.mxu1 %v7460_v17  ;;  %v7418_v17 = vld [vmem:[%s9585_s13 + $0x1cc] ss:$16 sps:$4 sm:$0xff]  }
0x26d7   :  { %5364 = vmatpush1.bf16.msra.mxu1 %v7458_v18  ;;  %v7416_v18 = vld [vmem:[%s9585_s13 + $0x1c8] ss:$16 sps:$4 sm:$0xff]  }
0x26d8   :  { %5365 = vmatprep.subr.bf16.mxu1 %v7466_v19  ;;  %v7421_v19 = vld [vmem:[%s9585_s13 + $0x1ec] ss:$16 sps:$4 sm:$0xff]  }
0x26db   :  { %5366 = vmatpush1.bf16.msra.mxu1 %v7464_v20  ;;  %v7419_v20 = vld [vmem:[%s9585_s13 + $0x1e8] ss:$16 sps:$4 sm:$0xff]  }
0x26dc   :  { %5367 = vmatprep.subr.bf16.mxu1 %v7472_v21  ;;  %v7427_v21 = vld [vmem:[%s9586_s14 + $0xc] ss:$16 sps:$4 sm:$0xff]  }
0x26df   :  { %5368 = vmatpush1.bf16.msra.mxu1 %v7470_v22  ;;  %v7425_v22 = vld [vmem:[%s9586_s14 + $0x8] ss:$16 sps:$4 sm:$0xff]  }
0x26e0   :  { %5369 = vmatprep.subr.bf16.mxu1 %v7478_v24  ;;  %v7433_v24 = vld [vmem:[%s9586_s14 + $0x2c] ss:$16 sps:$4 sm:$0xff]  }
0x26e3   :  { %5370 = vmatpush1.bf16.msra.mxu1 %v7476_v28  ;;  %v7431_v28 = vld [vmem:[%s9586_s14 + $0x28] ss:$16 sps:$4 sm:$0xff]  }
0x26e4   :  { %5371 = vmatprep.subr.bf16.mxu1 %v7484_v31  ;;  %v7439_v31 = vld [vmem:[%s9586_s14 + $0x4c] ss:$16 sps:$4 sm:$0xff]  }
0x26e7   :  { %5372 = vmatpush1.bf16.msra.mxu1 %v7482_v54  ;;  %v7443_v54 = vld [vmem:[%s9586_s14 + $0x68] ss:$16 sps:$4 sm:$0xff]  }
0x26e8   :  { %5373 = vmatprep.subr.bf16.mxu1 %v7490_v35  ;;  %v4122_v35 = vlaneseq }
0x26eb   :  { %5374 = vmatpush1.bf16.msra.mxu1 %v7488_v41  ;;  %v9110_v41 = vld [vmem:[%s9587_s15] ss:$2 sm:$0xf] }
0x26ec   :  { %5375 = vmatprep.subr.bf16.mxu1 %v7496_v45  ;;  %v7508_v45 = vld [vmem:[%s9586_s14 + $0x1c4] ss:$16 sps:$4 sm:$0xff]  }
0x26ef   :  { %5376 = vmatpush1.bf16.msra.mxu1 %v7494_v46 }
0x26f0   :  { %5377 = vmatprep.subr.bf16.mxu1 %v7502_v25 }
0x26f3   :  { %5378 = vmatpush1.bf16.msra.mxu1 %v7500_v50  ;;  %v7506_v50 = vld [vmem:[%s9586_s14 + $0x1c0] ss:$16 sps:$4 sm:$0xff]  }
0x26f4   :  { %5379 = vmatprep.subr.bf16.mxu1 %v7508_v45  ;;  %v7529_v45 = vld [vmem:[%s9586_s14 + $0x22c] ss:$16 sps:$4 sm:$0xff]  }
0x26f7   :  { %5380 = vmatpush1.bf16.msra.mxu1 %v7506_v50  ;;  %v7580_v50 = vld [vmem:[%s9586_s14 + $0x344] ss:$16 sps:$4 sm:$0xff]  }
0x2751   :  { %v3886_v55 = vpop.f32.mrb[104].mxu1 }
0x2752   :  { %v3887_v33 = vadd.f32 %v6302_v32, %v3886_v55  ;;  %v7149_v34 = vpop.f32.mrb[105].mxu1  ;;  %v7451_v55 = vld [vmem:[%s9586_s14 + $0x8c] ss:$16 sps:$4 sm:$0xff]  }
0x2753   :  { %v3889_v36 = vpop.f32.mrb[106].mxu1  ;;  %v7457_v34 = vld [vmem:[%s9586_s14 + $0xac] ss:$16 sps:$4 sm:$0xff]  }
0x2754   :  { %v3895_v37 = vmul.f32 0.70710677, %v3887_v33  ;;  %v3890_v38 = vadd.f32 %v6302_v32, %v3889_v36  ;;  %v7150_v39 = vpop.f32.mrb[107].mxu1  ;;  %v3893_v52 = vmul.f32 0.5, %v3887_v33  ;;  %v7437_v32 = vld [vmem:[%s9586_s14 + $0x48] ss:$16 sps:$4 sm:$0xff]  }
0x2755   :  { %v7449_v33 = vld [vmem:[%s9586_s14 + $0x88] ss:$16 sps:$4 sm:$0xff]   ;;  %v9098_v36 = vshrl.u32 %v4122_v35, 7  ;;  %v7566_v35 = vld [vmem:[%s9586_s14 + $0x300] ss:$16 sps:$4 sm:$0xff]  }
0x2756   :  { %7732 = verf.f32 %v3895_v37  ;;  %v3896_v43 = vmul.f32 0.70710677, %v3890_v38  ;;  %v3894_v53 = vmul.f32 0.5, %v3890_v38  ;;  %v7455_v37 = vld [vmem:[%s9586_s14 + $0xa8] ss:$16 sps:$4 sm:$0xff]  }
0x2757   :  { %v7463_v38 = vld [vmem:[%s9586_s14 + $0xcc] ss:$16 sps:$4 sm:$0xff]   ;;  %v4128_v39 = vsub.s32 1, %v9098_v36 }
0x2758   :  { %7734 = verf.f32 %v3896_v43  ;;  %v4124_v43 = vsub.s32 0, %v9098_v36 }
0x2759   :  { %v4129_v25 = vrot.slane %v9110_v41, %v4128_v39 }
0x2760   :  { %v7733_v51 = vpop.eup %7732 }
0x2761   :  { %v3899_v26 = vadd.f32 1.0, %v7733_v51  ;;  %v7461_v51 = vld [vmem:[%s9586_s14 + $0xc8] ss:$16 sps:$4 sm:$0xff]  }
0x2762   :  { %v7735_v42 = vpop.eup %7734 }
0x2763   :  { %v3900_v44 = vadd.f32 1.0, %v7735_v42  ;;  %v3901_v56 = vmul.f32 %v3899_v26, %v3893_v52  ;;  %v4125_v26 = vrot.slane %v9110_v41, %v4124_v43  ;;  %v7469_v52 = vld [vmem:[%s9586_s14 + $0xec] ss:$16 sps:$4 sm:$0xff]  }
0x2765   :  { %v3902_v57 = vmul.f32 %v3900_v44, %v3894_v53  ;;  %v7512_v44 = vld [vmem:[%s9586_s14 + $0x1e0] ss:$16 sps:$4 sm:$0xff]  }
0x2767   :  { %v3903_v23 = vpack.c.bf16 %v3902_v57, %v3901_v56  ;;  %v7514_v56 = vld [vmem:[%s9586_s14 + $0x1e4] ss:$16 sps:$4 sm:$0xff]  }
0x2768   :  { %5381 = vmatprep.subr.bf16.mxu1 %v7514_v56  ;;  %v7539_v56 = vld [vmem:[%s9586_s14 + $0x268] ss:$16 sps:$4 sm:$0xff]  }
0x2769   :  { %7168 = vmatmul.mubr.bf16.vlgmr.msra.gmra.mrb[88].mxu0 %v3903_v23  ;;  %5382 = vmatpush1.bf16.msra.mxu1 %v7512_v44  ;;  %v7584_v44 = vld [vmem:[%s9586_s14 + $0x360] ss:$16 sps:$4 sm:$0xff]  }
0x276a   :  { %4504 = vmatpush1.bf16.msra.mxu0 %v7374_v58  ;;  %4535 = vmatprep.mubr.bf16.mxu0 %v8879_v7  ;;  %v7395_v7 = vld [vmem:[%s9585_s13 + $0xe8] ss:$16 sps:$4 sm:$0xff]  }
0x276b   :  { %4505 = vmatprep.subr.bf16.mxu0 %v7379_v29 }
0x276e   :  { %4506 = vmatpush1.bf16.msra.mxu0 %v7377_v62  ;;  %v7467_v62 = vld [vmem:[%s9586_s14 + $0xe8] ss:$16 sps:$4 sm:$0xff]  }
0x276f   :  { %4507 = vmatprep.subr.bf16.mxu0 %v7382_v61 }
0x2772   :  { %4508 = vmatpush1.bf16.msra.mxu0 %v7380_v63  ;;  %v7475_v63 = vld [vmem:[%s9586_s14 + $0x10c] ss:$16 sps:$4 sm:$0xff]  }
0x2773   :  { %4509 = vmatprep.subr.bf16.mxu0 %v7385_v0 }
0x2776   :  { %4510 = vmatpush1.bf16.msra.mxu0 %v7383_v1  ;;  %v7520_v1 = vld [vmem:[%s9586_s14 + $0x204] ss:$16 sps:$4 sm:$0xff]  }
0x2777   :  { %4511 = vmatprep.subr.bf16.mxu0 %v7388_v47  ;;  %5392 = vmatprep.subr.bf16.mxu1 %v7520_v1  ;;  %v7559_v1 = vld [vmem:[%s9586_s14 + $0x2cc] ss:$16 sps:$4 sm:$0xff]  }
0x277a   :  { %4512 = vmatpush1.bf16.msra.mxu0 %v7386_v2 }
0x277b   :  { %4513 = vmatprep.subr.bf16.mxu0 %v7391_v3 }
0x277e   :  { %4514 = vmatpush1.bf16.msra.mxu0 %v7389_v27  ;;  %v7518_v27 = vld [vmem:[%s9586_s14 + $0x200] ss:$16 sps:$4 sm:$0xff]  }
0x277f   :  { %4515 = vmatprep.subr.bf16.mxu0 %v7394_v4  ;;  %v7473_v4 = vld [vmem:[%s9586_s14 + $0x108] ss:$16 sps:$4 sm:$0xff]  }
0x2782   :  { %4516 = vmatpush1.bf16.msra.mxu0 %v7392_v5  ;;  %v7526_v5 = vld [vmem:[%s9586_s14 + $0x224] ss:$16 sps:$4 sm:$0xff]  }
0x2783   :  { %4517 = vmatprep.subr.bf16.mxu0 %v7397_v49  ;;  %v7481_v49 = vld [vmem:[%s9586_s14 + $0x12c] ss:$16 sps:$4 sm:$0xff]  }
0x2786   :  { %4518 = vmatpush1.bf16.msra.mxu0 %v7395_v7  ;;  %v7524_v7 = vld [vmem:[%s9586_s14 + $0x220] ss:$16 sps:$4 sm:$0xff]  }
0x2787   :  { %4519 = vmatprep.subr.bf16.mxu0 %v7400_v8  ;;  %v7479_v8 = vld [vmem:[%s9586_s14 + $0x128] ss:$16 sps:$4 sm:$0xff]  }
0x278a   :  { %4520 = vmatpush1.bf16.msra.mxu0 %v7398_v9  ;;  %v7532_v9 = vld [vmem:[%s9586_s14 + $0x244] ss:$16 sps:$4 sm:$0xff]  }
0x278b   :  { %4521 = vmatprep.subr.bf16.mxu0 %v7403_v10  ;;  %v7487_v10 = vld [vmem:[%s9586_s14 + $0x14c] ss:$16 sps:$4 sm:$0xff]  }
0x278e   :  { %4522 = vmatpush1.bf16.msra.mxu0 %v7401_v11  ;;  %v7530_v11 = vld [vmem:[%s9586_s14 + $0x240] ss:$16 sps:$4 sm:$0xff]  }
0x278f   :  { %4523 = vmatprep.subr.bf16.mxu0 %v7406_v30  ;;  %v7485_v30 = vld [vmem:[%s9586_s14 + $0x148] ss:$16 sps:$4 sm:$0xff]  }
0x2791   :  { %v4496_v46 = vpop.f32.mrb[108].mxu1 }
0x2792   :  { %4524 = vmatpush1.bf16.msra.mxu0 %v7404_v48  ;;  %v4498_v42 = vpop.f32.mrb[109].mxu1  ;;  %v4497_v57 = vadd.f32 %v4496_v46, %v4125_v26  ;;  %v7538_v48 = vld [vmem:[%s9586_s14 + $0x264] ss:$16 sps:$4 sm:$0xff]   ;;  %v7572_v46 = vld [vmem:[%s9586_s14 + $0x320] ss:$16 sps:$4 sm:$0xff]  }
0x2793   :  { %4525 = vmatprep.subr.bf16.mxu0 %v7409_v59  ;;  %v4499_v53 = vadd.f32 %v4498_v42, %v4129_v25  ;;  %v4500_v58 = vpop.f32.mrb[110].mxu1  ;;  %v7493_v59 = vld [vmem:[%s9586_s14 + $0x16c] ss:$16 sps:$4 sm:$0xff]   ;;  %v7527_v25 = vld [vmem:[%s9586_s14 + $0x228] ss:$16 sps:$4 sm:$0xff]  }
0x2794   :  { %v4501_v29 = vpop.f32.mrb[111].mxu1  ;;  %vm4544_vm12 = vcmp.ge.f32.partialorder %v4497_v57, 0.0  ;;  %v4548_v61 = vmul.f32 0.01, %v4497_v57  ;;  %v7578_v26 = vld [vmem:[%s9586_s14 + $0x340] ss:$16 sps:$4 sm:$0xff]  }
0x2795   :  { %vm4545_vm11 = vcmp.ge.f32.partialorder %v4499_v53, 0.0  ;;  %v4549_v23 = vmul.f32 0.01, %v4499_v53  ;;  %v7533_v42 = vld [vmem:[%s9586_s14 + $0x248] ss:$16 sps:$4 sm:$0xff]  }
0x2796   :  { %4526 = vmatpush1.bf16.msra.mxu0 %v7407_v13  ;;  %v4552_v47 = vsel %vm4544_vm12, %v4497_v57, %v4548_v61  ;;  %v7536_v13 = vld [vmem:[%s9586_s14 + $0x260] ss:$16 sps:$4 sm:$0xff]   ;;  %v7592_v57 = vld [vmem:[%s9586_s14 + $0x384] ss:$16 sps:$4 sm:$0xff]   ;;  %v7547_v58 = vld [vmem:[%s9586_s14 + $0x28c] ss:$16 sps:$4 sm:$0xff]  }
0x2797   :  { %4527 = vmatprep.subr.bf16.mxu0 %v7412_v14  ;;  %v4553_v0 = vsel %vm4545_vm11, %v4499_v53, %v4549_v23  ;;  %v9146_v3 = vpack.c.bf16 %v4552_v47, %v4552_v47  ;;  %v7491_v14 = vld [vmem:[%s9586_s14 + $0x168] ss:$16 sps:$4 sm:$0xff]   ;;  %v7541_v53 = vld [vmem:[%s9586_s14 + $0x26c] ss:$16 sps:$4 sm:$0xff]   ;;  %v7590_v23 = vld [vmem:[%s9586_s14 + $0x380] ss:$16 sps:$4 sm:$0xff]  }
0x2798   :  { %v4557_v2 = vpack.c.bf16 %v4553_v0, %v4553_v0  ;;  %v7545_v29 = vld [vmem:[%s9586_s14 + $0x288] ss:$16 sps:$4 sm:$0xff]   ;;  %v7553_v61 = vld [vmem:[%s9586_s14 + $0x2ac] ss:$16 sps:$4 sm:$0xff]   ;;  %v7604_v47 = vld [vmem:[%s9586_s14 + $0x3c4] ss:$16 sps:$4 sm:$0xff]  }
0x2799   :  { %v7551_v0 = vld [vmem:[%s9586_s14 + $0x2a8] ss:$16 sps:$4 sm:$0xff]  }
0x279a   :  { %4528 = vmatpush1.bf16.msra.mxu0 %v7410_v15  ;;  %5383 = vmatprep.mubr.bf16.mxu1 %v4557_v2  ;;  %v7544_v15 = vld [vmem:[%s9586_s14 + $0x284] ss:$16 sps:$4 sm:$0xff]  }
0x279b   :  { %4529 = vmatprep.subr.bf16.mxu0 %v7415_v16  ;;  %5384 = vmatmul.mubr.bf16.vlgmr.msra.gmra.mrb[112].mxu1 %v9146_v3  ;;  %v7499_v16 = vld [vmem:[%s9586_s14 + $0x18c] ss:$16 sps:$4 sm:$0xff]  }
0x279c   :  { %5393 = vmatpush1.bf16.msra.mxu1 %v7518_v27  ;;  %v7565_v27 = vld [vmem:[%s9586_s14 + $0x2ec] ss:$16 sps:$4 sm:$0xff]  }
0x279d   :  { %5394 = vmatprep.subr.bf16.mxu1 %v7526_v5  ;;  %v7608_v5 = vld [vmem:[%s9586_s14 + $0x3e0] ss:$16 sps:$4 sm:$0xff]  }
0x279e   :  { %4530 = vmatpush1.bf16.msra.mxu0 %v7413_v12  ;;  %v7542_v12 = vld [vmem:[%s9586_s14 + $0x280] ss:$16 sps:$4 sm:$0xff]  }
0x279f   :  { %4531 = vmatprep.subr.bf16.mxu0 %v7418_v17  ;;  %v7497_v17 = vld [vmem:[%s9586_s14 + $0x188] ss:$16 sps:$4 sm:$0xff]  }
0x27a0   :  { %5395 = vmatpush1.bf16.msra.mxu1 %v7524_v7  ;;  %v7571_v7 = vld [vmem:[%s9586_s14 + $0x30c] ss:$16 sps:$4 sm:$0xff]  }
0x27a1   :  { %5396 = vmatprep.subr.bf16.mxu1 %v7532_v9  ;;  %v7577_v9 = vld [vmem:[%s9586_s14 + $0x32c] ss:$16 sps:$4 sm:$0xff]  }
0x27a2   :  { %4532 = vmatpush1.bf16.msra.mxu0 %v7416_v18  ;;  %v7550_v18 = vld [vmem:[%s9586_s14 + $0x2a4] ss:$16 sps:$4 sm:$0xff]  }
0x27a3   :  { %4533 = vmatprep.subr.bf16.mxu0 %v7421_v19  ;;  %v7505_v19 = vld [vmem:[%s9586_s14 + $0x1ac] ss:$16 sps:$4 sm:$0xff]  }
0x27a4   :  { %5397 = vmatpush1.bf16.msra.mxu1 %v7530_v11  ;;  %v7583_v11 = vld [vmem:[%s9586_s14 + $0x34c] ss:$16 sps:$4 sm:$0xff]  }
0x27a5   :  { %5398 = vmatprep.subr.bf16.mxu1 %v7538_v48  ;;  %v7589_v48 = vld [vmem:[%s9586_s14 + $0x36c] ss:$16 sps:$4 sm:$0xff]  }
0x27a6   :  { %4534 = vmatpush1.bf16.msra.mxu0 %v7419_v20  ;;  %v7548_v20 = vld [vmem:[%s9586_s14 + $0x2a0] ss:$16 sps:$4 sm:$0xff]  }
0x27a7   :  { %5433 = vmatprep.subr.bf16.mxu0 %v7427_v21  ;;  %v7503_v21 = vld [vmem:[%s9586_s14 + $0x1a8] ss:$16 sps:$4 sm:$0xff]  }
0x27a8   :  { %5399 = vmatpush1.bf16.msra.mxu1 %v7536_v13  ;;  %v7595_v13 = vld [vmem:[%s9586_s14 + $0x38c] ss:$16 sps:$4 sm:$0xff]  }
0x27a9   :  { %4536 = vmatmul.mubr.bf16.vlgmr.msra.gmra.mrb[92].mxu0 %v8877_v6  ;;  %v7445_v6 = vld [vmem:[%s9586_s14 + $0x6c] ss:$16 sps:$4 sm:$0xff]   ;;  %5400 = vmatprep.subr.bf16.mxu1 %v7544_v15 }
0x27aa   :  { %5434 = vmatpush1.bf16.msra.mxu0 %v7425_v22  ;;  %5465 = vmatprep.mubr.bf16.mxu0 %v4557_v2  ;;  %v7556_v22 = vld [vmem:[%s9586_s14 + $0x2c4] ss:$16 sps:$4 sm:$0xff]   ;;  %v7602_v2 = vld [vmem:[%s9586_s14 + $0x3c0] ss:$16 sps:$4 sm:$0xff]   ;;  %v7601_v15 = vld [vmem:[%s9586_s14 + $0x3ac] ss:$16 sps:$4 sm:$0xff]  }
0x27ab   :  { %5435 = vmatprep.subr.bf16.mxu0 %v7433_v24  ;;  %v7511_v24 = vld [vmem:[%s9586_s14 + $0x1cc] ss:$16 sps:$4 sm:$0xff]  }
0x27ac   :  { %5401 = vmatpush1.bf16.msra.mxu1 %v7542_v12  ;;  %v7607_v12 = vld [vmem:[%s9586_s14 + $0x3cc] ss:$16 sps:$4 sm:$0xff]  }
0x27ad   :  { %5402 = vmatprep.subr.bf16.mxu1 %v7550_v18  ;;  %v7613_v18 = vld [vmem:[%s9586_s14 + $0x3ec] ss:$16 sps:$4 sm:$0xff]  }
0x27ae   :  { %5436 = vmatpush1.bf16.msra.mxu0 %v7431_v28  ;;  %v7554_v28 = vld [vmem:[%s9586_s14 + $0x2c0] ss:$16 sps:$4 sm:$0xff]  }
0x27af   :  { %5437 = vmatprep.subr.bf16.mxu0 %v7439_v31  ;;  %v7509_v31 = vld [vmem:[%s9586_s14 + $0x1c8] ss:$16 sps:$4 sm:$0xff]  }
0x27b0   :  { %5403 = vmatpush1.bf16.msra.mxu1 %v7548_v20 }
0x27b1   :  { %5404 = vmatprep.subr.bf16.mxu1 %v7556_v22 }
0x27b2   :  { %5438 = vmatpush1.bf16.msra.mxu0 %v7437_v32  ;;  %v7562_v32 = vld [vmem:[%s9586_s14 + $0x2e4] ss:$16 sps:$4 sm:$0xff]  }
0x27b3   :  { %5439 = vmatprep.subr.bf16.mxu0 %v7445_v6  ;;  %v7517_v6 = vld [vmem:[%s9586_s14 + $0x1ec] ss:$16 sps:$4 sm:$0xff]  }
0x27b4   :  { %5405 = vmatpush1.bf16.msra.mxu1 %v7554_v28 }
0x27b5   :  { %5406 = vmatprep.subr.bf16.mxu1 %v7562_v32 }
0x27b6   :  { %5440 = vmatpush1.bf16.msra.mxu0 %v7443_v54  ;;  %v7560_v54 = vld [vmem:[%s9586_s14 + $0x2e0] ss:$16 sps:$4 sm:$0xff]  }
0x27b7   :  { %5441 = vmatprep.subr.bf16.mxu0 %v7451_v55  ;;  %v7515_v55 = vld [vmem:[%s9586_s14 + $0x1e8] ss:$16 sps:$4 sm:$0xff]  }
0x27b8   :  { %5407 = vmatpush1.bf16.msra.mxu1 %v7560_v54  ;;  %v7614_v54 = vld [vmem:[%s9588_s16 + $0x50] sm:$0xff]  }
0x27ba   :  { %5442 = vmatpush1.bf16.msra.mxu0 %v7449_v33  ;;  %v7568_v33 = vld [vmem:[%s9586_s14 + $0x304] ss:$16 sps:$4 sm:$0xff]  }
0x27bb   :  { %5443 = vmatprep.subr.bf16.mxu0 %v7457_v34  ;;  %v7523_v34 = vld [vmem:[%s9586_s14 + $0x20c] ss:$16 sps:$4 sm:$0xff]   ;;  %5408 = vmatprep.subr.bf16.mxu1 %v7568_v33  ;;  %v4136_v33 = vsub.s32 3, %v9098_v36 }
0x27bc   :  { %5409 = vmatpush1.bf16.msra.mxu1 %v7566_v35 }
0x27bd   :  { %v4137_v35 = vrot.slane %v9110_v41, %v4136_v33 }
0x27be   :  { %5444 = vmatpush1.bf16.msra.mxu0 %v7455_v37  ;;  %v7521_v37 = vld [vmem:[%s9586_s14 + $0x208] ss:$16 sps:$4 sm:$0xff]  }
0x27bf   :  { %5445 = vmatprep.subr.bf16.mxu0 %v7463_v38  ;;  %v7574_v38 = vld [vmem:[%s9586_s14 + $0x324] ss:$16 sps:$4 sm:$0xff]  }
0x27c0   :  { %5410 = vmatprep.subr.bf16.mxu1 %v7574_v38 }
0x27c1   :  { %5411 = vmatpush1.bf16.msra.mxu1 %v7572_v46 }
0x27c2   :  { %5446 = vmatpush1.bf16.msra.mxu0 %v7461_v51  ;;  %v7535_v51 = vld [vmem:[%s9586_s14 + $0x24c] ss:$16 sps:$4 sm:$0xff]   ;;  %5412 = vmatprep.subr.bf16.mxu1 %v7580_v50 }
0x27c3   :  { %5447 = vmatprep.subr.bf16.mxu0 %v7469_v52  ;;  %v7586_v52 = vld [vmem:[%s9586_s14 + $0x364] ss:$16 sps:$4 sm:$0xff]  }
0x27c5   :  { %5413 = vmatpush1.bf16.msra.mxu1 %v7578_v26 }
0x27c6   :  { %5448 = vmatpush1.bf16.msra.mxu0 %v7467_v62  ;;  %5414 = vmatprep.subr.bf16.mxu1 %v7586_v52  ;;  %v7598_v62 = vld [vmem:[%s9586_s14 + $0x3a4] ss:$16 sps:$4 sm:$0xff]  }
0x27c7   :  { %5449 = vmatprep.subr.bf16.mxu0 %v7475_v63  ;;  %v7596_v63 = vld [vmem:[%s9586_s14 + $0x3a0] ss:$16 sps:$4 sm:$0xff]  }
0x27c9   :  { %5415 = vmatpush1.bf16.msra.mxu1 %v7584_v44 }
0x27ca   :  { %5450 = vmatpush1.bf16.msra.mxu0 %v7473_v4  ;;  %5416 = vmatprep.subr.bf16.mxu1 %v7592_v57  ;;  %v7610_v4 = vld [vmem:[%s9586_s14 + $0x3e4] ss:$16 sps:$4 sm:$0xff]   ;;  %v7618_v57 = vld [vmem:[%s9588_s16 + $0x58] sm:$0xff]  }
0x27cb   :  { %5451 = vmatprep.subr.bf16.mxu0 %v7481_v49  ;;  %v7563_v49 = vld [vmem:[%s9586_s14 + $0x2e8] ss:$16 sps:$4 sm:$0xff]  }
0x27cd   :  { %5417 = vmatpush1.bf16.msra.mxu1 %v7590_v23  ;;  %v7620_v23 = vld [vmem:[%s9588_s16 + $0x18] sm:$0xff]  }
0x27ce   :  { %5452 = vmatpush1.bf16.msra.mxu0 %v7479_v8  ;;  %5418 = vmatprep.subr.bf16.mxu1 %v7598_v62  ;;  %v7569_v8 = vld [vmem:[%s9586_s14 + $0x308] ss:$16 sps:$4 sm:$0xff]   ;;  %v7622_v62 = vld [vmem:[%s9588_s16 + $0x60] sm:$0xff]  }
0x27cf   :  { %5453 = vmatprep.subr.bf16.mxu0 %v7487_v10  ;;  %v7575_v10 = vld [vmem:[%s9586_s14 + $0x328] ss:$16 sps:$4 sm:$0xff]  }
0x27d1   :  { %5419 = vmatpush1.bf16.msra.mxu1 %v7596_v63  ;;  %v7624_v63 = vld [vmem:[%s9588_s16 + $0x20] sm:$0xff]  }
0x27d2   :  { %5454 = vmatpush1.bf16.msra.mxu0 %v7485_v30  ;;  %5420 = vmatprep.subr.bf16.mxu1 %v7604_v47  ;;  %v7581_v30 = vld [vmem:[%s9586_s14 + $0x348] ss:$16 sps:$4 sm:$0xff]  }
0x27d3   :  { %5455 = vmatprep.subr.bf16.mxu0 %v7493_v59  ;;  %v7587_v59 = vld [vmem:[%s9586_s14 + $0x368] ss:$16 sps:$4 sm:$0xff]  }
0x27d4   :  { %v7627_v47 = vld [vmem:[%s9588_s16 + $0xe8] sm:$0xff]  }
0x27d5   :  { %5421 = vmatpush1.bf16.msra.mxu1 %v7602_v2  ;;  %v7628_v2 = vld [vmem:[%s9588_s16 + $0x28] sm:$0xff]  }
0x27d6   :  { %5456 = vmatpush1.bf16.msra.mxu0 %v7491_v14  ;;  %5422 = vmatprep.subr.bf16.mxu1 %v7610_v4  ;;  %v7593_v14 = vld [vmem:[%s9586_s14 + $0x388] ss:$16 sps:$4 sm:$0xff]   ;;  %v7631_v4 = vld [vmem:[%s9588_s16 + $0xf0] sm:$0xff]  }
0x27d7   :  { %5457 = vmatprep.subr.bf16.mxu0 %v7499_v16  ;;  %v7599_v16 = vld [vmem:[%s9586_s14 + $0x3a8] ss:$16 sps:$4 sm:$0xff]  }
0x27d9   :  { %5423 = vmatpush1.bf16.msra.mxu1 %v7608_v5  ;;  %v7632_v5 = vld [vmem:[%s9588_s16 + $0x30] sm:$0xff]  }
0x27da   :  { %5458 = vmatpush1.bf16.msra.mxu0 %v7497_v17  ;;  %v7605_v17 = vld [vmem:[%s9586_s14 + $0x3c8] ss:$16 sps:$4 sm:$0xff]   ;;  %6724 = vmatprep.subr.bf16.mxu1 %v7614_v54 }
0x27db   :  { %5459 = vmatprep.subr.bf16.mxu0 %v7505_v19  ;;  %v7611_v19 = vld [vmem:[%s9586_s14 + $0x3e8] ss:$16 sps:$4 sm:$0xff]  }
0x27de   :  { %5460 = vmatpush1.bf16.msra.mxu0 %v7503_v21  ;;  %v6331_v21 = vld [vmem:[%s9578_s6 + $0xd] ss:$0 sm:$0xff] }
0x27df   :  { %5461 = vmatprep.subr.bf16.mxu0 %v7511_v24 }
0x27e2   :  { %5462 = vmatpush1.bf16.msra.mxu0 %v7509_v31 }
0x27e3   :  { %5463 = vmatprep.subr.bf16.mxu0 %v7517_v6 }
0x27e6   :  { %5464 = vmatpush1.bf16.msra.mxu0 %v7515_v55  ;;  %v7615_v55 = vld [vmem:[%s9588_s16 + $0xd0] sm:$0xff]  }
0x27e7   :  { %5474 = vmatprep.subr.bf16.mxu0 %v7523_v34 }
0x27e9   :  { %5466 = vmatmul.mubr.bf16.vlgmr.msra.gmra.mrb[96].mxu0 %v9146_v3  ;;  %v7557_v3 = vld [vmem:[%s9586_s14 + $0x2c8] ss:$16 sps:$4 sm:$0xff]   ;;  %s5976_s14 = sshll.u32 %s7814_s28, 4  ;;  %s5977_s14 = int_to_ptr.vmem [resolvable:$true] %s5976_s14 }
0x27ea   :  { %5475 = vmatpush1.bf16.msra.mxu0 %v7521_v37  ;;  %s7740_s13 = scalar_lea.vmem %s5977_s14, 32  ;;  %p7745_p1 = scmp.lt.s32.totalorder %s5977_s14, %s5977_s14 }
0x27eb   :  { %5476 = vmatprep.subr.bf16.mxu0 %v7529_v45  ;;  %p7741_p0 = scmp.ne.s32.totalorder %s5977_s14, %s7740_s13  ;;  %p7746_p2 = scmp.lt.s32.totalorder %s7740_s13, %s7740_s13 }
0x27ed   :  { %p7747_p3 = por %p7746_p2, %p7745_p1 }
0x27ee   :  { %5477 = vmatpush1.bf16.msra.mxu0 %v7527_v25 }
0x27ef   :  { %5478 = vmatprep.subr.bf16.mxu0 %v7535_v51  ;;  %p7748_p4 = pnand %p7747_p3, %p7741_p0 }
0x27f2   :  { %5479 = vmatpush1.bf16.msra.mxu0 %v7533_v42 }
0x27f3   :  { %5480 = vmatprep.subr.bf16.mxu0 %v7541_v53 }
0x27f6   :  { %5481 = vmatpush1.bf16.msra.mxu0 %v7539_v56  ;;  %v7616_v56 = vld [vmem:[%s9588_s16 + $0x10] sm:$0xff]  }
0x27f7   :  { %5482 = vmatprep.subr.bf16.mxu0 %v7547_v58  ;;  %v7619_v58 = vld [vmem:[%s9588_s16 + $0xd8] sm:$0xff]  }
0x27fa   :  { %5483 = vmatpush1.bf16.msra.mxu0 %v7545_v29  ;;  %v7621_v29 = vld [vmem:[%s9588_s16 + $0x98] sm:$0xff]  }
0x27fb   :  { %5484 = vmatprep.subr.bf16.mxu0 %v7553_v61  ;;  %v7623_v61 = vld [vmem:[%s9588_s16 + $0xe0] sm:$0xff]  }
0x27fe   :  { %5485 = vmatpush1.bf16.msra.mxu0 %v7551_v0  ;;  %v7625_v0 = vld [vmem:[%s9588_s16 + $0xa0] sm:$0xff]  }
0x27ff   :  { %5486 = vmatprep.subr.bf16.mxu0 %v7559_v1  ;;  %v7626_v1 = vld [vmem:[%s9588_s16 + $0x68] sm:$0xff]  }
0x2802   :  { %5487 = vmatpush1.bf16.msra.mxu0 %v7557_v3  ;;  %v7629_v3 = vld [vmem:[%s9588_s16 + $0xa8] sm:$0xff]  }
0x2803   :  { %5488 = vmatprep.subr.bf16.mxu0 %v7565_v27  ;;  %v7630_v27 = vld [vmem:[%s9588_s16 + $0x70] sm:$0xff]  }
0x2806   :  { %5489 = vmatpush1.bf16.msra.mxu0 %v7563_v49  ;;  %v7633_v49 = vld [vmem:[%s9588_s16 + $0xb0] sm:$0xff]  }
0x2807   :  { %5490 = vmatprep.subr.bf16.mxu0 %v7571_v7  ;;  %v7634_v7 = vld [vmem:[%s9588_s16 + $0x78] sm:$0xff]  }
0x280a   :  { %5491 = vmatpush1.bf16.msra.mxu0 %v7569_v8  ;;  %v7635_v8 = vld [vmem:[%s9588_s16 + $0xf8] sm:$0xff]  }
0x280b   :  { %5492 = vmatprep.subr.bf16.mxu0 %v7577_v9  ;;  %v7636_v9 = vld [vmem:[%s9588_s16 + $0x38] sm:$0xff]  }
0x280e   :  { %5493 = vmatpush1.bf16.msra.mxu0 %v7575_v10  ;;  %v7637_v10 = vld [vmem:[%s9588_s16 + $0xb8] sm:$0xff]  }
0x280f   :  { %5494 = vmatprep.subr.bf16.mxu0 %v7583_v11 }
0x2812   :  { %5495 = vmatpush1.bf16.msra.mxu0 %v7581_v30 }
0x2813   :  { %5496 = vmatprep.subr.bf16.mxu0 %v7589_v48 }
0x2816   :  { %5497 = vmatpush1.bf16.msra.mxu0 %v7587_v59 }
0x2817   :  { %5498 = vmatprep.subr.bf16.mxu0 %v7595_v13 }
0x281a   :  { %5499 = vmatpush1.bf16.msra.mxu0 %v7593_v14  ;;  %v7638_v14 = vld [vmem:[%s9588_s16 + $0x80] sm:$0xff]  }
0x281b   :  { %5500 = vmatprep.subr.bf16.mxu0 %v7601_v15  ;;  %v7639_v15 = vld [vmem:[%s9588_s16 + $0x100] sm:$0xff]  }
0x281e   :  { %5501 = vmatpush1.bf16.msra.mxu0 %v7599_v16  ;;  %v7640_v16 = vld [vmem:[%s9588_s16 + $0x40] sm:$0xff]  }
0x281f   :  { %5502 = vmatprep.subr.bf16.mxu0 %v7607_v12  ;;  %v7641_v12 = vld [vmem:[%s9588_s16 + $0xc0] sm:$0xff]  }
0x2822   :  { %5503 = vmatpush1.bf16.msra.mxu0 %v7605_v17  ;;  %v7642_v17 = vld [vmem:[%s9588_s16 + $0x88] sm:$0xff]  }
0x2823   :  { %5504 = vmatprep.subr.bf16.mxu0 %v7613_v18  ;;  %v7643_v18 = vld [vmem:[%s9588_s16 + $0x108] sm:$0xff]  }
0x2826   :  { %5505 = vmatpush1.bf16.msra.mxu0 %v7611_v19  ;;  %v7644_v19 = vld [vmem:[%s9588_s16 + $0x48] sm:$0xff]  }
0x2827   :  { %6746 = vmatprep.subr.bf16.mxu0 %v7615_v55 }
0x283c   :  { %v4003_v20 = vpop.f32.mrb[88].mxu0 }
0x283d   :  { %v4009_v22 = vadd.f32 %v4003_v20, %v8721_v60  ;;  %v7169_v24 = vpop.f32.mrb[89].mxu0  ;;  %v4132_v60 = vsub.s32 2, %v9098_v36  ;;  %v7645_v20 = vld [vmem:[%s9588_s16 + $0xc8] sm:$0xff]  }
0x283e   :  { %v4006_v28 = vpop.f32.mrb[90].mxu0 }
0x283f   :  { %v7170_v31 = vpop.f32.mrb[91].mxu0  ;;  %v9388_v32 = vadd.f32 %v6331_v21, %v4009_v22  ;;  %v4133_v34 = vrot.slane %v9110_v41, %v4132_v60  ;;  %v7617_v41 = vld [vmem:[%s9588_s16 + $0x90] sm:$0xff]   ;;  %v6399_v21 = vld [vmem:[%s9587_s15 + $0x1] ss:$2 sm:$0xf] }
0x2840   :  { %v4694_v22 = vrot.slane %v6399_v21, %v4124_v43  ;;  %v4702_v24 = vrot.slane %v6399_v21, %v4132_v60  ;;  %v7813_v28 = vmov 1983009808  }
0x2841   :  { %v4018_v6 = vsel %vm222_vm2, %v9388_v32, 0.0  ;;  %v5534_v31 = vunpack.c.l.s4 %v7813_v28 }
0x2842   :  { %4019 = vadd.xlane.f32.xlu0 %v4018_v6  ;;  %v4706_v6 = vrot.slane %v6399_v21, %v4136_v33 }
0x287c   :  { %v4537_v37 = vpop.f32.mrb[92].mxu0 }
0x287d   :  { %v4538_v38 = vadd.f32 %v4537_v37, %v4133_v34  ;;  %v4539_v45 = vpop.f32.mrb[93].mxu0 }
0x287e   :  { %v4540_v46 = vadd.f32 %v4539_v45, %v4137_v35  ;;  %v4541_v25 = vpop.f32.mrb[94].mxu0  ;;  %v5535_v45 = vunpack.c.0.s8 %v5534_v31 }
0x287f   :  { %vm4546_vm13 = vcmp.ge.f32.partialorder %v4538_v38, 0.0  ;;  %v4550_v50 = vmul.f32 0.01, %v4538_v38  ;;  %v4542_v51 = vpop.f32.mrb[95].mxu0 }
0x2880   :  { %vm4547_vm14 = vcmp.ge.f32.partialorder %v4540_v46, 0.0  ;;  %v4551_v26 = vmul.f32 0.01, %v4540_v46 }
0x2881   :  { %v4554_v42 = vsel %vm4546_vm13, %v4538_v38, %v4550_v50 }
0x2882   :  { %v4558_v52 = vpack.c.bf16 %v4554_v42, %v4554_v42  ;;  %v4555_v53 = vsel %vm4547_vm14, %v4540_v46, %v4551_v26 }
0x2883   :  { %v4559_v44 = vpack.c.bf16 %v4555_v53, %v4555_v53 }
0x2885   :  { %5424 = vmatprep.mubr.bf16.mxu1 %v4559_v44  ;;  %5506 = vmatprep.mubr.bf16.mxu0 %v4559_v44  ;;  %v5538_v44 = vsub.s32 %v5535_v45, %v9098_v36  ;;  %v7647_v36 = vld [vmem:[%s9588_s16 + $0x8] sm:$0xff]  }
0x2886   :  { %5425 = vmatmul.mubr.bf16.vlgmr.msra.gmra.mrb[112].mxu1 %v4558_v52  ;;  %5507 = vmatmul.mubr.bf16.vlgmr.msra.gmra.mrb[96].mxu0 %v4558_v52 }
0x2887   :  { %6725 = vmatpush3.bf16.msra.mxu1 %v7616_v56  ;;  %6747 = vmatpush3.bf16.msra.mxu0 %v7617_v41 }
0x2888   :  { %6726 = vmatprep.subr.bf16.mxu1 %v7618_v57  ;;  %6748 = vmatprep.subr.bf16.mxu0 %v7619_v58 }
0x288b   :  { %6727 = vmatpush3.bf16.msra.mxu1 %v7620_v23  ;;  %6749 = vmatpush3.bf16.msra.mxu0 %v7621_v29 }
0x288c   :  { %6728 = vmatprep.subr.bf16.mxu1 %v7622_v62  ;;  %6750 = vmatprep.subr.bf16.mxu0 %v7623_v61  ;;  %v7646_v62 = vld [vmem:[%s9588_s16] sm:$0xff]  }
0x288f   :  { %6729 = vmatpush3.bf16.msra.mxu1 %v7624_v63  ;;  %6751 = vmatpush3.bf16.msra.mxu0 %v7625_v0 }
0x2890   :  { %6730 = vmatprep.subr.bf16.mxu1 %v7626_v1  ;;  %6752 = vmatprep.subr.bf16.mxu0 %v7627_v47 }
0x2893   :  { %6731 = vmatpush3.bf16.msra.mxu1 %v7628_v2  ;;  %6753 = vmatpush3.bf16.msra.mxu0 %v7629_v3 }
0x2894   :  { %6732 = vmatprep.subr.bf16.mxu1 %v7630_v27  ;;  %6754 = vmatprep.subr.bf16.mxu0 %v7631_v4 }
0x2897   :  { %6733 = vmatpush3.bf16.msra.mxu1 %v7632_v5  ;;  %6755 = vmatpush3.bf16.msra.mxu0 %v7633_v49  ;;  %v6332_v5 = vld [vmem:[%s9577_s5] ss:$0 sm:$0xff] }
0x2898   :  { %6734 = vmatprep.subr.bf16.mxu1 %v7634_v7  ;;  %6756 = vmatprep.subr.bf16.mxu0 %v7635_v8  ;;  %v6333_v7 = vld [vmem:[%s9577_s5 + $0x1] ss:$0 sm:$0xff] }
0x289b   :  { %6735 = vmatpush3.bf16.msra.mxu1 %v7636_v9  ;;  %6757 = vmatpush3.bf16.msra.mxu0 %v7637_v10 }
0x289c   :  { %6736 = vmatprep.subr.bf16.mxu1 %v7638_v14  ;;  %6758 = vmatprep.subr.bf16.mxu0 %v7639_v15 }
0x289f   :  { %6737 = vmatpush3.bf16.msra.mxu1 %v7640_v16  ;;  %6759 = vmatpush3.bf16.msra.mxu0 %v7641_v12 }
0x28a0   :  { %6738 = vmatprep.subr.bf16.mxu1 %v7642_v17  ;;  %6760 = vmatprep.subr.bf16.mxu0 %v7643_v18 }
0x28a3   :  { %6739 = vmatpush3.bf16.msra.mxu1 %v7644_v19  ;;  %6761 = vmatpush3.bf16.msra.mxu0 %v7645_v20 }
0x28a4   :  { %7171 = vmatprep.subr.bf16.mxu1 %v7811_v40 }
0x28cf   :  { %v4020_v11 = vpop.xlane.xlu0 %4019 }
0x28d0   :  { %v4021_v30 = vmul.f32 0.03125, %v4020_v11 }
0x28d2   :  { %v9473_v48 = vsub.f32 %v9388_v32, %v4021_v30  ;;  %v4698_v32 = vrot.slane %v6399_v21, %v4128_v39 }
0x28d4   :  { %v4023_v59 = vmul.f32 %v9473_v48, %v9473_v48 }
0x28d6   :  { %v4024_v13 = vsel %vm222_vm2, %v4023_v59, 0.0 }
0x28d7   :  { %4025 = vadd.xlane.f32.xlu1 %v4024_v13 }
0x2959   :  { %v5426_v54 = vpop.f32.mrb[112].mxu1  ;;  %v5508_v55 = vpop.f32.mrb[96].mxu0 }
0x295a   :  { %v7227_v34 = vadd.f32 %v5426_v54, %v4694_v22  ;;  %v7229_v35 = vadd.f32 %v5508_v55, %v4702_v24  ;;  %v5428_v37 = vpop.f32.mrb[113].mxu1  ;;  %v5510_v38 = vpop.f32.mrb[97].mxu0 }
0x295b   :  { %v7228_v46 = vadd.f32 %v5428_v37, %v4698_v32  ;;  %v7230_v43 = vadd.f32 %v5510_v38, %v4706_v6  ;;  %v5430_v25 = vpop.f32.mrb[114].mxu1  ;;  %v5512_v50 = vpop.f32.mrb[98].mxu0 }
0x295c   :  { %vm5515_vm15 = vcmp.ge.f32.partialorder %v7227_v34, 0.0  ;;  %v5519_v60 = vmul.f32 0.01, %v7227_v34  ;;  %vm5517_vm0 = vcmp.ge.f32.partialorder %v7229_v35, 0.0  ;;  %v5521_v51 = vmul.f32 0.01, %v7229_v35 }
0x295d   :  { %vm5516_vm1 = vcmp.ge.f32.partialorder %v7228_v46, 0.0  ;;  %v5520_v39 = vmul.f32 0.01, %v7228_v46  ;;  %vm5518_vm5 = vcmp.ge.f32.partialorder %v7230_v43, 0.0  ;;  %v5522_v26 = vmul.f32 0.01, %v7230_v43 }
0x295e   :  { %v5523_v33 = vsel %vm5515_vm15, %v7227_v34, %v5519_v60  ;;  %v5525_v42 = vsel %vm5517_vm0, %v7229_v35, %v5521_v51  ;;  %v5431_v52 = vpop.f32.mrb[115].mxu1  ;;  %v5513_v53 = vpop.f32.mrb[99].mxu0 }
0x295f   :  { %v5524_v56 = vsel %vm5516_vm1, %v7228_v46, %v5520_v39  ;;  %v5526_v41 = vsel %vm5518_vm5, %v7230_v43, %v5522_v26  ;;  %v5555_v61 = vpack.c.bf16 %v5523_v33, %v5523_v33  ;;  %v5557_v63 = vpack.c.bf16 %v5525_v42, %v5525_v42 }
0x2960   :  { %v5531_v57 = vcombine.low %v5523_v33, %v5524_v56  ;;  %v5556_v58 = vpack.c.bf16 %v5524_v56, %v5524_v56  ;;  %v5532_v23 = vcombine.low %v5525_v42, %v5526_v41  ;;  %v5558_v29 = vpack.c.bf16 %v5526_v41, %v5526_v41 }
0x2962   :  { %5847 = vmatprep.mubr.bf16.mxu1 %v5556_v58  ;;  %5887 = vmatprep.mubr.bf16.mxu0 %v5558_v29  ;;  %v5539_v0 = vrot.slane %v5531_v57, %v5538_v44  ;;  %v5546_v1 = vrot.slane %v5532_v23, %v5538_v44 }
0x2963   :  { %5848 = vmatmul.mubr.bf16.vlgmr.msra.gmra.mrb[116].mxu1 %v5555_v61  ;;  %5888 = vmatmul.mubr.bf16.vlgmr.msra.gmra.mrb[100].mxu0 %v5557_v63 }
0x2964   :  { %v4026_v47 = vpop.xlane.xlu1 %4025  ;;  %7172 = vmatpush3.bf16.msra.mxu1 %v7646_v62  ;;  %7175 = vmatprep.mubr.msk.bf16.mxu1 %vm7812_vm4, %v7811_v40  ;;  %v5547_v2 = vcombine.low %v5539_v0, %v5546_v1 }
0x2965   :  { %v4027_v3 = vmul.f32 0.03125, %v4026_v47  ;;  %7173 = vmatprep.subr.bf16.mxu1 %v7811_v40 }
0x2966   :  { %5549 = vst [vmem:[#allocation6] sm:$0xff] %v5547_v2 }
0x2967   :  { %v4028_v27 = vadd.f32 1e-06, %v4027_v3 }
0x2968   :  { %7174 = vmatpush3.bf16.msra.mxu1 %v7647_v36 }
0x2969   :  { %7736 = vrsqrt.f32 %v4028_v27 }
0x2973   :  { %v7737_v4 = vpop.eup %7736 }
0x2974   :  { %v4030_v49 = vmul.f32 %v7737_v4, %v9473_v48 }
0x2976   :  { %v4035_v8 = vmul.f32 %v6332_v5, %v4030_v49 }
0x2978   :  { %v4040_v9 = vadd.f32 %v6333_v7, %v4035_v8 }
0x297a   :  { %v5550_v10 = vpack.c.bf16 %v4040_v9, %v4040_v9  ;;  %4041 = vst.msk [vmem:[#allocation4] sm:$0x3] %vm226_vm3, %v4040_v9 }
0x297c   :  { %7176 = vmatmul.mubr.msk.bf16.vlgmr.msra.gmra.mrb[120].mxu1 %vm222_vm2, %v5550_v10 }
0x297d   :  { %7751 = shalt.err (!%p7748_p4)
}
0x297e   :  { %s7752_s5 = scalar_lea.hbm %s9591_s19, 32 }
0x297f   :  { %p7753_p5 = scmp.ne.s32.totalorder %s9591_s19, %s7752_s5  ;;  %p7756_p6 = scmp.lt.u32.totalorder %s7752_s5, %s9591_s19 }
0x2981   :  { %p7758_p7 = pnand %p7756_p6, %p7753_p5 }
0x2983   :  { %7761 = shalt.err (!%p7758_p7)
}
0x2984   :  { %5979 = dma.vmem_to_hbm [thread:$0]  %s5977_s14, 32, %s9591_s19, [#allocation5]  }
0x2985   :  { %s7815_s2 = smov [#allocation6]  }
0x2986   :  { %s5986_s25 = sshll.u32 %s7815_s2, 4  ;;  %s5987_s25 = int_to_ptr.vmem [resolvable:$true] %s5986_s25 }
0x2987   :  { %s7762_s23 = scalar_lea.vmem %s5987_s25, 128  ;;  %p7767_p9 = scmp.lt.s32.totalorder %s5987_s25, %s5987_s25 }
0x2988   :  { %p7763_p8 = scmp.ne.s32.totalorder %s5987_s25, %s7762_s23  ;;  %p7768_p10 = scmp.lt.s32.totalorder %s7762_s23, %s7762_s23 }
0x298a   :  { %p7769_p11 = por %p7768_p10, %p7767_p9 }
0x298c   :  { %p7770_p12 = pnand %p7769_p11, %p7763_p8 }
0x298e   :  { %7773 = shalt.err (!%p7770_p12)
}
0x298f   :  { %s7774_s7 = scalar_lea.hbm %s9592_s20, 128 }
0x2990   :  { %p7775_p13 = scmp.ne.s32.totalorder %s9592_s20, %s7774_s7  ;;  %p7778_p0 = scmp.lt.u32.totalorder %s7774_s7, %s9592_s20 }
0x2992   :  { %p7780_p1 = pnand %p7778_p0, %p7775_p13 }
0x2994   :  { %7783 = shalt.err (!%p7780_p1)
}
0x2995   :  { %5989 = dma.vmem_to_hbm [thread:$0]  %s5987_s25, 128, %s9592_s20, [#allocation5]   ;;  %v6563_v19 = vld [vmem:[%s9589_s17] ss:$0 sm:$0xff]  ;;  %vm5958_vm2 = vcmask 25600  }
0x2996   :  { %s7816_s9 = smov [#allocation2]  }
0x2997   :  { %s5966_s16 = sshll.u32 %s7816_s9, 4  ;;  %s5967_s16 = int_to_ptr.vmem [resolvable:$true] %s5966_s16 }
0x2998   :  { %s7784_s20 = scalar_lea.vmem %s5967_s16, 32  ;;  %p7789_p3 = scmp.lt.s32.totalorder %s5967_s16, %s5967_s16 }
0x2999   :  { %p7785_p2 = scmp.ne.s32.totalorder %s5967_s16, %s7784_s20  ;;  %p7790_p4 = scmp.lt.s32.totalorder %s7784_s20, %s7784_s20 }
0x299b   :  { %p7791_p5 = por %p7790_p4, %p7789_p3 }
0x299d   :  { %p7792_p6 = pnand %p7791_p5, %p7785_p2 }
0x2a36   :  { %v6740_v40 = vpop.f32.mrb[116].mxu1  ;;  %v6762_v11 = vpop.f32.mrb[100].mxu0 }
0x2a37   :  { %v6741_v30 = vpop.f32.mrb[117].mxu1  ;;  %v6763_v48 = vpop.f32.mrb[101].mxu0 }
0x2a38   :  { %v6742_v59 = vadd.f32 %v6741_v30, %v6740_v40  ;;  %v6764_v13 = vadd.f32 %v6763_v48, %v6762_v11  ;;  %v6743_v14 = vpop.f32.mrb[118].mxu1  ;;  %v6765_v15 = vpop.f32.mrb[102].mxu0 }
0x2a39   :  { %v6744_v16 = vpop.f32.mrb[119].mxu1  ;;  %v6766_v12 = vpop.f32.mrb[103].mxu0 }
0x2a3a   :  { %v5890_v17 = vadd.f32 %v6764_v13, %v6742_v59 }
0x2a4f   :  { %v5944_v18 = vpop.f32.mrb[120].mxu1 }
0x2a50   :  { %v5945_v20 = vadd.f32 %v5944_v18, %v5890_v17  ;;  %v7177_v21 = vpop.f32.mrb[121].mxu1 }
0x2a51   :  { %v5947_v22 = vpop.f32.mrb[122].mxu1 }
0x2a52   :  { %v7178_v24 = vpop.f32.mrb[123].mxu1  ;;  %v5957_v28 = vadd.f32 %v6563_v19, %v5945_v20 }
0x2a54   :  { %5959 = vst.msk [vmem:[#allocation2] sm:$0x3] %vm5958_vm2, %v5957_v28 }
0x2a55   :  { %7795 = shalt.err (!%p7792_p6)
}
0x2a56   :  { %s7796_s17 = scalar_lea.hbm %s9590_s18, 32 }
0x2a57   :  { %p7797_p7 = scmp.ne.s32.totalorder %s9590_s18, %s7796_s17  ;;  %p7800_p8 = scmp.lt.u32.totalorder %s7796_s17, %s9590_s18 }
0x2a59   :  { %p7802_p9 = pnand %p7800_p8, %p7797_p7 }
0x2a5b   :  { %7805 = shalt.err (!%p7802_p9)
}
0x2a5c   :  { %5969 = dma.vmem_to_hbm [thread:$0]  %s5967_s16, 32, %s9590_s18, [#allocation3]  }
0x2a5d   :  { %7806 = dma.done.wait [#allocation3], 32  }
0x2a5e   :  { %7807 = vsyncadd [#allocation3], 4294967264 }
0x2a5f   :  { %7808 = dma.done.wait [#allocation5], 160  }
0x2a60   :  { %7809 = vsyncadd [#allocation5], 4294967136 }
0x2a61   :  { %5999 = vsyncpa [#allocation3], 1 }
0x2a62   :  { %6000 = vsyncpa [#allocation5], 1 }

</bundles_post_ra>
